<compile_context>
chip_gen: v6e
topology: v6e:2x2x1
jax: 0.10.0
libtpu: 0.0.40
codegen_flags: <defaults>
</compile_context>

<pallas_src>
import jax
import jax.numpy as jnp
from jax.experimental import pallas as pl
from jax.experimental.pallas import tpu as pltpu


def _round_up(v, m):
    return (v + m - 1) // m * m


def _vmem_limit_bytes():
    try:
        cap = pltpu.get_tpu_info().vmem_capacity_bytes
        return int(min(cap * 3 // 4, 96 * 1024 * 1024))
    except Exception:
        return 64 * 1024 * 1024


# ---------------------------------------------------------------------------
# Wrapper-side weight packing (tiny arrays, fused by XLA into the param prep)
# ---------------------------------------------------------------------------
def _pack_upconv(up_w, up_b, dtype):
    """up_w: (Cin, Cout, 2, 2) -> (2[p], Cin, 2*Cout[(q,co)]), bias -> (1, 2*Cout)."""
    cin, cout = up_w.shape[0], up_w.shape[1]
    w = jnp.transpose(up_w, (2, 3, 0, 1))              # (p, q, Cin, Cout)
    w = jnp.transpose(w, (0, 2, 1, 3)).reshape(2, cin, 2 * cout)
    b = jnp.tile(up_b, 2).reshape(1, 2 * cout)
    return w.astype(dtype), b.astype(jnp.float32)


def _pack_conv3_w(w, split):
    """w: (Co, K, 3, 3) -> packed taps (9, 2*K, 2*Co) for the column-pair representation.

    Packed input channel order:  [b0.lo, b0.hi, b1.lo, b1.hi, ...] (branch-major, per `split`).
    Packed output channel order: [out.lo, out.hi].
    """
    co = w.shape[0]
    t = jnp.transpose(w, (2, 3, 1, 0))                  # (3, 3, K, Co); t[i,j][ki,co]=w[co,ki,i,j]
    taps = []
    for i in range(3):
        for dj in (-1, 0, 1):
            blocks = []
            start = 0
            for kb in split:
                tb = t[:, :, start:start + kb, :]
                z = jnp.zeros((kb, co), w.dtype)
                if dj == -1:
                    lo = jnp.concatenate([z, z], axis=1)
                    hi = jnp.concatenate([tb[i, 0], z], axis=1)
                elif dj == 0:
                    lo = jnp.concatenate([tb[i, 1], tb[i, 0]], axis=1)
                    hi = jnp.concatenate([tb[i, 2], tb[i, 1]], axis=1)
                else:
                    lo = jnp.concatenate([z, tb[i, 2]], axis=1)
                    hi = jnp.concatenate([z, z], axis=1)
                blocks.append(jnp.concatenate([lo, hi], axis=0))   # (2*kb, 2*Co)
                start += kb
            taps.append(jnp.concatenate(blocks, axis=0))           # (2*K, 2*Co)
    return jnp.stack(taps, axis=0)                                 # (9, 2*K, 2*Co)


# ---------------------------------------------------------------------------
# In-kernel helpers
# ---------------------------------------------------------------------------
def _packed_conv3x3_relu(flat_in, w_ref, b_ref, OH, Wpk, Wc, chunk_rows, store_fn):
    """3x3 conv (+bias+ReLU) on the once-flattened padded packed image, row-band chunked."""
    np_out = w_ref.shape[2]
    for y0 in range(0, OH, chunk_rows):
        cy = min(chunk_rows, OH - y0)
        nr = cy * Wpk
        base = y0 * Wpk
        acc = jnp.zeros((nr, np_out), jnp.float32)
        for i in range(3):
            for dj in range(3):
                off = base + i * Wpk + dj
                acc = acc + jnp.dot(flat_in[off:off + nr, :], w_ref[i * 3 + dj],
                                    preferred_element_type=jnp.float32)
        h = jnp.maximum(acc + b_ref[...], 0.0).reshape(cy, Wpk, np_out)
        store_fn(y0, cy, h[:, :Wc, :])


def _make_fused_kernel(H, Wc, Cout, Cs, Hp, Wpk, chunk_rows):
    OH = 2 * H
    has_skip = Cs > 0
    cp_up = 2 * Cout
    cp_cat = 2 * (Cout + Cs)

    def kernel(*args):
        if has_skip:
            (x_ref, sk_ref, wup_ref, bup_ref, w1_ref, b1_ref, w2_ref, b2_ref,
             o_ref, cat_ref, mid_ref) = args
        else:
            (x_ref, wup_ref, bup_ref, w1_ref, b1_ref, w2_ref, b2_ref,
             o_ref, cat_ref, mid_ref) = args
            sk_ref = None

        # ---- zero the persistent padded scratches once; interiors are rewritten every step ----
        @pl.when(pl.program_id(0) == 0)
        def _zero_pads():
            cat_ref[...] = jnp.zeros(cat_ref.shape, cat_ref.dtype)
            mid_ref[...] = jnp.zeros(mid_ref.shape, mid_ref.dtype)

        # ---- fused ConvTranspose2d(k=2,s=2): matmul + sub-pixel scatter into padded scratch ----
        x2 = x_ref[0]                                        # (H*W, Cin) bf16
        for p in range(2):
            u = jnp.dot(x2, wup_ref[p], preferred_element_type=jnp.float32) + bup_ref[...]
            for h in range(H):                               # column parity lives in the lane dim
                cat_ref[1 + 2 * h + p, 1:1 + Wc, 0:cp_up] = (
                    u[h * Wc:(h + 1) * Wc, :].astype(cat_ref.dtype))
        if has_skip:
            cat_ref[1:1 + OH, 1:1 + Wc, cp_up:cp_cat] = sk_ref[0]

        # ---- conv1 -> ReLU (into padded bf16 mid scratch), then conv2 -> ReLU (to output) ----
        def store_mid(y0, cy, v):
            mid_ref[1 + y0:1 + y0 + cy, 1:1 + Wc, :] = v.astype(mid_ref.dtype)

        def store_out(y0, cy, v):
            o_ref[0, y0:y0 + cy, :, :] = v.astype(o_ref.dtype)

        cat_flat = cat_ref[...].reshape(Hp * Wpk, cp_cat)
        _packed_conv3x3_relu(cat_flat, w1_ref, b1_ref, OH, Wpk, Wc, chunk_rows, store_mid)
        mid_flat = mid_ref[...].reshape(Hp * Wpk, cp_up)
        _packed_conv3x3_relu(mid_flat, w2_ref, b2_ref, OH, Wpk, Wc, chunk_rows, store_out)

    return kernel


# ---------------------------------------------------------------------------
# Wrapper (NCHW in / NCHW out, matching the PyTorch module)
# ---------------------------------------------------------------------------
def decoder_block(x, skip, params):
    """x: (N, Cin, H, W); skip: (N, Cs, 2H, 2W) or None; returns (N, Cout, 2H, 2W) f32."""
    up_w, up_b, w1, b1, w2, b2 = params
    N, Cin, H, W = x.shape
    Cout = up_w.shape[1]
    OH, OW = 2 * H, 2 * W
    Wc = W                                      # packed (column-pair) width = OW // 2
    Wpk = _round_up(Wc + 2, 16)                 # halo + bf16 sublane alignment
    Hp = OH + 3
    cdt = jnp.bfloat16

    x_rows = jnp.transpose(x, (0, 2, 3, 1)).reshape(N, H * W, Cin).astype(cdt)
    wup, bup = _pack_upconv(up_w, up_b, cdt)

    has_skip = skip is not None
    if has_skip:
        Cs = skip.shape[1]
        sk = jnp.transpose(skip, (0, 2, 3, 1))
        if sk.shape[1] != OH or sk.shape[2] != OW:          # PyTorch center-crop behaviour
            dY, dX = sk.shape[1] - OH, sk.shape[2] - OW
            sk = sk[:, dY // 2:dY // 2 + OH, dX // 2:dX // 2 + OW, :]
        sk_packed = sk.reshape(N, OH, Wc, 2 * Cs).astype(cdt)
        split = [Cout, Cs]
    else:
        Cs = 0
        sk_packed = None
        split = [Cout]

    w1p = _pack_conv3_w(w1, split).astype(cdt)              # (9, 2*(Cout+Cs), 2*Cout)
    w2p = _pack_conv3_w(w2, [Cout]).astype(cdt)             # (9, 2*Cout, 2*Cout)
    b1p = jnp.tile(b1, 2).reshape(1, 2 * Cout).astype(jnp.float32)
    b2p = jnp.tile(b2, 2).reshape(1, 2 * Cout).astype(jnp.float32)

    chunk_rows = max(1, 512 // Wpk)

    in_specs = [pl.BlockSpec((1, H * W, Cin), lambda n: (n, 0, 0))]
    inputs = [x_rows]
    if has_skip:
        in_specs.append(pl.BlockSpec((1, OH, Wc, 2 * Cs), lambda n: (n, 0, 0, 0)))
        inputs.append(sk_packed)
    in_specs += [
        pl.BlockSpec((2, Cin, 2 * Cout), lambda n: (0, 0, 0)),
        pl.BlockSpec((1, 2 * Cout), lambda n: (0, 0)),
        pl.BlockSpec((9, 2 * (Cout + Cs), 2 * Cout), lambda n: (0, 0, 0)),
        pl.BlockSpec((1, 2 * Cout), lambda n: (0, 0)),
        pl.BlockSpec((9, 2 * Cout, 2 * Cout), lambda n: (0, 0, 0)),
        pl.BlockSpec((1, 2 * Cout), lambda n: (0, 0)),
    ]
    inputs += [wup, bup, w1p, b1p, w2p, b2p]

    out_packed = pl.pallas_call(
        _make_fused_kernel(H, Wc, Cout, Cs, Hp, Wpk, chunk_rows),
        out_shape=jax.ShapeDtypeStruct((N, OH, Wc, 2 * Cout), jnp.float32),
        grid_spec=pltpu.PrefetchScalarGridSpec(
            num_scalar_prefetch=0,
            grid=(N,),
            in_specs=in_specs,
            out_specs=pl.BlockSpec((1, OH, Wc, 2 * Cout), lambda n: (n, 0, 0, 0)),
            scratch_shapes=[
                pltpu.VMEM((Hp, Wpk, 2 * (Cout + Cs)), cdt),   # padded cat(up, skip) image
                pltpu.VMEM((Hp, Wpk, 2 * Cout), cdt),          # padded conv1 activation
            ],
        ),
        compiler_params=pltpu.CompilerParams(
            dimension_semantics=("arbitrary",),   # sequential: persistent-scratch pad zeroing
            vmem_limit_bytes=_vmem_limit_bytes(),
        ),
    )(*inputs)

    out = out_packed.reshape(N, OH, Wc, 2, Cout).reshape(N, OH, OW, Cout)
    return jnp.transpose(out, (0, 3, 1, 2))


# ---------------------------------------------------------------------------
# Deterministic parameter init (PyTorch-like uniform(-1/sqrt(fan_in), ...))
# ---------------------------------------------------------------------------
def init_params(key, in_ch, out_ch, skip_ch):
    ks = jax.random.split(key, 6)

    def u(k, shape, fan_in):
        bound = 1.0 / float(fan_in) ** 0.5
        return jax.random.uniform(k, shape, jnp.float32, -bound, bound)

    up_w = u(ks[0], (in_ch, out_ch, 2, 2), in_ch * 4)       # ConvTranspose2d weight
    up_b = u(ks[1], (out_ch,), in_ch * 4)
    c1_in = out_ch + (skip_ch or 0)
    w1 = u(ks[2], (out_ch, c1_in, 3, 3), c1_in * 9)
    b1 = u(ks[3], (out_ch,), c1_in * 9)
    w2 = u(ks[4], (out_ch, out_ch, 3, 3), out_ch * 9)
    b2 = u(ks[5], (out_ch,), out_ch * 9)
    return up_w, up_b, w1, b1, w2, b2


# ---------------------------------------------------------------------------
# Pure-JAX reference (f32, highest precision)
# ---------------------------------------------------------------------------
def decoder_block_ref(x, skip, params):
    up_w, up_b, w1, b1, w2, b2 = params
    N, Cin, H, W = x.shape
    Cout = up_w.shape[1]
    xh = jnp.transpose(x, (0, 2, 3, 1))
    u = jnp.einsum("nhwc,cdpq->nhpwqd", xh, up_w, precision="highest")
    up = u.reshape(N, 2 * H, 2 * W, Cout) + up_b
    y = up
    if skip is not None:
        y = jnp.concatenate([up, jnp.transpose(skip, (0, 2, 3, 1))], axis=-1)

    def conv3(z, w, b):
        out = jax.lax.conv_general_dilated(
            z, jnp.transpose(w, (2, 3, 1, 0)), (1, 1), "SAME",
            dimension_numbers=("NHWC", "HWIO", "NHWC"), precision="highest",
        )
        return out + b

    h = jax.nn.relu(conv3(y, w1, b1))
    h = jax.nn.relu(conv3(h, w2, b2))
    return jnp.transpose(h, (0, 3, 1, 2))


if __name__ == "__main__":
    key = jax.random.PRNGKey(0)
    kx, ks, kp, kp2 = jax.random.split(key, 4)

    N, Cin, Cout, Cs, H, W = 2, 8, 8, 8, 8, 8
    x = jax.random.normal(kx, (N, Cin, H, W), jnp.float32)
    skip = jax.random.normal(ks, (N, Cs, 2 * H, 2 * W), jnp.float32)

    # with skip connection
    params = init_params(kp, Cin, Cout, Cs)
    out = jax.block_until_ready(jax.jit(decoder_block)(x, skip, params))
    ref = decoder_block_ref(x, skip, params)
    assert out.shape == (N, Cout, 2 * H, 2 * W), out.shape
    err = float(jnp.max(jnp.abs(out - ref)))
    assert err < 5e-2, f"max abs err {err}"      # bf16 activations/weights, f32 accumulation

    # without skip connection
    params_ns = init_params(kp2, Cin, Cout, None)
    out_ns = jax.block_until_ready(
        jax.jit(lambda a, p: decoder_block(a, None, p))(x, params_ns))
    ref_ns = decoder_block_ref(x, None, params_ns)
    err_ns = float(jnp.max(jnp.abs(out_ns - ref_ns)))
    assert err_ns < 5e-2, f"max abs err (no skip) {err_ns}"

    print("KERNEL_OK")
</pallas_src>

<mosaic_0001>
module attributes {stable_mosaic.version = 11 : i64} {
  func.func @kernel(%arg0: i32, %arg1: memref<1x64x8xbf16, #tpu.memory_space<vmem>>, %arg2: memref<1x16x8x16xbf16, #tpu.memory_space<vmem>>, %arg3: memref<2x8x16xbf16, #tpu.memory_space<vmem>>, %arg4: memref<1x16xf32, #tpu.memory_space<vmem>>, %arg5: memref<9x32x16xbf16, #tpu.memory_space<vmem>>, %arg6: memref<1x16xf32, #tpu.memory_space<vmem>>, %arg7: memref<9x16x16xbf16, #tpu.memory_space<vmem>>, %arg8: memref<1x16xf32, #tpu.memory_space<vmem>>, %arg9: memref<1x16x8x16xf32, #tpu.memory_space<vmem>>, %arg10: memref<19x16x32xbf16, #tpu.memory_space<vmem>>, %arg11: memref<19x16x16xbf16, #tpu.memory_space<vmem>>) attributes {dimension_semantics = [#tpu.dimension_semantics<arbitrary>], iteration_bounds = array<i64: 2>, scalar_prefetch = 0 : i64, scratch_operands = 2 : i64, tpu.core_type = #tpu.core_type<tc>, window_params = [{transform_indices = @transform_0, window_bounds = array<i64: 1, 64, 8>}, {transform_indices = @transform_1, window_bounds = array<i64: 1, 16, 8, 16>}, {pipeline_mode = #tpu.pipeline_mode<synchronous>, transform_indices = @transform_2, window_bounds = array<i64: 2, 8, 16>}, {pipeline_mode = #tpu.pipeline_mode<synchronous>, transform_indices = @transform_3, window_bounds = array<i64: 1, 16>}, {pipeline_mode = #tpu.pipeline_mode<synchronous>, transform_indices = @transform_4, window_bounds = array<i64: 9, 32, 16>}, {pipeline_mode = #tpu.pipeline_mode<synchronous>, transform_indices = @transform_5, window_bounds = array<i64: 1, 16>}, {pipeline_mode = #tpu.pipeline_mode<synchronous>, transform_indices = @transform_6, window_bounds = array<i64: 9, 16, 16>}, {pipeline_mode = #tpu.pipeline_mode<synchronous>, transform_indices = @transform_7, window_bounds = array<i64: 1, 16>}, {transform_indices = @transform_8, window_bounds = array<i64: 1, 16, 8, 16>}]} {
    %c0_i32 = arith.constant 0 : i32
    %0 = arith.cmpi eq, %arg0, %c0_i32 : i32
    %1 = arith.extui %0 : i1 to i32
    %c0_i32_0 = arith.constant 0 : i32
    %2 = arith.cmpi ne, %1, %c0_i32_0 : i32
    scf.if %2 {
      %cst_146 = arith.constant 0.000000e+00 : bf16
      %215 = vector.broadcast %cst_146 : bf16 to vector<19x16x32xbf16>
      %c0_147 = arith.constant 0 : index
      %c0_148 = arith.constant 0 : index
      %c0_149 = arith.constant 0 : index
      %216 = vector.load %arg10[%c0_147, %c0_148, %c0_149] : memref<19x16x32xbf16, #tpu.memory_space<vmem>>, vector<19x16x32xbf16>
      tpu.vector_store %arg10[%c0_147, %c0_148, %c0_149], %215 {strides = array<i32>} : memref<19x16x32xbf16, #tpu.memory_space<vmem>>, vector<19x16x32xbf16>,
      %cst_150 = arith.constant 0.000000e+00 : bf16
      %217 = vector.broadcast %cst_150 : bf16 to vector<19x16x16xbf16>
      %c0_151 = arith.constant 0 : index
      %c0_152 = arith.constant 0 : index
      %c0_153 = arith.constant 0 : index
      %218 = vector.load %arg11[%c0_151, %c0_152, %c0_153] : memref<19x16x16xbf16, #tpu.memory_space<vmem>>, vector<19x16x16xbf16>
      tpu.vector_store %arg11[%c0_151, %c0_152, %c0_153], %217 {strides = array<i32>} : memref<19x16x16xbf16, #tpu.memory_space<vmem>>, vector<19x16x16xbf16>,
    } else {
    }
    %c0 = arith.constant 0 : index
    %c0_1 = arith.constant 0 : index
    %c0_2 = arith.constant 0 : index
    %3 = vector.load %arg1[%c0, %c0_1, %c0_2] : memref<1x64x8xbf16, #tpu.memory_space<vmem>>, vector<1x64x8xbf16>
    %4 = vector.shape_cast %3 : vector<1x64x8xbf16> to vector<64x8xbf16>
    %c0_3 = arith.constant 0 : index
    %c0_4 = arith.constant 0 : index
    %c0_5 = arith.constant 0 : index
    %5 = vector.load %arg3[%c0_3, %c0_4, %c0_5] : memref<2x8x16xbf16, #tpu.memory_space<vmem>>, vector<1x8x16xbf16>
    %6 = vector.shape_cast %5 : vector<1x8x16xbf16> to vector<8x16xbf16>
    %cst = arith.constant dense<0.000000e+00> : vector<64x16xf32>
    %7 = tpu.matmul %4, %6, %cst {dimension_numbers = #tpu.dot_dimension_numbers<[1], [0], [0], [1], [0, 0, 1, 1], [], []>} : vector<64x8xbf16>, vector<8x16xbf16>, vector<64x16xf32> -> vector<64x16xf32>
    %c0_6 = arith.constant 0 : index
    %c0_7 = arith.constant 0 : index
    %8 = vector.load %arg4[%c0_6, %c0_7] : memref<1x16xf32, #tpu.memory_space<vmem>>, vector<1x16xf32>
    %9 = vector.broadcast %8 : vector<1x16xf32> to vector<64x16xf32>
    %10 = arith.addf %7, %9 : vector<64x16xf32>
    %11 = vector.extract_strided_slice %10 {offsets = [0, 0], sizes = [8, 16], strides = [1, 1]} : vector<64x16xf32> to vector<8x16xf32>
    %12 = arith.truncf %11 : vector<8x16xf32> to vector<8x16xbf16>
    %c1 = arith.constant 1 : index
    %c1_8 = arith.constant 1 : index
    %c0_9 = arith.constant 0 : index
    %13 = vector.load %arg10[%c1, %c1_8, %c0_9] : memref<19x16x32xbf16, #tpu.memory_space<vmem>>, vector<1x8x16xbf16>
    %14 = vector.shape_cast %13 : vector<1x8x16xbf16> to vector<8x16xbf16>
    %15 = vector.shape_cast %12 : vector<8x16xbf16> to vector<1x8x16xbf16>
    tpu.vector_store %arg10[%c1, %c1_8, %c0_9], %15 {strides = array<i32>} : memref<19x16x32xbf16, #tpu.memory_space<vmem>>, vector<1x8x16xbf16>,
    %16 = vector.extract_strided_slice %10 {offsets = [8, 0], sizes = [8, 16], strides = [1, 1]} : vector<64x16xf32> to vector<8x16xf32>
    %17 = arith.truncf %16 : vector<8x16xf32> to vector<8x16xbf16>
    %c3 = arith.constant 3 : index
    %c1_10 = arith.constant 1 : index
    %c0_11 = arith.constant 0 : index
    %18 = vector.load %arg10[%c3, %c1_10, %c0_11] : memref<19x16x32xbf16, #tpu.memory_space<vmem>>, vector<1x8x16xbf16>
    %19 = vector.shape_cast %18 : vector<1x8x16xbf16> to vector<8x16xbf16>
    %20 = vector.shape_cast %17 : vector<8x16xbf16> to vector<1x8x16xbf16>
    tpu.vector_store %arg10[%c3, %c1_10, %c0_11], %20 {strides = array<i32>} : memref<19x16x32xbf16, #tpu.memory_space<vmem>>, vector<1x8x16xbf16>,
    %21 = vector.extract_strided_slice %10 {offsets = [16, 0], sizes = [8, 16], strides = [1, 1]} : vector<64x16xf32> to vector<8x16xf32>
    %22 = arith.truncf %21 : vector<8x16xf32> to vector<8x16xbf16>
    %c5 = arith.constant 5 : index
    %c1_12 = arith.constant 1 : index
    %c0_13 = arith.constant 0 : index
    %23 = vector.load %arg10[%c5, %c1_12, %c0_13] : memref<19x16x32xbf16, #tpu.memory_space<vmem>>, vector<1x8x16xbf16>
    %24 = vector.shape_cast %23 : vector<1x8x16xbf16> to vector<8x16xbf16>
    %25 = vector.shape_cast %22 : vector<8x16xbf16> to vector<1x8x16xbf16>
    tpu.vector_store %arg10[%c5, %c1_12, %c0_13], %25 {strides = array<i32>} : memref<19x16x32xbf16, #tpu.memory_space<vmem>>, vector<1x8x16xbf16>,
    %26 = vector.extract_strided_slice %10 {offsets = [24, 0], sizes = [8, 16], strides = [1, 1]} : vector<64x16xf32> to vector<8x16xf32>
    %27 = arith.truncf %26 : vector<8x16xf32> to vector<8x16xbf16>
    %c7 = arith.constant 7 : index
    %c1_14 = arith.constant 1 : index
    %c0_15 = arith.constant 0 : index
    %28 = vector.load %arg10[%c7, %c1_14, %c0_15] : memref<19x16x32xbf16, #tpu.memory_space<vmem>>, vector<1x8x16xbf16>
    %29 = vector.shape_cast %28 : vector<1x8x16xbf16> to vector<8x16xbf16>
    %30 = vector.shape_cast %27 : vector<8x16xbf16> to vector<1x8x16xbf16>
    tpu.vector_store %arg10[%c7, %c1_14, %c0_15], %30 {strides = array<i32>} : memref<19x16x32xbf16, #tpu.memory_space<vmem>>, vector<1x8x16xbf16>,
    %31 = vector.extract_strided_slice %10 {offsets = [32, 0], sizes = [8, 16], strides = [1, 1]} : vector<64x16xf32> to vector<8x16xf32>
    %32 = arith.truncf %31 : vector<8x16xf32> to vector<8x16xbf16>
    %c9 = arith.constant 9 : index
    %c1_16 = arith.constant 1 : index
    %c0_17 = arith.constant 0 : index
    %33 = vector.load %arg10[%c9, %c1_16, %c0_17] : memref<19x16x32xbf16, #tpu.memory_space<vmem>>, vector<1x8x16xbf16>
    %34 = vector.shape_cast %33 : vector<1x8x16xbf16> to vector<8x16xbf16>
    %35 = vector.shape_cast %32 : vector<8x16xbf16> to vector<1x8x16xbf16>
    tpu.vector_store %arg10[%c9, %c1_16, %c0_17], %35 {strides = array<i32>} : memref<19x16x32xbf16, #tpu.memory_space<vmem>>, vector<1x8x16xbf16>,
    %36 = vector.extract_strided_slice %10 {offsets = [40, 0], sizes = [8, 16], strides = [1, 1]} : vector<64x16xf32> to vector<8x16xf32>
    %37 = arith.truncf %36 : vector<8x16xf32> to vector<8x16xbf16>
    %c11 = arith.constant 11 : index
    %c1_18 = arith.constant 1 : index
    %c0_19 = arith.constant 0 : index
    %38 = vector.load %arg10[%c11, %c1_18, %c0_19] : memref<19x16x32xbf16, #tpu.memory_space<vmem>>, vector<1x8x16xbf16>
    %39 = vector.shape_cast %38 : vector<1x8x16xbf16> to vector<8x16xbf16>
    %40 = vector.shape_cast %37 : vector<8x16xbf16> to vector<1x8x16xbf16>
    tpu.vector_store %arg10[%c11, %c1_18, %c0_19], %40 {strides = array<i32>} : memref<19x16x32xbf16, #tpu.memory_space<vmem>>, vector<1x8x16xbf16>,
    %41 = vector.extract_strided_slice %10 {offsets = [48, 0], sizes = [8, 16], strides = [1, 1]} : vector<64x16xf32> to vector<8x16xf32>
    %42 = arith.truncf %41 : vector<8x16xf32> to vector<8x16xbf16>
    %c13 = arith.constant 13 : index
    %c1_20 = arith.constant 1 : index
    %c0_21 = arith.constant 0 : index
    %43 = vector.load %arg10[%c13, %c1_20, %c0_21] : memref<19x16x32xbf16, #tpu.memory_space<vmem>>, vector<1x8x16xbf16>
    %44 = vector.shape_cast %43 : vector<1x8x16xbf16> to vector<8x16xbf16>
    %45 = vector.shape_cast %42 : vector<8x16xbf16> to vector<1x8x16xbf16>
    tpu.vector_store %arg10[%c13, %c1_20, %c0_21], %45 {strides = array<i32>} : memref<19x16x32xbf16, #tpu.memory_space<vmem>>, vector<1x8x16xbf16>,
    %46 = vector.extract_strided_slice %10 {offsets = [56, 0], sizes = [8, 16], strides = [1, 1]} : vector<64x16xf32> to vector<8x16xf32>
    %47 = arith.truncf %46 : vector<8x16xf32> to vector<8x16xbf16>
    %c15 = arith.constant 15 : index
    %c1_22 = arith.constant 1 : index
    %c0_23 = arith.constant 0 : index
    %48 = vector.load %arg10[%c15, %c1_22, %c0_23] : memref<19x16x32xbf16, #tpu.memory_space<vmem>>, vector<1x8x16xbf16>
    %49 = vector.shape_cast %48 : vector<1x8x16xbf16> to vector<8x16xbf16>
    %50 = vector.shape_cast %47 : vector<8x16xbf16> to vector<1x8x16xbf16>
    tpu.vector_store %arg10[%c15, %c1_22, %c0_23], %50 {strides = array<i32>} : memref<19x16x32xbf16, #tpu.memory_space<vmem>>, vector<1x8x16xbf16>,
    %c1_24 = arith.constant 1 : index
    %c0_25 = arith.constant 0 : index
    %c0_26 = arith.constant 0 : index
    %51 = vector.load %arg3[%c1_24, %c0_25, %c0_26] : memref<2x8x16xbf16, #tpu.memory_space<vmem>>, vector<1x8x16xbf16>
    %52 = vector.shape_cast %51 : vector<1x8x16xbf16> to vector<8x16xbf16>
    %cst_27 = arith.constant dense<0.000000e+00> : vector<64x16xf32>
    %53 = tpu.matmul %4, %52, %cst_27 {dimension_numbers = #tpu.dot_dimension_numbers<[1], [0], [0], [1], [0, 0, 1, 1], [], []>} : vector<64x8xbf16>, vector<8x16xbf16>, vector<64x16xf32> -> vector<64x16xf32>
    %c0_28 = arith.constant 0 : index
    %c0_29 = arith.constant 0 : index
    %54 = vector.load %arg4[%c0_28, %c0_29] : memref<1x16xf32, #tpu.memory_space<vmem>>, vector<1x16xf32>
    %55 = vector.broadcast %54 : vector<1x16xf32> to vector<64x16xf32>
    %56 = arith.addf %53, %55 : vector<64x16xf32>
    %57 = vector.extract_strided_slice %56 {offsets = [0, 0], sizes = [8, 16], strides = [1, 1]} : vector<64x16xf32> to vector<8x16xf32>
    %58 = arith.truncf %57 : vector<8x16xf32> to vector<8x16xbf16>
    %c2 = arith.constant 2 : index
    %c1_30 = arith.constant 1 : index
    %c0_31 = arith.constant 0 : index
    %59 = vector.load %arg10[%c2, %c1_30, %c0_31] : memref<19x16x32xbf16, #tpu.memory_space<vmem>>, vector<1x8x16xbf16>
    %60 = vector.shape_cast %59 : vector<1x8x16xbf16> to vector<8x16xbf16>
    %61 = vector.shape_cast %58 : vector<8x16xbf16> to vector<1x8x16xbf16>
    tpu.vector_store %arg10[%c2, %c1_30, %c0_31], %61 {strides = array<i32>} : memref<19x16x32xbf16, #tpu.memory_space<vmem>>, vector<1x8x16xbf16>,
    %62 = vector.extract_strided_slice %56 {offsets = [8, 0], sizes = [8, 16], strides = [1, 1]} : vector<64x16xf32> to vector<8x16xf32>
    %63 = arith.truncf %62 : vector<8x16xf32> to vector<8x16xbf16>
    %c4 = arith.constant 4 : index
    %c1_32 = arith.constant 1 : index
    %c0_33 = arith.constant 0 : index
    %64 = vector.load %arg10[%c4, %c1_32, %c0_33] : memref<19x16x32xbf16, #tpu.memory_space<vmem>>, vector<1x8x16xbf16>
    %65 = vector.shape_cast %64 : vector<1x8x16xbf16> to vector<8x16xbf16>
    %66 = vector.shape_cast %63 : vector<8x16xbf16> to vector<1x8x16xbf16>
    tpu.vector_store %arg10[%c4, %c1_32, %c0_33], %66 {strides = array<i32>} : memref<19x16x32xbf16, #tpu.memory_space<vmem>>, vector<1x8x16xbf16>,
    %67 = vector.extract_strided_slice %56 {offsets = [16, 0], sizes = [8, 16], strides = [1, 1]} : vector<64x16xf32> to vector<8x16xf32>
    %68 = arith.truncf %67 : vector<8x16xf32> to vector<8x16xbf16>
    %c6 = arith.constant 6 : index
    %c1_34 = arith.constant 1 : index
    %c0_35 = arith.constant 0 : index
    %69 = vector.load %arg10[%c6, %c1_34, %c0_35] : memref<19x16x32xbf16, #tpu.memory_space<vmem>>, vector<1x8x16xbf16>
    %70 = vector.shape_cast %69 : vector<1x8x16xbf16> to vector<8x16xbf16>
    %71 = vector.shape_cast %68 : vector<8x16xbf16> to vector<1x8x16xbf16>
    tpu.vector_store %arg10[%c6, %c1_34, %c0_35], %71 {strides = array<i32>} : memref<19x16x32xbf16, #tpu.memory_space<vmem>>, vector<1x8x16xbf16>,
    %72 = vector.extract_strided_slice %56 {offsets = [24, 0], sizes = [8, 16], strides = [1, 1]} : vector<64x16xf32> to vector<8x16xf32>
    %73 = arith.truncf %72 : vector<8x16xf32> to vector<8x16xbf16>
    %c8 = arith.constant 8 : index
    %c1_36 = arith.constant 1 : index
    %c0_37 = arith.constant 0 : index
    %74 = vector.load %arg10[%c8, %c1_36, %c0_37] : memref<19x16x32xbf16, #tpu.memory_space<vmem>>, vector<1x8x16xbf16>
    %75 = vector.shape_cast %74 : vector<1x8x16xbf16> to vector<8x16xbf16>
    %76 = vector.shape_cast %73 : vector<8x16xbf16> to vector<1x8x16xbf16>
    tpu.vector_store %arg10[%c8, %c1_36, %c0_37], %76 {strides = array<i32>} : memref<19x16x32xbf16, #tpu.memory_space<vmem>>, vector<1x8x16xbf16>,
    %77 = vector.extract_strided_slice %56 {offsets = [32, 0], sizes = [8, 16], strides = [1, 1]} : vector<64x16xf32> to vector<8x16xf32>
    %78 = arith.truncf %77 : vector<8x16xf32> to vector<8x16xbf16>
    %c10 = arith.constant 10 : index
    %c1_38 = arith.constant 1 : index
    %c0_39 = arith.constant 0 : index
    %79 = vector.load %arg10[%c10, %c1_38, %c0_39] : memref<19x16x32xbf16, #tpu.memory_space<vmem>>, vector<1x8x16xbf16>
    %80 = vector.shape_cast %79 : vector<1x8x16xbf16> to vector<8x16xbf16>
    %81 = vector.shape_cast %78 : vector<8x16xbf16> to vector<1x8x16xbf16>
    tpu.vector_store %arg10[%c10, %c1_38, %c0_39], %81 {strides = array<i32>} : memref<19x16x32xbf16, #tpu.memory_space<vmem>>, vector<1x8x16xbf16>,
    %82 = vector.extract_strided_slice %56 {offsets = [40, 0], sizes = [8, 16], strides = [1, 1]} : vector<64x16xf32> to vector<8x16xf32>
    %83 = arith.truncf %82 : vector<8x16xf32> to vector<8x16xbf16>
    %c12 = arith.constant 12 : index
    %c1_40 = arith.constant 1 : index
    %c0_41 = arith.constant 0 : index
    %84 = vector.load %arg10[%c12, %c1_40, %c0_41] : memref<19x16x32xbf16, #tpu.memory_space<vmem>>, vector<1x8x16xbf16>
    %85 = vector.shape_cast %84 : vector<1x8x16xbf16> to vector<8x16xbf16>
    %86 = vector.shape_cast %83 : vector<8x16xbf16> to vector<1x8x16xbf16>
    tpu.vector_store %arg10[%c12, %c1_40, %c0_41], %86 {strides = array<i32>} : memref<19x16x32xbf16, #tpu.memory_space<vmem>>, vector<1x8x16xbf16>,
    %87 = vector.extract_strided_slice %56 {offsets = [48, 0], sizes = [8, 16], strides = [1, 1]} : vector<64x16xf32> to vector<8x16xf32>
    %88 = arith.truncf %87 : vector<8x16xf32> to vector<8x16xbf16>
    %c14 = arith.constant 14 : index
    %c1_42 = arith.constant 1 : index
    %c0_43 = arith.constant 0 : index
    %89 = vector.load %arg10[%c14, %c1_42, %c0_43] : memref<19x16x32xbf16, #tpu.memory_space<vmem>>, vector<1x8x16xbf16>
    %90 = vector.shape_cast %89 : vector<1x8x16xbf16> to vector<8x16xbf16>
    %91 = vector.shape_cast %88 : vector<8x16xbf16> to vector<1x8x16xbf16>
    tpu.vector_store %arg10[%c14, %c1_42, %c0_43], %91 {strides = array<i32>} : memref<19x16x32xbf16, #tpu.memory_space<vmem>>, vector<1x8x16xbf16>,
    %92 = vector.extract_strided_slice %56 {offsets = [56, 0], sizes = [8, 16], strides = [1, 1]} : vector<64x16xf32> to vector<8x16xf32>
    %93 = arith.truncf %92 : vector<8x16xf32> to vector<8x16xbf16>
    %c16 = arith.constant 16 : index
    %c1_44 = arith.constant 1 : index
    %c0_45 = arith.constant 0 : index
    %94 = vector.load %arg10[%c16, %c1_44, %c0_45] : memref<19x16x32xbf16, #tpu.memory_space<vmem>>, vector<1x8x16xbf16>
    %95 = vector.shape_cast %94 : vector<1x8x16xbf16> to vector<8x16xbf16>
    %96 = vector.shape_cast %93 : vector<8x16xbf16> to vector<1x8x16xbf16>
    tpu.vector_store %arg10[%c16, %c1_44, %c0_45], %96 {strides = array<i32>} : memref<19x16x32xbf16, #tpu.memory_space<vmem>>, vector<1x8x16xbf16>,
    %c0_46 = arith.constant 0 : index
    %c0_47 = arith.constant 0 : index
    %c0_48 = arith.constant 0 : index
    %c0_49 = arith.constant 0 : index
    %97 = vector.load %arg2[%c0_46, %c0_47, %c0_48, %c0_49] : memref<1x16x8x16xbf16, #tpu.memory_space<vmem>>, vector<1x16x8x16xbf16>
    %98 = vector.shape_cast %97 : vector<1x16x8x16xbf16> to vector<16x8x16xbf16>
    %c1_50 = arith.constant 1 : index
    %c1_51 = arith.constant 1 : index
    %c16_52 = arith.constant 16 : index
    %99 = vector.load %arg10[%c1_50, %c1_51, %c16_52] : memref<19x16x32xbf16, #tpu.memory_space<vmem>>, vector<16x8x16xbf16>
    tpu.vector_store %arg10[%c1_50, %c1_51, %c16_52], %98 {strides = array<i32>} : memref<19x16x32xbf16, #tpu.memory_space<vmem>>, vector<16x8x16xbf16>,
    %c0_53 = arith.constant 0 : index
    %c0_54 = arith.constant 0 : index
    %c0_55 = arith.constant 0 : index
    %100 = vector.load %arg10[%c0_53, %c0_54, %c0_55] : memref<19x16x32xbf16, #tpu.memory_space<vmem>>, vector<19x16x32xbf16>
    %101 = vector.shape_cast %100 : vector<19x16x32xbf16> to vector<304x32xbf16>
    %cst_56 = arith.constant 0.000000e+00 : f32
    %102 = vector.broadcast %cst_56 : f32 to vector<256x16xf32>
    %103 = vector.extract_strided_slice %101 {offsets = [0, 0], sizes = [256, 32], strides = [1, 1]} : vector<304x32xbf16> to vector<256x32xbf16>
    %c0_57 = arith.constant 0 : index
    %c0_58 = arith.constant 0 : index
    %c0_59 = arith.constant 0 : index
    %104 = vector.load %arg5[%c0_57, %c0_58, %c0_59] : memref<9x32x16xbf16, #tpu.memory_space<vmem>>, vector<1x32x16xbf16>
    %105 = vector.shape_cast %104 : vector<1x32x16xbf16> to vector<32x16xbf16>
    %cst_60 = arith.constant dense<0.000000e+00> : vector<256x16xf32>
    %106 = tpu.matmul %103, %105, %cst_60 {dimension_numbers = #tpu.dot_dimension_numbers<[1], [0], [0], [1], [0, 0, 1, 1], [], []>} : vector<256x32xbf16>, vector<32x16xbf16>, vector<256x16xf32> -> vector<256x16xf32>
    %107 = arith.addf %102, %106 : vector<256x16xf32>
    %108 = vector.extract_strided_slice %101 {offsets = [1, 0], sizes = [256, 32], strides = [1, 1]} : vector<304x32xbf16> to vector<256x32xbf16>
    %c1_61 = arith.constant 1 : index
    %c0_62 = arith.constant 0 : index
    %c0_63 = arith.constant 0 : index
    %109 = vector.load %arg5[%c1_61, %c0_62, %c0_63] : memref<9x32x16xbf16, #tpu.memory_space<vmem>>, vector<1x32x16xbf16>
    %110 = vector.shape_cast %109 : vector<1x32x16xbf16> to vector<32x16xbf16>
    %cst_64 = arith.constant dense<0.000000e+00> : vector<256x16xf32>
    %111 = tpu.matmul %108, %110, %cst_64 {dimension_numbers = #tpu.dot_dimension_numbers<[1], [0], [0], [1], [0, 0, 1, 1], [], []>} : vector<256x32xbf16>, vector<32x16xbf16>, vector<256x16xf32> -> vector<256x16xf32>
    %112 = arith.addf %107, %111 : vector<256x16xf32>
    %113 = vector.extract_strided_slice %101 {offsets = [2, 0], sizes = [256, 32], strides = [1, 1]} : vector<304x32xbf16> to vector<256x32xbf16>
    %c2_65 = arith.constant 2 : index
    %c0_66 = arith.constant 0 : index
    %c0_67 = arith.constant 0 : index
    %114 = vector.load %arg5[%c2_65, %c0_66, %c0_67] : memref<9x32x16xbf16, #tpu.memory_space<vmem>>, vector<1x32x16xbf16>
    %115 = vector.shape_cast %114 : vector<1x32x16xbf16> to vector<32x16xbf16>
    %cst_68 = arith.constant dense<0.000000e+00> : vector<256x16xf32>
    %116 = tpu.matmul %113, %115, %cst_68 {dimension_numbers = #tpu.dot_dimension_numbers<[1], [0], [0], [1], [0, 0, 1, 1], [], []>} : vector<256x32xbf16>, vector<32x16xbf16>, vector<256x16xf32> -> vector<256x16xf32>
    %117 = arith.addf %112, %116 : vector<256x16xf32>
    %118 = vector.extract_strided_slice %101 {offsets = [16, 0], sizes = [256, 32], strides = [1, 1]} : vector<304x32xbf16> to vector<256x32xbf16>
    %c3_69 = arith.constant 3 : index
    %c0_70 = arith.constant 0 : index
    %c0_71 = arith.constant 0 : index
    %119 = vector.load %arg5[%c3_69, %c0_70, %c0_71] : memref<9x32x16xbf16, #tpu.memory_space<vmem>>, vector<1x32x16xbf16>
    %120 = vector.shape_cast %119 : vector<1x32x16xbf16> to vector<32x16xbf16>
    %cst_72 = arith.constant dense<0.000000e+00> : vector<256x16xf32>
    %121 = tpu.matmul %118, %120, %cst_72 {dimension_numbers = #tpu.dot_dimension_numbers<[1], [0], [0], [1], [0, 0, 1, 1], [], []>} : vector<256x32xbf16>, vector<32x16xbf16>, vector<256x16xf32> -> vector<256x16xf32>
    %122 = arith.addf %117, %121 : vector<256x16xf32>
    %123 = vector.extract_strided_slice %101 {offsets = [17, 0], sizes = [256, 32], strides = [1, 1]} : vector<304x32xbf16> to vector<256x32xbf16>
    %c4_73 = arith.constant 4 : index
    %c0_74 = arith.constant 0 : index
    %c0_75 = arith.constant 0 : index
    %124 = vector.load %arg5[%c4_73, %c0_74, %c0_75] : memref<9x32x16xbf16, #tpu.memory_space<vmem>>, vector<1x32x16xbf16>
    %125 = vector.shape_cast %124 : vector<1x32x16xbf16> to vector<32x16xbf16>
    %cst_76 = arith.constant dense<0.000000e+00> : vector<256x16xf32>
    %126 = tpu.matmul %123, %125, %cst_76 {dimension_numbers = #tpu.dot_dimension_numbers<[1], [0], [0], [1], [0, 0, 1, 1], [], []>} : vector<256x32xbf16>, vector<32x16xbf16>, vector<256x16xf32> -> vector<256x16xf32>
    %127 = arith.addf %122, %126 : vector<256x16xf32>
    %128 = vector.extract_strided_slice %101 {offsets = [18, 0], sizes = [256, 32], strides = [1, 1]} : vector<304x32xbf16> to vector<256x32xbf16>
    %c5_77 = arith.constant 5 : index
    %c0_78 = arith.constant 0 : index
    %c0_79 = arith.constant 0 : index
    %129 = vector.load %arg5[%c5_77, %c0_78, %c0_79] : memref<9x32x16xbf16, #tpu.memory_space<vmem>>, vector<1x32x16xbf16>
    %130 = vector.shape_cast %129 : vector<1x32x16xbf16> to vector<32x16xbf16>
    %cst_80 = arith.constant dense<0.000000e+00> : vector<256x16xf32>
    %131 = tpu.matmul %128, %130, %cst_80 {dimension_numbers = #tpu.dot_dimension_numbers<[1], [0], [0], [1], [0, 0, 1, 1], [], []>} : vector<256x32xbf16>, vector<32x16xbf16>, vector<256x16xf32> -> vector<256x16xf32>
    %132 = arith.addf %127, %131 : vector<256x16xf32>
    %133 = vector.extract_strided_slice %101 {offsets = [32, 0], sizes = [256, 32], strides = [1, 1]} : vector<304x32xbf16> to vector<256x32xbf16>
    %c6_81 = arith.constant 6 : index
    %c0_82 = arith.constant 0 : index
    %c0_83 = arith.constant 0 : index
    %134 = vector.load %arg5[%c6_81, %c0_82, %c0_83] : memref<9x32x16xbf16, #tpu.memory_space<vmem>>, vector<1x32x16xbf16>
    %135 = vector.shape_cast %134 : vector<1x32x16xbf16> to vector<32x16xbf16>
    %cst_84 = arith.constant dense<0.000000e+00> : vector<256x16xf32>
    %136 = tpu.matmul %133, %135, %cst_84 {dimension_numbers = #tpu.dot_dimension_numbers<[1], [0], [0], [1], [0, 0, 1, 1], [], []>} : vector<256x32xbf16>, vector<32x16xbf16>, vector<256x16xf32> -> vector<256x16xf32>
    %137 = arith.addf %132, %136 : vector<256x16xf32>
    %138 = vector.extract_strided_slice %101 {offsets = [33, 0], sizes = [256, 32], strides = [1, 1]} : vector<304x32xbf16> to vector<256x32xbf16>
    %c7_85 = arith.constant 7 : index
    %c0_86 = arith.constant 0 : index
    %c0_87 = arith.constant 0 : index
    %139 = vector.load %arg5[%c7_85, %c0_86, %c0_87] : memref<9x32x16xbf16, #tpu.memory_space<vmem>>, vector<1x32x16xbf16>
    %140 = vector.shape_cast %139 : vector<1x32x16xbf16> to vector<32x16xbf16>
    %cst_88 = arith.constant dense<0.000000e+00> : vector<256x16xf32>
    %141 = tpu.matmul %138, %140, %cst_88 {dimension_numbers = #tpu.dot_dimension_numbers<[1], [0], [0], [1], [0, 0, 1, 1], [], []>} : vector<256x32xbf16>, vector<32x16xbf16>, vector<256x16xf32> -> vector<256x16xf32>
    %142 = arith.addf %137, %141 : vector<256x16xf32>
    %143 = vector.extract_strided_slice %101 {offsets = [34, 0], sizes = [256, 32], strides = [1, 1]} : vector<304x32xbf16> to vector<256x32xbf16>
    %c8_89 = arith.constant 8 : index
    %c0_90 = arith.constant 0 : index
    %c0_91 = arith.constant 0 : index
    %144 = vector.load %arg5[%c8_89, %c0_90, %c0_91] : memref<9x32x16xbf16, #tpu.memory_space<vmem>>, vector<1x32x16xbf16>
    %145 = vector.shape_cast %144 : vector<1x32x16xbf16> to vector<32x16xbf16>
    %cst_92 = arith.constant dense<0.000000e+00> : vector<256x16xf32>
    %146 = tpu.matmul %143, %145, %cst_92 {dimension_numbers = #tpu.dot_dimension_numbers<[1], [0], [0], [1], [0, 0, 1, 1], [], []>} : vector<256x32xbf16>, vector<32x16xbf16>, vector<256x16xf32> -> vector<256x16xf32>
    %147 = arith.addf %142, %146 : vector<256x16xf32>
    %c0_93 = arith.constant 0 : index
    %c0_94 = arith.constant 0 : index
    %148 = vector.load %arg6[%c0_93, %c0_94] : memref<1x16xf32, #tpu.memory_space<vmem>>, vector<1x16xf32>
    %149 = vector.broadcast %148 : vector<1x16xf32> to vector<256x16xf32>
    %150 = arith.addf %147, %149 : vector<256x16xf32>
    %cst_95 = arith.constant 0.000000e+00 : f32
    %151 = vector.broadcast %cst_95 : f32 to vector<256x16xf32>
    %152 = arith.maximumf %150, %151 : vector<256x16xf32>
    %153 = vector.shape_cast %152 : vector<256x16xf32> to vector<16x16x16xf32>
    %154 = vector.extract_strided_slice %153 {offsets = [0, 0, 0], sizes = [16, 8, 16], strides = [1, 1, 1]} : vector<16x16x16xf32> to vector<16x8x16xf32>
    %155 = arith.truncf %154 : vector<16x8x16xf32> to vector<16x8x16xbf16>
    %c1_96 = arith.constant 1 : index
    %c1_97 = arith.constant 1 : index
    %c0_98 = arith.constant 0 : index
    %156 = vector.load %arg11[%c1_96, %c1_97, %c0_98] : memref<19x16x16xbf16, #tpu.memory_space<vmem>>, vector<16x8x16xbf16>
    tpu.vector_store %arg11[%c1_96, %c1_97, %c0_98], %155 {strides = array<i32>} : memref<19x16x16xbf16, #tpu.memory_space<vmem>>, vector<16x8x16xbf16>,
    %c0_99 = arith.constant 0 : index
    %c0_100 = arith.constant 0 : index
    %c0_101 = arith.constant 0 : index
    %157 = vector.load %arg11[%c0_99, %c0_100, %c0_101] : memref<19x16x16xbf16, #tpu.memory_space<vmem>>, vector<19x16x16xbf16>
    %158 = vector.shape_cast %157 : vector<19x16x16xbf16> to vector<304x16xbf16>
    %cst_102 = arith.constant 0.000000e+00 : f32
    %159 = vector.broadcast %cst_102 : f32 to vector<256x16xf32>
    %160 = vector.extract_strided_slice %158 {offsets = [0, 0], sizes = [256, 16], strides = [1, 1]} : vector<304x16xbf16> to vector<256x16xbf16>
    %c0_103 = arith.constant 0 : index
    %c0_104 = arith.constant 0 : index
    %c0_105 = arith.constant 0 : index
    %161 = vector.load %arg7[%c0_103, %c0_104, %c0_105] : memref<9x16x16xbf16, #tpu.memory_space<vmem>>, vector<1x16x16xbf16>
    %162 = vector.shape_cast %161 : vector<1x16x16xbf16> to vector<16x16xbf16>
    %cst_106 = arith.constant dense<0.000000e+00> : vector<256x16xf32>
    %163 = tpu.matmul %160, %162, %cst_106 {dimension_numbers = #tpu.dot_dimension_numbers<[1], [0], [0], [1], [0, 0, 1, 1], [], []>} : vector<256x16xbf16>, vector<16x16xbf16>, vector<256x16xf32> -> vector<256x16xf32>
    %164 = arith.addf %159, %163 : vector<256x16xf32>
    %165 = vector.extract_strided_slice %158 {offsets = [1, 0], sizes = [256, 16], strides = [1, 1]} : vector<304x16xbf16> to vector<256x16xbf16>
    %c1_107 = arith.constant 1 : index
    %c0_108 = arith.constant 0 : index
    %c0_109 = arith.constant 0 : index
    %166 = vector.load %arg7[%c1_107, %c0_108, %c0_109] : memref<9x16x16xbf16, #tpu.memory_space<vmem>>, vector<1x16x16xbf16>
    %167 = vector.shape_cast %166 : vector<1x16x16xbf16> to vector<16x16xbf16>
    %cst_110 = arith.constant dense<0.000000e+00> : vector<256x16xf32>
    %168 = tpu.matmul %165, %167, %cst_110 {dimension_numbers = #tpu.dot_dimension_numbers<[1], [0], [0], [1], [0, 0, 1, 1], [], []>} : vector<256x16xbf16>, vector<16x16xbf16>, vector<256x16xf32> -> vector<256x16xf32>
    %169 = arith.addf %164, %168 : vector<256x16xf32>
    %170 = vector.extract_strided_slice %158 {offsets = [2, 0], sizes = [256, 16], strides = [1, 1]} : vector<304x16xbf16> to vector<256x16xbf16>
    %c2_111 = arith.constant 2 : index
    %c0_112 = arith.constant 0 : index
    %c0_113 = arith.constant 0 : index
    %171 = vector.load %arg7[%c2_111, %c0_112, %c0_113] : memref<9x16x16xbf16, #tpu.memory_space<vmem>>, vector<1x16x16xbf16>
    %172 = vector.shape_cast %171 : vector<1x16x16xbf16> to vector<16x16xbf16>
    %cst_114 = arith.constant dense<0.000000e+00> : vector<256x16xf32>
    %173 = tpu.matmul %170, %172, %cst_114 {dimension_numbers = #tpu.dot_dimension_numbers<[1], [0], [0], [1], [0, 0, 1, 1], [], []>} : vector<256x16xbf16>, vector<16x16xbf16>, vector<256x16xf32> -> vector<256x16xf32>
    %174 = arith.addf %169, %173 : vector<256x16xf32>
    %175 = vector.extract_strided_slice %158 {offsets = [16, 0], sizes = [256, 16], strides = [1, 1]} : vector<304x16xbf16> to vector<256x16xbf16>
    %c3_115 = arith.constant 3 : index
    %c0_116 = arith.constant 0 : index
    %c0_117 = arith.constant 0 : index
    %176 = vector.load %arg7[%c3_115, %c0_116, %c0_117] : memref<9x16x16xbf16, #tpu.memory_space<vmem>>, vector<1x16x16xbf16>
    %177 = vector.shape_cast %176 : vector<1x16x16xbf16> to vector<16x16xbf16>
    %cst_118 = arith.constant dense<0.000000e+00> : vector<256x16xf32>
    %178 = tpu.matmul %175, %177, %cst_118 {dimension_numbers = #tpu.dot_dimension_numbers<[1], [0], [0], [1], [0, 0, 1, 1], [], []>} : vector<256x16xbf16>, vector<16x16xbf16>, vector<256x16xf32> -> vector<256x16xf32>
    %179 = arith.addf %174, %178 : vector<256x16xf32>
    %180 = vector.extract_strided_slice %158 {offsets = [17, 0], sizes = [256, 16], strides = [1, 1]} : vector<304x16xbf16> to vector<256x16xbf16>
    %c4_119 = arith.constant 4 : index
    %c0_120 = arith.constant 0 : index
    %c0_121 = arith.constant 0 : index
    %181 = vector.load %arg7[%c4_119, %c0_120, %c0_121] : memref<9x16x16xbf16, #tpu.memory_space<vmem>>, vector<1x16x16xbf16>
    %182 = vector.shape_cast %181 : vector<1x16x16xbf16> to vector<16x16xbf16>
    %cst_122 = arith.constant dense<0.000000e+00> : vector<256x16xf32>
    %183 = tpu.matmul %180, %182, %cst_122 {dimension_numbers = #tpu.dot_dimension_numbers<[1], [0], [0], [1], [0, 0, 1, 1], [], []>} : vector<256x16xbf16>, vector<16x16xbf16>, vector<256x16xf32> -> vector<256x16xf32>
    %184 = arith.addf %179, %183 : vector<256x16xf32>
    %185 = vector.extract_strided_slice %158 {offsets = [18, 0], sizes = [256, 16], strides = [1, 1]} : vector<304x16xbf16> to vector<256x16xbf16>
    %c5_123 = arith.constant 5 : index
    %c0_124 = arith.constant 0 : index
    %c0_125 = arith.constant 0 : index
    %186 = vector.load %arg7[%c5_123, %c0_124, %c0_125] : memref<9x16x16xbf16, #tpu.memory_space<vmem>>, vector<1x16x16xbf16>
    %187 = vector.shape_cast %186 : vector<1x16x16xbf16> to vector<16x16xbf16>
    %cst_126 = arith.constant dense<0.000000e+00> : vector<256x16xf32>
    %188 = tpu.matmul %185, %187, %cst_126 {dimension_numbers = #tpu.dot_dimension_numbers<[1], [0], [0], [1], [0, 0, 1, 1], [], []>} : vector<256x16xbf16>, vector<16x16xbf16>, vector<256x16xf32> -> vector<256x16xf32>
    %189 = arith.addf %184, %188 : vector<256x16xf32>
    %190 = vector.extract_strided_slice %158 {offsets = [32, 0], sizes = [256, 16], strides = [1, 1]} : vector<304x16xbf16> to vector<256x16xbf16>
    %c6_127 = arith.constant 6 : index
    %c0_128 = arith.constant 0 : index
    %c0_129 = arith.constant 0 : index
    %191 = vector.load %arg7[%c6_127, %c0_128, %c0_129] : memref<9x16x16xbf16, #tpu.memory_space<vmem>>, vector<1x16x16xbf16>
    %192 = vector.shape_cast %191 : vector<1x16x16xbf16> to vector<16x16xbf16>
    %cst_130 = arith.constant dense<0.000000e+00> : vector<256x16xf32>
    %193 = tpu.matmul %190, %192, %cst_130 {dimension_numbers = #tpu.dot_dimension_numbers<[1], [0], [0], [1], [0, 0, 1, 1], [], []>} : vector<256x16xbf16>, vector<16x16xbf16>, vector<256x16xf32> -> vector<256x16xf32>
    %194 = arith.addf %189, %193 : vector<256x16xf32>
    %195 = vector.extract_strided_slice %158 {offsets = [33, 0], sizes = [256, 16], strides = [1, 1]} : vector<304x16xbf16> to vector<256x16xbf16>
    %c7_131 = arith.constant 7 : index
    %c0_132 = arith.constant 0 : index
    %c0_133 = arith.constant 0 : index
    %196 = vector.load %arg7[%c7_131, %c0_132, %c0_133] : memref<9x16x16xbf16, #tpu.memory_space<vmem>>, vector<1x16x16xbf16>
    %197 = vector.shape_cast %196 : vector<1x16x16xbf16> to vector<16x16xbf16>
    %cst_134 = arith.constant dense<0.000000e+00> : vector<256x16xf32>
    %198 = tpu.matmul %195, %197, %cst_134 {dimension_numbers = #tpu.dot_dimension_numbers<[1], [0], [0], [1], [0, 0, 1, 1], [], []>} : vector<256x16xbf16>, vector<16x16xbf16>, vector<256x16xf32> -> vector<256x16xf32>
    %199 = arith.addf %194, %198 : vector<256x16xf32>
    %200 = vector.extract_strided_slice %158 {offsets = [34, 0], sizes = [256, 16], strides = [1, 1]} : vector<304x16xbf16> to vector<256x16xbf16>
    %c8_135 = arith.constant 8 : index
    %c0_136 = arith.constant 0 : index
    %c0_137 = arith.constant 0 : index
    %201 = vector.load %arg7[%c8_135, %c0_136, %c0_137] : memref<9x16x16xbf16, #tpu.memory_space<vmem>>, vector<1x16x16xbf16>
    %202 = vector.shape_cast %201 : vector<1x16x16xbf16> to vector<16x16xbf16>
    %cst_138 = arith.constant dense<0.000000e+00> : vector<256x16xf32>
    %203 = tpu.matmul %200, %202, %cst_138 {dimension_numbers = #tpu.dot_dimension_numbers<[1], [0], [0], [1], [0, 0, 1, 1], [], []>} : vector<256x16xbf16>, vector<16x16xbf16>, vector<256x16xf32> -> vector<256x16xf32>
    %204 = arith.addf %199, %203 : vector<256x16xf32>
    %c0_139 = arith.constant 0 : index
    %c0_140 = arith.constant 0 : index
    %205 = vector.load %arg8[%c0_139, %c0_140] : memref<1x16xf32, #tpu.memory_space<vmem>>, vector<1x16xf32>
    %206 = vector.broadcast %205 : vector<1x16xf32> to vector<256x16xf32>
    %207 = arith.addf %204, %206 : vector<256x16xf32>
    %cst_141 = arith.constant 0.000000e+00 : f32
    %208 = vector.broadcast %cst_141 : f32 to vector<256x16xf32>
    %209 = arith.maximumf %207, %208 : vector<256x16xf32>
    %210 = vector.shape_cast %209 : vector<256x16xf32> to vector<16x16x16xf32>
    %211 = vector.extract_strided_slice %210 {offsets = [0, 0, 0], sizes = [16, 8, 16], strides = [1, 1, 1]} : vector<16x16x16xf32> to vector<16x8x16xf32>
    %c0_142 = arith.constant 0 : index
    %c0_143 = arith.constant 0 : index
    %c0_144 = arith.constant 0 : index
    %c0_145 = arith.constant 0 : index
    %212 = vector.load %arg9[%c0_142, %c0_143, %c0_144, %c0_145] : memref<1x16x8x16xf32, #tpu.memory_space<vmem>>, vector<1x16x8x16xf32>
    %213 = vector.shape_cast %212 : vector<1x16x8x16xf32> to vector<16x8x16xf32>
    %214 = vector.shape_cast %211 : vector<16x8x16xf32> to vector<1x16x8x16xf32>
    tpu.vector_store %arg9[%c0_142, %c0_143, %c0_144, %c0_145], %214 {strides = array<i32>} : memref<1x16x8x16xf32, #tpu.memory_space<vmem>>, vector<1x16x8x16xf32>,
    return
  }
  func.func @transform_0(%arg0: i32) -> (i32, i32, i32) {
    %c0_i32 = arith.constant 0 : i32
    %c0_i32_0 = arith.constant 0 : i32
    %c0_i32_1 = arith.constant 0 : i32
    return %arg0, %c0_i32, %c0_i32_0 : i32, i32, i32
  }
  func.func @transform_1(%arg0: i32) -> (i32, i32, i32, i32) {
    %c0_i32 = arith.constant 0 : i32
    %c0_i32_0 = arith.constant 0 : i32
    %c0_i32_1 = arith.constant 0 : i32
    %c0_i32_2 = arith.constant 0 : i32
    return %arg0, %c0_i32, %c0_i32_0, %c0_i32_1 : i32, i32, i32, i32
  }
  func.func @transform_2(%arg0: i32) -> (i32, i32, i32) {
    %c0_i32 = arith.constant 0 : i32
    %c0_i32_0 = arith.constant 0 : i32
    %c0_i32_1 = arith.constant 0 : i32
    %c0_i32_2 = arith.constant 0 : i32
    return %c0_i32, %c0_i32_0, %c0_i32_1 : i32, i32, i32
  }
  func.func @transform_3(%arg0: i32) -> (i32, i32) {
    %c0_i32 = arith.constant 0 : i32
    %c0_i32_0 = arith.constant 0 : i32
    %c0_i32_1 = arith.constant 0 : i32
    return %c0_i32, %c0_i32_0 : i32, i32
  }
  func.func @transform_4(%arg0: i32) -> (i32, i32, i32) {
    %c0_i32 = arith.constant 0 : i32
    %c0_i32_0 = arith.constant 0 : i32
    %c0_i32_1 = arith.constant 0 : i32
    %c0_i32_2 = arith.constant 0 : i32
    return %c0_i32, %c0_i32_0, %c0_i32_1 : i32, i32, i32
  }
  func.func @transform_5(%arg0: i32) -> (i32, i32) {
    %c0_i32 = arith.constant 0 : i32
    %c0_i32_0 = arith.constant 0 : i32
    %c0_i32_1 = arith.constant 0 : i32
    return %c0_i32, %c0_i32_0 : i32, i32
  }
  func.func @transform_6(%arg0: i32) -> (i32, i32, i32) {
    %c0_i32 = arith.constant 0 : i32
    %c0_i32_0 = arith.constant 0 : i32
    %c0_i32_1 = arith.constant 0 : i32
    %c0_i32_2 = arith.constant 0 : i32
    return %c0_i32, %c0_i32_0, %c0_i32_1 : i32, i32, i32
  }
  func.func @transform_7(%arg0: i32) -> (i32, i32) {
    %c0_i32 = arith.constant 0 : i32
    %c0_i32_0 = arith.constant 0 : i32
    %c0_i32_1 = arith.constant 0 : i32
    return %c0_i32, %c0_i32_0 : i32, i32
  }
  func.func @transform_8(%arg0: i32) -> (i32, i32, i32, i32) {
    %c0_i32 = arith.constant 0 : i32
    %c0_i32_0 = arith.constant 0 : i32
    %c0_i32_1 = arith.constant 0 : i32
    %c0_i32_2 = arith.constant 0 : i32
    return %arg0, %c0_i32, %c0_i32_0, %c0_i32_1 : i32, i32, i32, i32
  }
}

</mosaic_0001>

<bundles_post_ra>
// kernel: tile.28
= control target key start
LH: loop header
LB: loop body
LE: loop exit
PB: predicated region body
PF: predicated region fallthrough
CT: control target
= control target key end

     0   :  { %s22_s0 = inlined_call_operand.vmem [shape: f32[8], index: 0, kind: input, shape index: {}]   ;;  %s23_s1 = inlined_call_operand.vmem [shape: f32[2,8], index: 1, kind: output, shape index: {}]  }
   0x1   :  { %v4_v0 = vld [vmem:[%s22_s0] ss:$0 sm:$0xff] }
   0x2   :  { %5 = vst [vmem:[%s23_s1] sm:$0x3] %v4_v0 }

// kernel: tile.18
= control target key start
LH: loop header
LB: loop body
LE: loop exit
PB: predicated region body
PF: predicated region fallthrough
CT: control target
= control target key end

     0   :  { %2 = vsyncpa [#allocation1], 0  ;;  %s42_s6 = smov [#allocation0]   ;;  %s59_s0 = inlined_call_operand.hbm [shape: f32[8], index: 0, kind: input, shape index: {}]   ;;  %s60_s1 = inlined_call_operand.vmem [shape: f32[2,8], index: 1, kind: output, shape index: {}]  }
   0x1   :  { %s9_s7 = sshll.u32 %s42_s6, 4  ;;  %s10_s7 = int_to_ptr.vmem [resolvable:$true] %s9_s7 }
   0x2   :  { %s28_s8 = scalar_lea.vmem %s10_s7, 16  ;;  %s32_s9 = scalar_lea.vmem %s10_s7, 32 }
   0x3   :  { %p29_p0 = scmp.ne.s32.totalorder %s10_s7, %s28_s8  ;;  %p33_p1 = scmp.lt.s32.totalorder %s10_s7, %s10_s7 }
   0x4   :  { %p34_p2 = scmp.lt.s32.totalorder %s32_s9, %s28_s8 }
   0x6   :  { %p35_p3 = por %p34_p2, %p33_p1 }
   0x8   :  { %p36_p4 = pnand %p35_p3, %p29_p0 }
   0xa   :  { %39 = shalt.err (!%p36_p4)
}
   0xb   :  { %12 = dma.hbm_to_vmem [thread:$0]  %s59_s0, 16, %s10_s7, [#allocation1]  }
   0xc   :  { %40 = dma.done.wait [#allocation1], 16  }
   0xd   :  { %41 = vsyncadd [#allocation1], 4294967280  ;;  %v16_v0 = vld [vmem:[#allocation0] ss:$0 sm:$0xff] }
   0xe   :  { %17 = vst [vmem:[%s60_s1] sm:$0x3] %v16_v0 }
   0xf   :  { %18 = vsyncpa [#allocation1], 1 }

// kernel: tile.19
= control target key start
LH: loop header
LB: loop body
LE: loop exit
PB: predicated region body
PF: predicated region fallthrough
CT: control target
= control target key end

     0   :  { %vm8_vm0 = vcmask 64512   ;;  %vm14_vm1 = vcmask 130112   ;;  %s42_s0 = inlined_call_operand.vmem [shape: f32[2,8], index: 0, kind: input, shape index: {}]   ;;  %s43_s1 = inlined_call_operand.vmem [shape: f32[1,16], index: 1, kind: output, shape index: {}]  }
   0x1   :  { %v5_v0 = vld [vmem:[%s42_s0] sm:$0x3]  ;;  %s25_s0 = smov 8  }
   0x2   :  { %6 = vst [vmem:[#allocation1] sm:$0x3] %v5_v0 }
   0x9   :  { %v11_v1 = vld [vmem:[#allocation1 + $0x1] sm:$0x1]   ;;  %v7_v2 = vld [vmem:[#allocation1] sm:$0x1]  }
   0xa   :  { %12 = vrot.lane.b32.xlu0 %v11_v1, %s25_s0  ;;  %9 = vst.msk [vmem:[#allocation0] sm:$0x1] %vm8_vm0, %v7_v2  }
  0x7c   :  { %v13_v3 = vpop.permute.xlu0 %12  }
  0x7d   :  { %15 = vst.msk [vmem:[#allocation0] sm:$0x1] %vm14_vm1, %v13_v3  }
  0x84   :  { %v20_v4 = vld [vmem:[#allocation0] sm:$0x1] }
  0x85   :  { %23 = vst [vmem:[%s43_s1] sm:$0x1] %v20_v4 }

// kernel: decoder_block.1
= control target key start
LH: loop header
LB: loop body
LE: loop exit
PB: predicated region body
PF: predicated region fallthrough
CT: control target
= control target key end

     0   :  { %s7430_s27 = smov 0   ;;  %s9628_s0 = inlined_call_operand.vmem [shape: bf16[2,64,8], index: 0, kind: input, shape index: {}]   ;;  %s9629_s1 = inlined_call_operand.vmem [shape: bf16[2,16,8,16], index: 1, kind: input, shape index: {}]   ;;  %s9630_s2 = inlined_call_operand.vmem [shape: bf16[2,8,16], index: 2, kind: input, shape index: {}]   ;;  %s9631_s3 = inlined_call_operand.vmem [shape: f32[1,16], index: 3, kind: input, shape index: {}]   ;;  %s9632_s4 = inlined_call_operand.vmem [shape: bf16[9,32,16], index: 4, kind: input, shape index: {}]   ;;  %s9633_s5 = inlined_call_operand.vmem [shape: f32[1,16], index: 5, kind: input, shape index: {}]   ;;  %s9634_s6 = inlined_call_operand.vmem [shape: bf16[9,16,16], index: 6, kind: input, shape index: {}]   ;;  %s9635_s7 = inlined_call_operand.vmem [shape: f32[1,16], index: 7, kind: input, shape index: {}]   ;;  %s9636_s8 = inlined_call_operand.vmem [shape: f32[2,16,8,16], index: 8, kind: output, shape index: {}]  }
   0x1 LB: > { %s5812_s28 = sadd.s32 4294967295, %s7381_s27   ;;  %p5816_p0 = scmp.ge.s32.totalorder %s7381_s27, 1  ;;  %s7381_s27 = sphi %s7430_s27, %s18_s27  }
   0x2   : > { %p272_p1 = scmp.lt.s32.totalorder %s7381_s27, 3 }
   0x4   : > { %p273_p2 = pnand %p5816_p0, %p272_p1 }
   0x5   : > { %p311_p3 = scmp.lt.s32.totalorder (!%p273_p2), %s5812_s28, 1  ;;  %p5823_p4 = scmp.ne.s32.totalorder (!%p273_p2), %s5812_s28, 0 }
   0x6   : > { %276 = sbr.rel (%p273_p2) target bundleno = 1308 (0x51c), region = 52 }
   0xb   : > { %s312_s29 = scalar_select %p311_p3, %s5812_s28, 1 }
   0xc   : > { %330 = sbr.rel (%p5823_p4) target bundleno = 56 (0x38), region = 56 }
   0xd   : > { %s6280_s30 = sshll.u32 %s312_s29, 5  ;;  %s6281_s9 = sshll.u32 %s312_s29, 6 }
   0xe   : > { %s7441_s12 = scalar_lea.vmem %s9628_s0, %s6280_s30  ;;  %s7446_s15 = scalar_lea.vmem %s9629_s1, %s6281_s9 }
   0xf   : > { %s6282_s16 = sshll.u32 %s312_s29, 7 }
  0x10   : > { %s7451_s19 = scalar_lea.vmem %s9636_s8, %s6282_s16 }
  0x11   : > { %vm331_vm0 = vcmask 257024   ;;  %vm370_vm1 = vcmask 125952   ;;  %v7383_v0 = vmov 0  }
  0x12   : > { %332 = vst.msk [vmem:[#allocation2] sm:$0xf] %vm331_vm0, %v7383_v0  ;;  %333 = vst.msk [vmem:[#allocation2 + $0x4] sm:$0xf] %vm331_vm0, %v7383_v0 }
  0x13   : > { %334 = vst.msk [vmem:[#allocation2 + $0x8] sm:$0xf] %vm331_vm0, %v7383_v0  ;;  %335 = vst.msk [vmem:[#allocation2 + $0xc] sm:$0xf] %vm331_vm0, %v7383_v0 }
  0x14   : > { %336 = vst.msk [vmem:[#allocation2 + $0x10] sm:$0xf] %vm331_vm0, %v7383_v0  ;;  %337 = vst.msk [vmem:[#allocation2 + $0x14] sm:$0xf] %vm331_vm0, %v7383_v0 }
  0x15   : > { %338 = vst.msk [vmem:[#allocation2 + $0x18] sm:$0xf] %vm331_vm0, %v7383_v0  ;;  %339 = vst.msk [vmem:[#allocation2 + $0x1c] sm:$0xf] %vm331_vm0, %v7383_v0 }
  0x16   : > { %340 = vst.msk [vmem:[#allocation2 + $0x20] sm:$0xf] %vm331_vm0, %v7383_v0  ;;  %341 = vst.msk [vmem:[#allocation2 + $0x24] sm:$0xf] %vm331_vm0, %v7383_v0 }
  0x17   : > { %342 = vst.msk [vmem:[#allocation2 + $0x28] sm:$0xf] %vm331_vm0, %v7383_v0  ;;  %343 = vst.msk [vmem:[#allocation2 + $0x2c] sm:$0xf] %vm331_vm0, %v7383_v0 }
  0x18   : > { %344 = vst.msk [vmem:[#allocation2 + $0x30] sm:$0xf] %vm331_vm0, %v7383_v0  ;;  %345 = vst.msk [vmem:[#allocation2 + $0x34] sm:$0xf] %vm331_vm0, %v7383_v0 }
  0x19   : > { %346 = vst.msk [vmem:[#allocation2 + $0x38] sm:$0xf] %vm331_vm0, %v7383_v0  ;;  %347 = vst.msk [vmem:[#allocation2 + $0x3c] sm:$0xf] %vm331_vm0, %v7383_v0 }
  0x1a   : > { %348 = vst.msk [vmem:[#allocation2 + $0x40] sm:$0xf] %vm331_vm0, %v7383_v0  ;;  %349 = vst.msk [vmem:[#allocation2 + $0x44] sm:$0xf] %vm331_vm0, %v7383_v0 }
  0x1b   : > { %350 = vst.msk [vmem:[#allocation2 + $0x48] sm:$0xf] %vm331_vm0, %v7383_v0  ;;  %351 = vst.msk [vmem:[#allocation2 + $0x4c] sm:$0xf] %vm331_vm0, %v7383_v0 }
  0x1c   : > { %352 = vst.msk [vmem:[#allocation2 + $0x50] sm:$0xf] %vm331_vm0, %v7383_v0  ;;  %353 = vst.msk [vmem:[#allocation2 + $0x54] sm:$0xf] %vm331_vm0, %v7383_v0 }
  0x1d   : > { %354 = vst.msk [vmem:[#allocation2 + $0x58] sm:$0xf] %vm331_vm0, %v7383_v0  ;;  %355 = vst.msk [vmem:[#allocation2 + $0x5c] sm:$0xf] %vm331_vm0, %v7383_v0 }
  0x1e   : > { %356 = vst.msk [vmem:[#allocation2 + $0x60] sm:$0xf] %vm331_vm0, %v7383_v0  ;;  %357 = vst.msk [vmem:[#allocation2 + $0x64] sm:$0xf] %vm331_vm0, %v7383_v0 }
  0x1f   : > { %358 = vst.msk [vmem:[#allocation2 + $0x68] sm:$0xf] %vm331_vm0, %v7383_v0  ;;  %359 = vst.msk [vmem:[#allocation2 + $0x6c] sm:$0xf] %vm331_vm0, %v7383_v0 }
  0x20   : > { %360 = vst.msk [vmem:[#allocation2 + $0x70] sm:$0xf] %vm331_vm0, %v7383_v0  ;;  %361 = vst.msk [vmem:[#allocation2 + $0x74] sm:$0xf] %vm331_vm0, %v7383_v0 }
  0x21   : > { %362 = vst.msk [vmem:[#allocation2 + $0x78] sm:$0xf] %vm331_vm0, %v7383_v0  ;;  %363 = vst.msk [vmem:[#allocation2 + $0x7c] sm:$0xf] %vm331_vm0, %v7383_v0 }
  0x22   : > { %364 = vst.msk [vmem:[#allocation2 + $0x80] sm:$0xf] %vm331_vm0, %v7383_v0  ;;  %365 = vst.msk [vmem:[#allocation2 + $0x84] sm:$0xf] %vm331_vm0, %v7383_v0 }
  0x23   : > { %366 = vst.msk [vmem:[#allocation2 + $0x88] sm:$0xf] %vm331_vm0, %v7383_v0  ;;  %367 = vst.msk [vmem:[#allocation2 + $0x8c] sm:$0xf] %vm331_vm0, %v7383_v0 }
  0x24   : > { %368 = vst.msk [vmem:[#allocation2 + $0x90] sm:$0xf] %vm331_vm0, %v7383_v0 }
  0x25   : > { %371 = vst.msk [vmem:[#allocation3] sm:$0xf] %vm370_vm1, %v7383_v0  ;;  %372 = vst.msk [vmem:[#allocation3 + $0x4] sm:$0xf] %vm370_vm1, %v7383_v0 }
  0x26   : > { %373 = vst.msk [vmem:[#allocation3 + $0x8] sm:$0xf] %vm370_vm1, %v7383_v0  ;;  %374 = vst.msk [vmem:[#allocation3 + $0xc] sm:$0xf] %vm370_vm1, %v7383_v0 }
  0x27   : > { %375 = vst.msk [vmem:[#allocation3 + $0x10] sm:$0xf] %vm370_vm1, %v7383_v0  ;;  %376 = vst.msk [vmem:[#allocation3 + $0x14] sm:$0xf] %vm370_vm1, %v7383_v0 }
  0x28   : > { %377 = vst.msk [vmem:[#allocation3 + $0x18] sm:$0xf] %vm370_vm1, %v7383_v0  ;;  %378 = vst.msk [vmem:[#allocation3 + $0x1c] sm:$0xf] %vm370_vm1, %v7383_v0 }
  0x29   : > { %379 = vst.msk [vmem:[#allocation3 + $0x20] sm:$0xf] %vm370_vm1, %v7383_v0  ;;  %380 = vst.msk [vmem:[#allocation3 + $0x24] sm:$0xf] %vm370_vm1, %v7383_v0 }
  0x2a   : > { %381 = vst.msk [vmem:[#allocation3 + $0x28] sm:$0xf] %vm370_vm1, %v7383_v0  ;;  %382 = vst.msk [vmem:[#allocation3 + $0x2c] sm:$0xf] %vm370_vm1, %v7383_v0 }
  0x2b   : > { %383 = vst.msk [vmem:[#allocation3 + $0x30] sm:$0xf] %vm370_vm1, %v7383_v0  ;;  %384 = vst.msk [vmem:[#allocation3 + $0x34] sm:$0xf] %vm370_vm1, %v7383_v0 }
  0x2c   : > { %385 = vst.msk [vmem:[#allocation3 + $0x38] sm:$0xf] %vm370_vm1, %v7383_v0  ;;  %386 = vst.msk [vmem:[#allocation3 + $0x3c] sm:$0xf] %vm370_vm1, %v7383_v0 }
  0x2d   : > { %387 = vst.msk [vmem:[#allocation3 + $0x40] sm:$0xf] %vm370_vm1, %v7383_v0  ;;  %388 = vst.msk [vmem:[#allocation3 + $0x44] sm:$0xf] %vm370_vm1, %v7383_v0 }
  0x2e   : > { %389 = vst.msk [vmem:[#allocation3 + $0x48] sm:$0xf] %vm370_vm1, %v7383_v0  ;;  %390 = vst.msk [vmem:[#allocation3 + $0x4c] sm:$0xf] %vm370_vm1, %v7383_v0 }
  0x2f   : > { %391 = vst.msk [vmem:[#allocation3 + $0x50] sm:$0xf] %vm370_vm1, %v7383_v0  ;;  %392 = vst.msk [vmem:[#allocation3 + $0x54] sm:$0xf] %vm370_vm1, %v7383_v0 }
  0x30   : > { %393 = vst.msk [vmem:[#allocation3 + $0x58] sm:$0xf] %vm370_vm1, %v7383_v0  ;;  %394 = vst.msk [vmem:[#allocation3 + $0x5c] sm:$0xf] %vm370_vm1, %v7383_v0 }
  0x31   : > { %395 = vst.msk [vmem:[#allocation3 + $0x60] sm:$0xf] %vm370_vm1, %v7383_v0  ;;  %396 = vst.msk [vmem:[#allocation3 + $0x64] sm:$0xf] %vm370_vm1, %v7383_v0 }
  0x32   : > { %397 = vst.msk [vmem:[#allocation3 + $0x68] sm:$0xf] %vm370_vm1, %v7383_v0  ;;  %398 = vst.msk [vmem:[#allocation3 + $0x6c] sm:$0xf] %vm370_vm1, %v7383_v0 }
  0x33   : > { %399 = vst.msk [vmem:[#allocation3 + $0x70] sm:$0xf] %vm370_vm1, %v7383_v0  ;;  %400 = vst.msk [vmem:[#allocation3 + $0x74] sm:$0xf] %vm370_vm1, %v7383_v0 }
  0x34   : > { %401 = vst.msk [vmem:[#allocation3 + $0x78] sm:$0xf] %vm370_vm1, %v7383_v0  ;;  %402 = vst.msk [vmem:[#allocation3 + $0x7c] sm:$0xf] %vm370_vm1, %v7383_v0 }
  0x35   : > { %403 = vst.msk [vmem:[#allocation3 + $0x80] sm:$0xf] %vm370_vm1, %v7383_v0  ;;  %404 = vst.msk [vmem:[#allocation3 + $0x84] sm:$0xf] %vm370_vm1, %v7383_v0 }
  0x36   : > { %405 = vst.msk [vmem:[#allocation3 + $0x88] sm:$0xf] %vm370_vm1, %v7383_v0  ;;  %406 = vst.msk [vmem:[#allocation3 + $0x8c] sm:$0xf] %vm370_vm1, %v7383_v0 }
  0x37   : > { %407 = vst.msk [vmem:[#allocation3 + $0x90] sm:$0xf] %vm370_vm1, %v7383_v0 }
  0x38 PF: > { %v417_v1 = vld [vmem:[%s9630_s2] sm:$0xf]  ;;  %vm458_vm2 = vcmask 1043456   ;;  %v5841_v2 = vld [vmem:[%s9630_s2 + $0x4] sm:$0xf]  ;;  %vm445_vm3 = vcmask 64512  }
  0x39   : > { %v7302_v3 = vld [vmem:[%s7441_s12] sm:$0xff]   ;;  %7290 = vmatprep.subr.msk.bf16.mxu0 %vm458_vm2, %v417_v1  ;;  %7291 = vmatprep.subr.msk.bf16.mxu1 %vm458_vm2, %v5841_v2  ;;  %v460_v4 = vsel %vm458_vm2, %v417_v1, 0  ;;  %v711_v5 = vsel %vm458_vm2, %v5841_v2, 0  ;;  %v7303_v6 = vld [vmem:[%s7441_s12 + $0x8] sm:$0xff]   ;;  %v7304_v7 = vld [vmem:[%s7441_s12 + $0x10] sm:$0xff]   ;;  %s7384_s24 = smov 16  }
  0x3a   : > { %6641 = vmatpush3.bf16.msra.mxu0 %v460_v4  ;;  %6651 = vmatpush3.bf16.msra.mxu1 %v711_v5  ;;  %v947_v8 = vld [vmem:[%s7446_s15 + $0x4] sm:$0xf]  ;;  %v946_v9 = vld [vmem:[%s7446_s15] sm:$0xf]  ;;  %v948_v10 = vld [vmem:[%s7446_s15 + $0x8] sm:$0xf] }
  0x3b   : > { %6642 = vmatprep.mubr.msk.bf16.mxu0 %vm445_vm3, %v7302_v3  ;;  %6652 = vmatprep.mubr.msk.bf16.mxu1 %vm445_vm3, %v7302_v3  ;;  %v971_v11 = vshrl.u32 %v947_v8, 16  ;;  %v974_v12 = vshll.u32 %v947_v8, 16  ;;  %v963_v13 = vshrl.u32 %v946_v9, 16  ;;  %v966_v14 = vshll.u32 %v946_v9, 16  ;;  %v7305_v18 = vld [vmem:[%s7441_s12 + $0x18] sm:$0xff]  }
  0x3c   : > { %v979_v17 = vshrl.u32 %v948_v10, 16  ;;  %v949_v19 = vld [vmem:[%s7446_s15 + $0xc] sm:$0xf]  ;;  %v982_v22 = vshll.u32 %v948_v10, 16  ;;  %v950_v23 = vld [vmem:[%s7446_s15 + $0x10] sm:$0xf] }
  0x3d   : > { %6643 = vmatmul.mubr.msk.bf16.vlgmr.msra.gmra.mxu0 %vm445_vm3, %v7303_v6  ;;  %6653 = vmatmul.mubr.msk.bf16.vlgmr.msra.gmra.mxu1 %vm445_vm3, %v7303_v6  ;;  %v973_v15 = vrot.slane %v971_v11, 7  ;;  %v965_v16 = vrot.slane %v963_v13, 7  ;;  %v987_v27 = vshrl.u32 %v949_v19, 16  ;;  %v951_v28 = vld [vmem:[%s7446_s15 + $0x14] sm:$0xf]  ;;  %v995_v31 = vshrl.u32 %v950_v23, 16 }
  0x3e   : > { %6646 = vmatprep.mubr.msk.bf16.mxu0 %vm445_vm3, %v7304_v7  ;;  %6656 = vmatprep.mubr.msk.bf16.mxu1 %vm445_vm3, %v7304_v7  ;;  %v981_v26 = vrot.slane %v979_v17, 7  ;;  %v952_v29 = vld [vmem:[%s7446_s15 + $0x18] sm:$0xf]  ;;  %v953_v30 = vld [vmem:[%s7446_s15 + $0x1c] sm:$0xf]  ;;  %v1003_v32 = vshrl.u32 %v951_v28, 16 }
  0x3f   : > { %v976_v20 = vor.u32 %v974_v12, %v973_v15  ;;  %v968_v21 = vor.u32 %v966_v14, %v965_v16  ;;  %v977_v24 = vrot.slane %v973_v15, 4  ;;  %v969_v25 = vrot.slane %v965_v16, 4  ;;  %v954_v33 = vld [vmem:[%s7446_s15 + $0x20] sm:$0xf]  ;;  %v955_v43 = vld [vmem:[%s7446_s15 + $0x24] sm:$0xf] }
  0x40   : > { %v985_v34 = vrot.slane %v981_v26, 4  ;;  %v984_v35 = vor.u32 %v982_v22, %v981_v26  ;;  %v989_v36 = vrot.slane %v987_v27, 7  ;;  %v990_v37 = vshll.u32 %v949_v19, 16  ;;  %v956_v49 = vld [vmem:[%s7446_s15 + $0x28] sm:$0xf] }
  0x41   : > { %1094 = vrot.lane.b32.xlu1 %v976_v20, %s7384_s24  ;;  %1090 = vrot.lane.b32.xlu0 %v968_v21, %s7384_s24  ;;  %v1011_v38 = vshrl.u32 %v952_v29, 16  ;;  %v1019_v39 = vshrl.u32 %v953_v30, 16  ;;  %v1027_v40 = vshrl.u32 %v954_v33, 16  ;;  %v997_v41 = vrot.slane %v995_v31, 7  ;;  %v957_v4 = vld [vmem:[%s7446_s15 + $0x2c] sm:$0xf] }
  0x42   : > { %v1005_v42 = vrot.slane %v1003_v32, 7  ;;  %v993_v44 = vrot.slane %v989_v36, 4  ;;  %v992_v45 = vor.u32 %v990_v37, %v989_v36  ;;  %v998_v46 = vshll.u32 %v950_v23, 16  ;;  %v958_v11 = vld [vmem:[%s7446_s15 + $0x30] sm:$0xf] }
  0x43   : > { %v1013_v47 = vrot.slane %v1011_v38, 7  ;;  %v1021_v48 = vrot.slane %v1019_v39, 7  ;;  %v1006_v50 = vshll.u32 %v951_v28, 16  ;;  %v1014_v51 = vshll.u32 %v952_v29, 16  ;;  %v959_v17 = vld [vmem:[%s7446_s15 + $0x34] sm:$0xf] }
  0x44   : > { %v1029_v52 = vrot.slane %v1027_v40, 7  ;;  %v1035_v53 = vshrl.u32 %v955_v43, 16  ;;  %v1001_v54 = vrot.slane %v997_v41, 4  ;;  %v1009_v55 = vrot.slane %v1005_v42, 4  ;;  %v960_v23 = vld [vmem:[%s7446_s15 + $0x38] sm:$0xf] }
  0x45   : > { %6647 = vmatmul.mubr.msk.bf16.gmra.mxu0 %vm445_vm3, %v7305_v18  ;;  %6657 = vmatmul.mubr.msk.bf16.gmra.mxu1 %vm445_vm3, %v7305_v18  ;;  %v1022_v56 = vshll.u32 %v953_v30, 16  ;;  %v1030_v57 = vshll.u32 %v954_v33, 16  ;;  %v1000_v58 = vor.u32 %v998_v46, %v997_v41  ;;  %v1038_v59 = vshll.u32 %v955_v43, 16  ;;  %v961_v29 = vld [vmem:[%s7446_s15 + $0x3c] sm:$0xf]  ;;  %v7307_v41 = vld [vmem:[%s9632_s4 + $0x8] sm:$0xff]  }
  0x46   : > { %1096 = vrot.lane.b32.xlu1 %v977_v24, %s7384_s24  ;;  %1092 = vrot.lane.b32.xlu0 %v969_v25, %s7384_s24  ;;  %v1043_v60 = vshrl.u32 %v956_v49, 16  ;;  %v1017_v61 = vrot.slane %v1013_v47, 4  ;;  %v1025_v62 = vrot.slane %v1021_v48, 4  ;;  %v1033_v63 = vrot.slane %v1029_v52, 4  ;;  %v7673_v43 = vld [vmem:[#allocation2] sm:$0xff]   ;;  %v7686_v46 = vld [vmem:[%s9632_s4 + $0x28] sm:$0xff]  }
  0x47   : > { %v1037_v0 = vrot.slane %v1035_v53, 7  ;;  %v1008_v1 = vor.u32 %v1006_v50, %v1005_v42  ;;  %v1016_v2 = vor.u32 %v1014_v51, %v1013_v47  ;;  %v1024_v3 = vor.u32 %v1022_v56, %v1021_v48  ;;  %6696 = vmatprep.subr.bf16.mxu1 %v7307_v41  ;;  %v7308_v42 = vld [vmem:[%s9632_s4] sm:$0xff]   ;;  %v7700_v51 = vld [vmem:[%s9632_s4 + $0x38] sm:$0xff]  }
  0x48   : > { %v1032_v5 = vor.u32 %v1030_v57, %v1029_v52  ;;  %v1051_v6 = vshrl.u32 %v957_v4, 16  ;;  %v1045_v9 = vrot.slane %v1043_v60, 7  ;;  %v1046_v10 = vshll.u32 %v956_v49, 16  ;;  %6697 = vmatpush3.bf16.msra.mxu1 %v7307_v41 }
  0x49   : > { %v1041_v7 = vrot.slane %v1037_v0, 4  ;;  %v1040_v8 = vor.u32 %v1038_v59, %v1037_v0  ;;  %v1054_v15 = vshll.u32 %v957_v4, 16  ;;  %v1059_v16 = vshrl.u32 %v958_v11, 16  ;;  %6698 = vmatprep.subr.bf16.mxu1 %v7308_v42 }
  0x4a   : > { %1100 = vrot.lane.b32.xlu1 %v985_v34, %s7384_s24  ;;  %1098 = vrot.lane.b32.xlu0 %v984_v35, %s7384_s24  ;;  %v1053_v12 = vrot.slane %v1051_v6, 7  ;;  %v1049_v13 = vrot.slane %v1045_v9, 4  ;;  %v1048_v14 = vor.u32 %v1046_v10, %v1045_v9  ;;  %v1062_v18 = vshll.u32 %v958_v11, 16 }
  0x4b   : > { %v1061_v21 = vrot.slane %v1059_v16, 7  ;;  %v1067_v22 = vshrl.u32 %v959_v17, 16  ;;  %v1070_v24 = vshll.u32 %v959_v17, 16  ;;  %v1075_v28 = vshrl.u32 %v960_v23, 16 }
  0x4c   : > { %v1057_v19 = vrot.slane %v1053_v12, 4  ;;  %v1056_v20 = vor.u32 %v1054_v15, %v1053_v12  ;;  %v1078_v30 = vshll.u32 %v960_v23, 16  ;;  %v1083_v34 = vshrl.u32 %v961_v29, 16  ;;  %6699 = vmatpush3.bf16.msra.mxu1 %v7308_v42 }
  0x4d   : > { %v1065_v25 = vrot.slane %v1061_v21, 4  ;;  %v1064_v26 = vor.u32 %v1062_v18, %v1061_v21  ;;  %v1069_v27 = vrot.slane %v1067_v22, 7  ;;  %v1077_v33 = vrot.slane %v1075_v28, 7  ;;  %6768 = vmatprep.subr.bf16.mxu1 %v7700_v51  ;;  %v590_v28 = vld [vmem:[#allocation2 + $0x28] sm:$0xf] }
  0x4e   : > { %1104 = vrot.lane.b32.xlu1 %v993_v44, %s7384_s24  ;;  %1102 = vrot.lane.b32.xlu0 %v992_v45, %s7384_s24  ;;  %v1085_v37 = vrot.slane %v1083_v34, 7  ;;  %v1086_v38 = vshll.u32 %v961_v29, 16  ;;  %v7306_v44 = vld [vmem:[%s9632_s4 + $0x18] sm:$0xff]   ;;  %vm1560_vm4 = vcmask 261120   ;;  %v7309_v45 = vld [vmem:[%s9632_s4 + $0x10] sm:$0xff]   ;;  %vm542_vm5 = vcmask 125952  }
  0x4f   : > { %v1073_v31 = vrot.slane %v1069_v27, 4  ;;  %v1072_v32 = vor.u32 %v1070_v24, %v1069_v27  ;;  %v1081_v35 = vrot.slane %v1077_v33, 4  ;;  %v1080_v36 = vor.u32 %v1078_v30, %v1077_v33  ;;  %6660 = vmatprep.subr.bf16.mxu0 %v7306_v44  ;;  %6700 = vmatprep.mubr.msk.bf16.mxu1 %vm1560_vm4, %v7673_v43  ;;  %v835_v30 = vld [vmem:[#allocation2 + $0x30] sm:$0xf] }
  0x50   : > { %v1089_v39 = vrot.slane %v1085_v37, 4  ;;  %v1088_v40 = vor.u32 %v1086_v38, %v1085_v37  ;;  %6661 = vmatpush3.bf16.msra.mxu0 %v7306_v44  ;;  %vm543_vm6 = vsmask.f32 7938  ;;  %vm548_vm7 = vcmask 122880  }
  0x51   : > { %6662 = vmatprep.subr.bf16.mxu0 %v7309_v45  ;;  %vm549_vm8 = vsmask.f32 256  ;;  %vm1186_vm9 = vcmask 257152   ;;  %vm1191_vm10 = vcmask 254080   ;;  %vm7744_vm11 = vmand %vm542_vm5, %vm543_vm6  ;;  %vm1415_vm15 = vsmask.f32 7424 }
  0x52   : > { %1108 = vrot.lane.b32.xlu1 %v1001_v54, %s7384_s24  ;;  %1106 = vrot.lane.b32.xlu0 %v1000_v58, %s7384_s24  ;;  %vm7754_vm12 = vmand %vm548_vm7, %vm549_vm8  ;;  %vm1948_vm0 = vcmask 1046528   ;;  %vm3968_vm1 = vcmask 130048  }
  0x53   : > { %vm7780_vm13 = vmand %vm1186_vm9, %vm543_vm6 }
  0x54   : > { %6663 = vmatpush3.bf16.msra.mxu0 %v7309_v45  ;;  %vm7792_vm14 = vmand %vm1191_vm10, %vm549_vm8 }
  0x55   : > { %6732 = vmatprep.subr.bf16.mxu0 %v7686_v46 }
  0x56   : > { %1112 = vrot.lane.b32.xlu1 %v1009_v55, %s7384_s24  ;;  %1110 = vrot.lane.b32.xlu0 %v1008_v1, %s7384_s24  ;;  %v1419_v1 = vshll.u32 %v7673_v43, 16 }
  0x5a   : > { %1116 = vrot.lane.b32.xlu1 %v1017_v61, %s7384_s24  ;;  %1114 = vrot.lane.b32.xlu0 %v1016_v2, %s7384_s24  ;;  %v7724_v61 = vld [vmem:[%s9631_s3] ss:$0 sm:$0xff] }
  0x5e   : > { %1120 = vrot.lane.b32.xlu1 %v1025_v62, %s7384_s24  ;;  %1118 = vrot.lane.b32.xlu0 %v1024_v3, %s7384_s24 }
  0x62   : > { %1124 = vrot.lane.b32.xlu1 %v1033_v63, %s7384_s24  ;;  %1122 = vrot.lane.b32.xlu0 %v1032_v5, %s7384_s24 }
  0x66   : > { %1128 = vrot.lane.b32.xlu1 %v1041_v7, %s7384_s24  ;;  %1126 = vrot.lane.b32.xlu0 %v1040_v8, %s7384_s24 }
  0x6a   : > { %1132 = vrot.lane.b32.xlu1 %v1049_v13, %s7384_s24  ;;  %1130 = vrot.lane.b32.xlu0 %v1048_v14, %s7384_s24  ;;  %v1417_v13 = vshrl.u32 %v7673_v43, 16  ;;  %v7736_v14 = vrot.slane %v1419_v1, 1 }
  0x6e   : > { %1136 = vrot.lane.b32.xlu1 %v1057_v19, %s7384_s24  ;;  %1134 = vrot.lane.b32.xlu0 %v1056_v20, %s7384_s24 }
  0x72   : > { %1140 = vrot.lane.b32.xlu1 %v1065_v25, %s7384_s24  ;;  %1138 = vrot.lane.b32.xlu0 %v1064_v26, %s7384_s24 }
  0x76   : > { %1144 = vrot.lane.b32.xlu1 %v1073_v31, %s7384_s24  ;;  %1142 = vrot.lane.b32.xlu0 %v1072_v32, %s7384_s24 }
  0x7a   : > { %1148 = vrot.lane.b32.xlu1 %v1081_v35, %s7384_s24  ;;  %1146 = vrot.lane.b32.xlu0 %v1080_v36, %s7384_s24 }
  0x7e   : > { %1152 = vrot.lane.b32.xlu1 %v1089_v39, %s7384_s24  ;;  %1150 = vrot.lane.b32.xlu0 %v1088_v40, %s7384_s24  ;;  %v593_v39 = vld [vmem:[#allocation2 + $0x2c] sm:$0x1] }
  0xb3   : > { %v7689_v47 = vpop.permute.xlu0 %1090  ;;  %v7693_v49 = vpop.permute.xlu1 %1094 }
  0xb8   : > { %v7691_v48 = vpop.permute.xlu0 %1092  ;;  %v7702_v52 = vpop.permute.xlu1 %1096 }
  0xbc   : > { %v7695_v50 = vpop.permute.xlu0 %1098  ;;  %v7707_v54 = vpop.permute.xlu1 %1100 }
  0xc0   : > { %v7705_v53 = vpop.permute.xlu0 %1102  ;;  %v7711_v56 = vpop.permute.xlu1 %1104 }
  0xc4   : > { %v7709_v55 = vpop.permute.xlu0 %1106  ;;  %v7715_v58 = vpop.permute.xlu1 %1108 }
  0xc8   : > { %v7713_v57 = vpop.permute.xlu0 %1110  ;;  %v7719_v60 = vpop.permute.xlu1 %1112 }
  0xcc   : > { %v7717_v59 = vpop.permute.xlu0 %1114  ;;  %v7731_v4 = vpop.permute.xlu1 %1116 }
  0xd0   : > { %v7726_v62 = vpop.permute.xlu0 %1118  ;;  %v7750_v33 = vpop.permute.xlu1 %1120 }
  0xd4   : > { %v7738_v19 = vpop.permute.xlu0 %1122 }
  0xfd   : > { %v6644_v63 = vpop.f32.mrf.mxu0  ;;  %v6654_v0 = vpop.f32.mrf.mxu1 }
  0xfe   : > { %v505_v2 = vadd.f32 %v6644_v63, %v7724_v61  ;;  %v756_v3 = vadd.f32 %v6654_v0, %v7724_v61  ;;  %v545_v0 = vld [vmem:[#allocation2 + $0x8] sm:$0xf] }
  0xff   : > { %v496_v5 = vpop.f32.mrf.mxu0  ;;  %v747_v6 = vpop.f32.mrf.mxu1 }
 0x100   : > { %v6285_v7 = vpack.c.bf16 %v505_v2, %v505_v2  ;;  %v6293_v8 = vpack.c.bf16 %v756_v3, %v756_v3  ;;  %v497_v9 = vadd.f32 %v7724_v61, %v496_v5  ;;  %v748_v10 = vadd.f32 %v7724_v61, %v747_v6 }
 0x101   : > { %v6645_v11 = vpop.f32.mrf.mxu0  ;;  %v6655_v12 = vpop.f32.mrf.mxu1 }
 0x102   : > { %v580_v15 = vshrl.u32 %v6285_v7, 16  ;;  %v583_v16 = vshll.u32 %v6285_v7, 16  ;;  %v825_v17 = vshrl.u32 %v6293_v8, 16  ;;  %v828_v18 = vshll.u32 %v6293_v8, 16  ;;  %v551_v7 = vld [vmem:[#allocation2 + $0xc] sm:$0x1] }
 0x103   : > { %v6283_v20 = vpack.c.bf16 %v497_v9, %v497_v9  ;;  %v6291_v21 = vpack.c.bf16 %v748_v10, %v748_v10  ;;  %v508_v22 = vadd.f32 %v6645_v11, %v7724_v61  ;;  %v759_v23 = vadd.f32 %v6655_v12, %v7724_v61  ;;  %v499_v24 = vpop.f32.mrf.mxu0  ;;  %v750_v25 = vpop.f32.mrf.mxu1  ;;  %v793_v8 = vld [vmem:[#allocation2 + $0x10] sm:$0xf]  ;;  %v796_v9 = vld [vmem:[#allocation2 + $0x14] sm:$0x1] }
 0x104   : > { %v582_v27 = vrot.slane %v580_v15, 7  ;;  %v827_v29 = vrot.slane %v825_v17, 7  ;;  %v500_v31 = vadd.f32 %v7724_v61, %v499_v24  ;;  %v751_v32 = vadd.f32 %v7724_v61, %v750_v25  ;;  %v7766_v12 = vpop.permute.xlu0 %1126  ;;  %v838_v24 = vld [vmem:[#allocation2 + $0x34] sm:$0x1] }
 0x105   : > { %v532_v34 = vshrl.u32 %v6283_v20, 16  ;;  %v535_v35 = vshll.u32 %v6283_v20, 16  ;;  %v783_v37 = vshrl.u32 %v6291_v21, 16  ;;  %v786_v38 = vshll.u32 %v6291_v21, 16  ;;  %v6648_v45 = vpop.f32.mrf.mxu0 }
 0x106   : > { %v585_v40 = vor.u32 %v583_v16, %v582_v27  ;;  %v586_v41 = vrot.slane %v582_v27, 4  ;;  %v830_v42 = vor.u32 %v828_v18, %v827_v29  ;;  %v831_v44 = vrot.slane %v827_v29, 4  ;;  %v7768_v27 = vpop.permute.xlu1 %1124 }
 0x107   : > { %v534_v63 = vrot.slane %v532_v34, 7  ;;  %v785_v1 = vrot.slane %v783_v37, 7  ;;  %v6286_v2 = vpack.c.bf16 %v508_v22, %v508_v22  ;;  %v6294_v3 = vpack.c.bf16 %v759_v23, %v759_v23  ;;  %v512_v25 = vpop.f32.mrf.mxu0 }
 0x108   : > { %v591_v5 = vsel %vm7744_vm11, %v585_v40, %v590_v28  ;;  %v836_v6 = vsel %vm7744_vm11, %v830_v42, %v835_v30  ;;  %v594_v10 = vsel %vm7754_vm12, %v586_v41, %v593_v39  ;;  %v7764_v11 = vpack.c.bf16 %v500_v31, %v500_v31  ;;  %v611_v40 = vld [vmem:[#allocation2 + $0x38] sm:$0xf]  ;;  %v856_v41 = vld [vmem:[#allocation2 + $0x40] sm:$0xf] }
 0x109   : > { %592 = vst [vmem:[#allocation2 + $0x28] sm:$0xf] %v591_v5  ;;  %837 = vst [vmem:[#allocation2 + $0x30] sm:$0xf] %v836_v6  ;;  %v537_v15 = vor.u32 %v535_v35, %v534_v63  ;;  %v538_v16 = vrot.slane %v534_v63, 4  ;;  %v788_v17 = vor.u32 %v786_v38, %v785_v1  ;;  %v789_v18 = vrot.slane %v785_v1, 4 }
 0x10a   : > { %595 = vst [vmem:[#allocation2 + $0x2c] sm:$0x1] %v594_v10  ;;  %v601_v20 = vshrl.u32 %v6286_v2, 16  ;;  %v604_v21 = vshll.u32 %v6286_v2, 16  ;;  %v846_v22 = vshrl.u32 %v6294_v3, 16  ;;  %v849_v23 = vshll.u32 %v6294_v3, 16 }
 0x10b   : > { %v546_v28 = vsel %vm7744_vm11, %v537_v15, %v545_v0  ;;  %v552_v29 = vsel %vm7754_vm12, %v538_v16, %v551_v7  ;;  %v794_v30 = vsel %vm7744_vm11, %v788_v17, %v793_v8  ;;  %v797_v31 = vsel %vm7754_vm12, %v789_v18, %v796_v9  ;;  %v614_v2 = vld [vmem:[#allocation2 + $0x3c] sm:$0x1]  ;;  %v569_v9 = vld [vmem:[#allocation2 + $0x18] sm:$0xf]  ;;  %v859_v16 = vld [vmem:[#allocation2 + $0x44] sm:$0x1]  ;;  %v6658_v17 = vpop.f32.mrf.mxu1 }
 0x10c   : > { %547 = vst [vmem:[#allocation2 + $0x8] sm:$0xf] %v546_v28  ;;  %553 = vst [vmem:[#allocation2 + $0xc] sm:$0x1] %v552_v29  ;;  %v603_v35 = vrot.slane %v601_v20, 7  ;;  %v848_v37 = vrot.slane %v846_v22, 7  ;;  %v6292_v42 = vpack.c.bf16 %v751_v32, %v751_v32  ;;  %v521_v63 = vadd.f32 %v6648_v45, %v7724_v61  ;;  %v7796_v45 = vpop.permute.xlu0 %1130  ;;  %v7808_v28 = vpop.permute.xlu1 %1128 }
 0x10d   : > { %795 = vst [vmem:[#allocation2 + $0x10] sm:$0xf] %v794_v30  ;;  %798 = vst [vmem:[#allocation2 + $0x14] sm:$0x1] %v797_v31  ;;  %v559_v38 = vshrl.u32 %v7764_v11, 16  ;;  %v562_v39 = vshll.u32 %v7764_v11, 16  ;;  %v839_v0 = vsel %vm7754_vm12, %v831_v44, %v838_v24  ;;  %v513_v1 = vadd.f32 %v7724_v61, %v512_v25 }
 0x10e   : > { %v606_v5 = vor.u32 %v604_v21, %v603_v35  ;;  %v607_v6 = vrot.slane %v603_v35, 4  ;;  %v851_v7 = vor.u32 %v849_v23, %v848_v37  ;;  %v852_v8 = vrot.slane %v848_v37, 4  ;;  %v572_v32 = vld [vmem:[#allocation2 + $0x1c] sm:$0x1]  ;;  %840 = vst [vmem:[#allocation2 + $0x34] sm:$0x1] %v839_v0  ;;  %v6649_v37 = vpop.f32.mrf.mxu0 }
 0x10f   : > { %v561_v10 = vrot.slane %v559_v38, 7  ;;  %v804_v44 = vshrl.u32 %v6292_v42, 16  ;;  %v807_v11 = vshll.u32 %v6292_v42, 16  ;;  %v7798_v15 = vpack.c.bf16 %v521_v63, %v521_v63 }
 0x110   : > { %v612_v18 = vsel %vm7744_vm11, %v606_v5, %v611_v40  ;;  %v857_v20 = vsel %vm7744_vm11, %v851_v7, %v856_v41  ;;  %v1214_v22 = vld [vmem:[#allocation2 + $0x28] sm:$0xf]  ;;  %v1220_v23 = vld [vmem:[#allocation2 + $0x30] sm:$0xf]  ;;  %v7804_v24 = vpack.c.bf16 %v513_v1, %v513_v1  ;;  %v615_v25 = vsel %vm7754_vm12, %v607_v6, %v614_v2  ;;  %v814_v40 = vld [vmem:[#allocation2 + $0x20] sm:$0xf]  ;;  %v763_v6 = vpop.f32.mrf.mxu1 }
 0x111   : > { %v1217_v21 = vld [vmem:[#allocation2 + $0x2c] sm:$0x1]  ;;  %613 = vst [vmem:[#allocation2 + $0x38] sm:$0xf] %v612_v18  ;;  %858 = vst [vmem:[#allocation2 + $0x40] sm:$0xf] %v857_v20  ;;  %v1215_v30 = vsel %vm7780_vm13, %v7709_v55, %v1214_v22  ;;  %v564_v31 = vor.u32 %v562_v39, %v561_v10  ;;  %v860_v2 = vsel %vm7754_vm12, %v852_v8, %v859_v16 }
 0x112   : > { %v1218_v29 = vsel %vm7792_vm14, %v7715_v58, %v1217_v21  ;;  %v565_v35 = vrot.slane %v561_v10, 4  ;;  %616 = vst [vmem:[#allocation2 + $0x3c] sm:$0x1] %v615_v25  ;;  %1216 = vst [vmem:[#allocation2 + $0x28] sm:$0xf] %v1215_v30  ;;  %v806_v38 = vrot.slane %v804_v44, 7  ;;  %v1221_v58 = vsel %vm7780_vm13, %v7713_v57, %v1220_v23  ;;  %v7837_v44 = vpop.permute.xlu0 %1134 }
 0x113   : > { %1219 = vst [vmem:[#allocation2 + $0x2c] sm:$0x1] %v1218_v29  ;;  %v664_v41 = vshrl.u32 %v7798_v15, 16  ;;  %v667_v42 = vshll.u32 %v7798_v15, 16  ;;  %v1188_v63 = vld [vmem:[#allocation2 + $0x8] sm:$0xf]  ;;  %v570_v55 = vsel %vm7744_vm11, %v564_v31, %v569_v9  ;;  %v772_v5 = vadd.f32 %v6658_v17, %v7724_v61  ;;  %v515_v17 = vpop.f32.mrf.mxu0 }
 0x114   : > { %v1193_v0 = vld [vmem:[#allocation2 + $0xc] sm:$0x1]  ;;  %v1196_v1 = vld [vmem:[#allocation2 + $0x10] sm:$0xf]  ;;  %v573_v39 = vsel %vm7754_vm12, %v565_v35, %v572_v32  ;;  %1222 = vst [vmem:[#allocation2 + $0x30] sm:$0xf] %v1221_v58  ;;  %v1189_v57 = vsel %vm7780_vm13, %v7689_v47, %v1188_v63  ;;  %v809_v10 = vor.u32 %v807_v11, %v806_v38  ;;  %v6659_v35 = vpop.f32.mrf.mxu1  ;;  %v524_v58 = vadd.f32 %v6649_v37, %v7724_v61 }
 0x115   : > { %v1194_v7 = vsel %vm7792_vm14, %v7691_v48, %v1193_v0  ;;  %v1197_v9 = vsel %vm7780_vm13, %v7693_v49, %v1196_v1  ;;  %v1199_v32 = vld [vmem:[#allocation2 + $0x14] sm:$0x1]  ;;  %571 = vst [vmem:[#allocation2 + $0x18] sm:$0xf] %v570_v55  ;;  %574 = vst [vmem:[#allocation2 + $0x1c] sm:$0x1] %v573_v39  ;;  %v6297_v22 = vpack.c.bf16 %v772_v5, %v772_v5 }
 0x116   : > { %v817_v8 = vld [vmem:[#allocation2 + $0x24] sm:$0x1]  ;;  %861 = vst [vmem:[#allocation2 + $0x44] sm:$0x1] %v860_v2  ;;  %1190 = vst [vmem:[#allocation2 + $0x8] sm:$0xf] %v1189_v57  ;;  %v1200_v47 = vsel %vm7792_vm14, %v7702_v52, %v1199_v32  ;;  %v815_v11 = vsel %vm7744_vm11, %v809_v10, %v814_v40  ;;  %v7851_v52 = vpop.permute.xlu1 %1132  ;;  %v516_v63 = vadd.f32 %v7724_v61, %v515_v17  ;;  %v7876_v5 = vpop.permute.xlu0 %1138 }
 0x117   : > { %1195 = vst [vmem:[#allocation2 + $0xc] sm:$0x1] %v1194_v7  ;;  %1198 = vst [vmem:[#allocation2 + $0x10] sm:$0xf] %v1197_v9  ;;  %v810_v48 = vrot.slane %v806_v38, 4  ;;  %v7842_v15 = vrot.slane %v664_v41, 7  ;;  %v764_v41 = vadd.f32 %v7724_v61, %v763_v6  ;;  %v6290_v10 = vpack.c.bf16 %v524_v58, %v524_v58 }
 0x118   : > { %v1223_v16 = vld [vmem:[#allocation2 + $0x34] sm:$0x1]  ;;  %v622_v49 = vshrl.u32 %v7804_v24, 16  ;;  %1201 = vst [vmem:[#allocation2 + $0x14] sm:$0x1] %v1200_v47  ;;  %v625_v21 = vshll.u32 %v7804_v24, 16 }
 0x119   : > { %v674_v18 = vld [vmem:[#allocation2 + $0x68] sm:$0xf]  ;;  %v1224_v20 = vsel %vm7792_vm14, %v7719_v60, %v1223_v16  ;;  %816 = vst [vmem:[#allocation2 + $0x20] sm:$0xf] %v815_v11  ;;  %v818_v23 = vsel %vm7754_vm12, %v810_v48, %v817_v8  ;;  %v669_v25 = vor.u32 %v667_v42, %v7842_v15  ;;  %v635_v31 = vld [vmem:[#allocation2 + $0x4c] sm:$0x1]  ;;  %v7859_v60 = vor.u32 %v7736_v14, %v1417_v13 }
 0x11a   : > { %1225 = vst [vmem:[#allocation2 + $0x34] sm:$0x1] %v1224_v20  ;;  %v624_v29 = vrot.slane %v622_v49, 7  ;;  %v632_v30 = vld [vmem:[#allocation2 + $0x48] sm:$0xf]  ;;  %v775_v42 = vadd.f32 %v6659_v35, %v7724_v61  ;;  %v909_v39 = vshrl.u32 %v6297_v22, 16  ;;  %v6295_v32 = vpack.c.bf16 %v764_v41, %v764_v41  ;;  %v766_v49 = vpop.f32.mrf.mxu1  ;;  %v7898_v17 = vpop.permute.xlu1 %1136 }
 0x11b   : > { %819 = vst [vmem:[#allocation2 + $0x24] sm:$0x1] %v818_v23  ;;  %v1229_v24 = vld [vmem:[#allocation2 + $0x3c] sm:$0x1]  ;;  %v1226_v38 = vld [vmem:[#allocation2 + $0x38] sm:$0xf]  ;;  %v675_v0 = vsel %vm7744_vm11, %v669_v25, %v674_v18  ;;  %v767_v41 = vadd.f32 %v7724_v61, %v766_v49 }
 0x11c   : > { %v1232_v40 = vld [vmem:[#allocation2 + $0x40] sm:$0xf]  ;;  %v627_v1 = vor.u32 %v625_v21, %v624_v29  ;;  %v628_v55 = vrot.slane %v624_v29, 4  ;;  %v1230_v13 = vsel %vm7792_vm14, %v7731_v4, %v1229_v24  ;;  %676 = vst [vmem:[#allocation2 + $0x68] sm:$0xf] %v675_v0  ;;  %v1227_v14 = vsel %vm7780_vm13, %v7717_v59, %v1226_v38  ;;  %v7881_v6 = vld [vmem:[%s9632_s4 + $0x30] sm:$0xff]  }
 0x11d   : > { %1231 = vst [vmem:[#allocation2 + $0x3c] sm:$0x1] %v1230_v13  ;;  %v1233_v37 = vsel %vm7780_vm13, %v7726_v62, %v1232_v40  ;;  %v912_v2 = vshll.u32 %v6297_v22, 16  ;;  %v1202_v4 = vld [vmem:[#allocation2 + $0x18] sm:$0xf]  ;;  %v7896_v16 = vrot.slane %v909_v39, 7 }
 0x11e   : > { %v1205_v57 = vld [vmem:[#allocation2 + $0x1c] sm:$0x1]  ;;  %v633_v7 = vsel %vm7744_vm11, %v627_v1, %v632_v30  ;;  %1228 = vst [vmem:[#allocation2 + $0x38] sm:$0xf] %v1227_v14  ;;  %v1235_v59 = vld [vmem:[#allocation2 + $0x44] sm:$0x1]  ;;  %v636_v62 = vsel %vm7754_vm12, %v628_v55, %v635_v31  ;;  %v1203_v8 = vsel %vm7780_vm13, %v7695_v50, %v1202_v4  ;;  %v6298_v30 = vpack.c.bf16 %v775_v42, %v775_v42  ;;  %v7924_v1 = vpop.permute.xlu0 %1142 }
 0x11f   : > { %1234 = vst [vmem:[#allocation2 + $0x40] sm:$0xf] %v1233_v37  ;;  %v919_v9 = vld [vmem:[#allocation2 + $0x70] sm:$0xf]  ;;  %v1206_v47 = vsel %vm7792_vm14, %v7707_v54, %v1205_v57  ;;  %634 = vst [vmem:[#allocation2 + $0x48] sm:$0xf] %v633_v7  ;;  %v1236_v48 = vsel %vm7792_vm14, %v7750_v33, %v1235_v59  ;;  %v914_v33 = vor.u32 %v912_v2, %v7896_v16  ;;  %v7938_v7 = vpop.permute.xlu1 %1140 }
 0x120   : > { %637 = vst [vmem:[#allocation2 + $0x4c] sm:$0x1] %v636_v62  ;;  %v7900_v11 = vld [vmem:[#allocation2 + $0x8] sm:$0xff]   ;;  %1204 = vst [vmem:[#allocation2 + $0x18] sm:$0xf] %v1203_v8  ;;  %v867_v50 = vshrl.u32 %v6295_v32, 16  ;;  %v7904_v31 = vpack.c.bf16 %v516_v63, %v516_v63  ;;  %v6296_v57 = vpack.c.bf16 %v767_v41, %v767_v41 }
 0x121   : > { %1207 = vst [vmem:[#allocation2 + $0x1c] sm:$0x1] %v1206_v47  ;;  %1237 = vst [vmem:[#allocation2 + $0x44] sm:$0x1] %v1236_v48  ;;  %v870_v18 = vshll.u32 %v6295_v32, 16  ;;  %v685_v20 = vshrl.u32 %v6290_v10, 16  ;;  %6701 = vmatmul.mubr.msk.bf16.vlgmr.msra.gmra.mxu1 %vm1560_vm4, %v7900_v11  ;;  %v920_v42 = vsel %vm7744_vm11, %v914_v33, %v919_v9 }
 0x122   : > { %v688_v54 = vshll.u32 %v6290_v10, 16  ;;  %v1208_v21 = vld [vmem:[#allocation2 + $0x20] sm:$0xf]  ;;  %v670_v22 = vrot.slane %v7842_v15, 4  ;;  %v877_v23 = vld [vmem:[#allocation2 + $0x50] sm:$0xf]  ;;  %6769 = vmatpush3.bf16.msra.mxu1 %v7700_v51 }
 0x123   : > { %v880_v25 = vld [vmem:[#allocation2 + $0x54] sm:$0x1]  ;;  %v695_v29 = vld [vmem:[#allocation2 + $0x78] sm:$0xf]  ;;  %v1209_v24 = vsel %vm7780_vm13, %v7705_v53, %v1208_v21  ;;  %v1211_v38 = vld [vmem:[#allocation2 + $0x24] sm:$0x1]  ;;  %6770 = vmatprep.subr.bf16.mxu1 %v7881_v6 }
 0x124   : > { %v7908_v35 = vld [vmem:[#allocation2 + $0x10] sm:$0xff]   ;;  %v869_v40 = vrot.slane %v867_v50, 7  ;;  %v7913_v15 = vrot.slane %v685_v20, 7  ;;  %1210 = vst [vmem:[#allocation2 + $0x20] sm:$0xf] %v1209_v24  ;;  %v1212_v58 = vsel %vm7792_vm14, %v7711_v56, %v1211_v38  ;;  %v930_v63 = vshrl.u32 %v6298_v30, 16 }
 0x125   : > { %v933_v0 = vshll.u32 %v6298_v30, 16  ;;  %6704 = vmatprep.mubr.msk.bf16.mxu1 %vm1560_vm4, %v7908_v35  ;;  %v677_v53 = vld [vmem:[#allocation2 + $0x6c] sm:$0x1]  ;;  %v7930_v51 = vld [vmem:[%s9632_s4 + $0x58] sm:$0xff]   ;;  %1213 = vst [vmem:[#allocation2 + $0x24] sm:$0x1] %v1212_v58 }
 0x126   : > { %v915_v56 = vrot.slane %v7896_v16, 4  ;;  %921 = vst [vmem:[#allocation2 + $0x70] sm:$0xf] %v920_v42  ;;  %v872_v61 = vor.u32 %v870_v18, %v869_v40  ;;  %v873_v55 = vrot.slane %v869_v40, 4  ;;  %v690_v13 = vor.u32 %v688_v54, %v7913_v15  ;;  %v940_v14 = vld [vmem:[#allocation2 + $0x80] sm:$0xf]  ;;  %6771 = vmatpush3.bf16.msra.mxu1 %v7881_v6 }
 0x127   : > { %v1262_v37 = vld [vmem:[#allocation2 + $0x68] sm:$0xf]  ;;  %v7934_v39 = vrot.slane %v930_v63, 7  ;;  %v643_v2 = vshrl.u32 %v7904_v31, 16  ;;  %v646_v4 = vshll.u32 %v7904_v31, 16  ;;  %v678_v47 = vsel %vm7754_vm12, %v670_v22, %v677_v53  ;;  %6840 = vmatprep.subr.bf16.mxu1 %v7930_v51  ;;  %v1147_v31 = vpop.permute.xlu0 %1146  ;;  %v7973_v63 = vpop.permute.xlu1 %1144 }
 0x128   : > { %v922_v59 = vld [vmem:[#allocation2 + $0x74] sm:$0x1]  ;;  %v1241_v62 = vld [vmem:[#allocation2 + $0x4c] sm:$0x1]  ;;  %v1238_v9 = vld [vmem:[#allocation2 + $0x48] sm:$0xf]  ;;  %v878_v32 = vsel %vm7744_vm11, %v872_v61, %v877_v23  ;;  %v881_v10 = vsel %vm7754_vm12, %v873_v55, %v880_v25  ;;  %v696_v8 = vsel %vm7744_vm11, %v690_v13, %v695_v29 }
 0x129   : > { %v1242_v48 = vsel %vm7792_vm14, %v7768_v27, %v1241_v62  ;;  %v1239_v16 = vsel %vm7780_vm13, %v7738_v19, %v1238_v9  ;;  %879 = vst [vmem:[#allocation2 + $0x50] sm:$0xf] %v878_v32  ;;  %882 = vst [vmem:[#allocation2 + $0x54] sm:$0x1] %v881_v10  ;;  %v691_v49 = vrot.slane %v7913_v15, 4  ;;  %v935_v50 = vor.u32 %v933_v0, %v7934_v39  ;;  %v7957_v54 = vld [vmem:[#allocation2 + $0x18] sm:$0xff]  }
 0x12a   : > { %697 = vst [vmem:[#allocation2 + $0x78] sm:$0xf] %v696_v8  ;;  %v656_v18 = vld [vmem:[#allocation2 + $0x5c] sm:$0x1]  ;;  %v653_v20 = vld [vmem:[#allocation2 + $0x58] sm:$0xf]  ;;  %v1263_v19 = vsel %vm7780_vm13, %v7876_v5, %v1262_v37  ;;  %6705 = vmatmul.mubr.msk.bf16.gmra.mxu1 %vm1560_vm4, %v7957_v54  ;;  %v923_v40 = vsel %vm7754_vm12, %v915_v56, %v922_v59 }
 0x12b   : > { %679 = vst [vmem:[#allocation2 + $0x6c] sm:$0x1] %v678_v47  ;;  %1243 = vst [vmem:[#allocation2 + $0x4c] sm:$0x1] %v1242_v48  ;;  %v645_v27 = vrot.slane %v643_v2, 7  ;;  %v888_v6 = vshrl.u32 %v6296_v57, 16  ;;  %v941_v33 = vsel %vm7744_vm11, %v935_v50, %v940_v14 }
 0x12c   : > { %1240 = vst [vmem:[#allocation2 + $0x48] sm:$0xf] %v1239_v16  ;;  %v891_v21 = vshll.u32 %v6296_v57, 16  ;;  %v936_v22 = vrot.slane %v7934_v39, 4  ;;  %v901_v23 = vld [vmem:[#allocation2 + $0x64] sm:$0x1] }
 0x12d   : > { %v898_v25 = vld [vmem:[#allocation2 + $0x60] sm:$0xf]  ;;  %1264 = vst [vmem:[#allocation2 + $0x68] sm:$0xf] %v1263_v19  ;;  %v1424_v29 = vshll.u32 %v7900_v11, 16  ;;  %v1432_v30 = vshll.u32 %v7908_v35, 16  ;;  %v648_v24 = vor.u32 %v646_v4, %v645_v27 }
 0x12e   : > { %942 = vst [vmem:[#allocation2 + $0x80] sm:$0xf] %v941_v33  ;;  %v649_v38 = vrot.slane %v645_v27, 4  ;;  %v890_v5 = vrot.slane %v888_v6, 7  ;;  %v698_v15 = vld [vmem:[#allocation2 + $0x7c] sm:$0x1] }
 0x12f   : > { %v1426_v41 = vrot.slane %v1424_v29, 1  ;;  %v1428_v58 = vshrl.u32 %v7900_v11, 16  ;;  %v1434_v42 = vrot.slane %v1432_v30, 1  ;;  %924 = vst [vmem:[#allocation2 + $0x74] sm:$0x1] %v923_v40  ;;  %v1440_v53 = vshll.u32 %v7957_v54, 16 }
 0x130   : > { %v1268_v0 = vld [vmem:[#allocation2 + $0x70] sm:$0xf]  ;;  %v893_v61 = vor.u32 %v891_v21, %v890_v5  ;;  %v894_v55 = vrot.slane %v890_v5, 4  ;;  %v657_v13 = vsel %vm7754_vm12, %v649_v38, %v656_v18  ;;  %v654_v14 = vsel %vm7744_vm11, %v648_v24, %v653_v20  ;;  %v7980_v56 = vld [vmem:[#allocation2 + $0x20] sm:$0xff]   ;;  %v7988_v62 = vld [vmem:[#allocation2 + $0x28] sm:$0xff]   ;;  %v1149_v21 = vpop.permute.xlu1 %1148 }
 0x131   : > { %658 = vst [vmem:[#allocation2 + $0x5c] sm:$0x1] %v657_v13  ;;  %655 = vst [vmem:[#allocation2 + $0x58] sm:$0xf] %v654_v14  ;;  %v1427_v37 = vsel %vm1415_vm15, %v7859_v60, %v1426_v41  ;;  %v1430_v2 = vor.u32 %v1428_v58, %v1426_v41  ;;  %v1269_v4 = vsel %vm7780_vm13, %v7924_v1, %v1268_v0  ;;  %v1436_v57 = vshrl.u32 %v7908_v35, 16  ;;  %v7322_v9 = vld [vmem:[%s9632_s4 + $0x20] sm:$0xff]  }
 0x132   : > { %v943_v59 = vld [vmem:[#allocation2 + $0x84] sm:$0x1]  ;;  %v1247_v32 = vld [vmem:[#allocation2 + $0x54] sm:$0x1]  ;;  %v1244_v10 = vld [vmem:[#allocation2 + $0x50] sm:$0xf]  ;;  %v902_v8 = vsel %vm7754_vm12, %v894_v55, %v901_v23  ;;  %v899_v60 = vsel %vm7744_vm11, %v893_v61, %v898_v25  ;;  %6664 = vmatprep.mubr.msk.bf16.mxu0 %vm1560_vm4, %v1427_v37  ;;  %6708 = vmatprep.mubr.msk.bf16.mxu1 %vm1560_vm4, %v7980_v56  ;;  %v699_v1 = vsel %vm7754_vm12, %v691_v49, %v698_v15  ;;  %v1151_v49 = vpop.permute.xlu0 %1150 }
 0x133   : > { %v1265_v47 = vld [vmem:[#allocation2 + $0x6c] sm:$0x1]  ;;  %1270 = vst [vmem:[#allocation2 + $0x70] sm:$0xf] %v1269_v4  ;;  %v1248_v48 = vsel %vm7792_vm14, %v7808_v28, %v1247_v32  ;;  %v1245_v16 = vsel %vm7780_vm13, %v7766_v12, %v1244_v10  ;;  %903 = vst [vmem:[#allocation2 + $0x64] sm:$0x1] %v902_v8  ;;  %v8012_v18 = vsel %vm1415_vm15, %v1430_v2, %v1434_v42  ;;  %6709 = vmatmul.mubr.msk.bf16.gmra.mxu1 %vm1560_vm4, %v7988_v62 }
 0x134   : > { %900 = vst [vmem:[#allocation2 + $0x60] sm:$0xf] %v899_v60  ;;  %v1266_v50 = vsel %vm7792_vm14, %v7938_v7, %v1265_v47  ;;  %700 = vst [vmem:[#allocation2 + $0x7c] sm:$0x1] %v699_v1  ;;  %v1274_v20 = vld [vmem:[#allocation2 + $0x78] sm:$0xf]  ;;  %6665 = vmatmul.mubr.msk.bf16.vlgmr.msra.gmra.mxu0 %vm1560_vm4, %v8012_v18  ;;  %v1438_v28 = vor.u32 %v1436_v57, %v1434_v42  ;;  %v944_v33 = vsel %vm7754_vm12, %v936_v22, %v943_v59  ;;  %v1153_v37 = vpop.permute.xlu1 %1152 }
 0x135   : > { %1249 = vst [vmem:[#allocation2 + $0x54] sm:$0x1] %v1248_v48  ;;  %1246 = vst [vmem:[#allocation2 + $0x50] sm:$0xf] %v1245_v16  ;;  %v1442_v12 = vrot.slane %v1440_v53, 1  ;;  %v1275_v27 = vsel %vm7780_vm13, %v1147_v31, %v1274_v20  ;;  %v1448_v6 = vshll.u32 %v7980_v56, 16  ;;  %6733 = vmatpush3.bf16.msra.mxu0 %v7686_v46 }
 0x136   : > { %1267 = vst [vmem:[#allocation2 + $0x6c] sm:$0x1] %v1266_v50  ;;  %v8019_v7 = vld [vmem:[#allocation2 + $0x30] sm:$0xff]   ;;  %1276 = vst [vmem:[#allocation2 + $0x78] sm:$0xf] %v1275_v27  ;;  %v1444_v19 = vshrl.u32 %v7957_v54, 16  ;;  %6734 = vmatprep.subr.bf16.mxu0 %v7322_v9 }
 0x137   : > { %v1280_v23 = vld [vmem:[#allocation2 + $0x80] sm:$0xf]  ;;  %v1456_v25 = vshll.u32 %v7988_v62, 16  ;;  %v1271_v29 = vld [vmem:[#allocation2 + $0x74] sm:$0x1]  ;;  %v8031_v30 = vsel %vm1415_vm15, %v1438_v28, %v1442_v12  ;;  %v1450_v46 = vrot.slane %v1448_v6, 1  ;;  %6712 = vmatprep.mubr.msk.bf16.mxu1 %vm1560_vm4, %v8019_v7 }
 0x138   : > { %945 = vst [vmem:[#allocation2 + $0x84] sm:$0x1] %v944_v33  ;;  %v1281_v31 = vsel %vm7780_vm13, %v1151_v49, %v1280_v23  ;;  %v1452_v39 = vshrl.u32 %v7980_v56, 16  ;;  %v8041_v22 = vld [vmem:[%s9632_s4 + $0x48] sm:$0xff]   ;;  %v1272_v24 = vsel %vm7792_vm14, %v7973_v63, %v1271_v29  ;;  %6668 = vmatprep.mubr.msk.bf16.mxu0 %vm1560_vm4, %v8031_v30  ;;  %v1446_v38 = vor.u32 %v1444_v19, %v1442_v12  ;;  %v1253_v5 = vld [vmem:[#allocation2 + $0x5c] sm:$0x1] }
 0x139   : > { %1282 = vst [vmem:[#allocation2 + $0x80] sm:$0xf] %v1281_v31  ;;  %v1250_v40 = vld [vmem:[#allocation2 + $0x58] sm:$0xf]  ;;  %1273 = vst [vmem:[#allocation2 + $0x74] sm:$0x1] %v1272_v24  ;;  %v1254_v58 = vsel %vm7792_vm14, %v7851_v52, %v1253_v5  ;;  %6735 = vmatpush3.bf16.msra.mxu0 %v7322_v9 }
 0x13a   : > { %v1454_v15 = vor.u32 %v1452_v39, %v1450_v46  ;;  %v8048_v41 = vld [vmem:[#allocation2 + $0x38] sm:$0xff]   ;;  %v1251_v42 = vsel %vm7780_vm13, %v7796_v45, %v1250_v40  ;;  %v1458_v63 = vrot.slane %v1456_v25, 1  ;;  %v1464_v0 = vshll.u32 %v8019_v7, 16  ;;  %1255 = vst [vmem:[#allocation2 + $0x5c] sm:$0x1] %v1254_v58  ;;  %6804 = vmatprep.subr.bf16.mxu0 %v8041_v22  ;;  %v8075_v34 = vld [vmem:[#allocation2 + $0x40] sm:$0xff]  }
 0x13b   : > { %1252 = vst [vmem:[#allocation2 + $0x58] sm:$0xf] %v1251_v42  ;;  %v1259_v53 = vld [vmem:[#allocation2 + $0x64] sm:$0x1]  ;;  %v1256_v61 = vld [vmem:[#allocation2 + $0x60] sm:$0xf]  ;;  %v8067_v14 = vsel %vm1415_vm15, %v1446_v38, %v1450_v46  ;;  %6713 = vmatmul.mubr.msk.bf16.gmra.mxu1 %vm1560_vm4, %v8048_v41 }
 0x13c   : > { %v1277_v55 = vld [vmem:[#allocation2 + $0x7c] sm:$0x1]  ;;  %v1260_v13 = vsel %vm7792_vm14, %v7898_v17, %v1259_v53  ;;  %v1257_v52 = vsel %vm7780_vm13, %v7837_v44, %v1256_v61  ;;  %6669 = vmatmul.mubr.msk.bf16.gmra.mxu0 %vm1560_vm4, %v8067_v14  ;;  %v8072_v2 = vsel %vm1415_vm15, %v1454_v15, %v1458_v63  ;;  %v1472_v17 = vshll.u32 %v8048_v41, 16  ;;  %6716 = vmatprep.mubr.msk.bf16.mxu1 %vm1560_vm4, %v8075_v34  ;;  %v8088_v60 = vld [vmem:[#allocation2 + $0x48] sm:$0xff]   ;;  %v8106_v20 = vld [vmem:[#allocation2 + $0x50] sm:$0xff]  }
 0x13d   : > { %v1278_v45 = vsel %vm7792_vm14, %v1149_v21, %v1277_v55  ;;  %1261 = vst [vmem:[#allocation2 + $0x64] sm:$0x1] %v1260_v13  ;;  %1258 = vst [vmem:[#allocation2 + $0x60] sm:$0xf] %v1257_v52  ;;  %6672 = vmatprep.mubr.msk.bf16.mxu0 %vm1560_vm4, %v8072_v2  ;;  %v1460_v4 = vshrl.u32 %v7988_v62, 16  ;;  %v1466_v59 = vrot.slane %v1464_v0, 1 }
 0x13e   : > { %1279 = vst [vmem:[#allocation2 + $0x7c] sm:$0x1] %v1278_v45  ;;  %v1949_v32 = vrot.slane %v7673_v43, 1  ;;  %v1468_v10 = vshrl.u32 %v8019_v7, 16  ;;  %v1474_v8 = vrot.slane %v1472_v17, 1  ;;  %v1950_v47 = vrot.slane %v7900_v11, 1 }
 0x13f   : > { %v1283_v44 = vld [vmem:[#allocation2 + $0x84] sm:$0x1]  ;;  %v1462_v9 = vor.u32 %v1460_v4, %v1458_v63  ;;  %v1480_v48 = vshll.u32 %v8075_v34, 16  ;;  %v1488_v50 = vshll.u32 %v8088_v60, 16  ;;  %v1476_v49 = vshrl.u32 %v8048_v41, 16  ;;  %v8139_v58 = vld [vmem:[#allocation2 + $0x68] sm:$0xff]  }
 0x140   : > { %v1284_v57 = vsel %vm7792_vm14, %v1153_v37, %v1283_v44  ;;  %v1470_v1 = vor.u32 %v1468_v10, %v1466_v59  ;;  %v8098_v16 = vsel %vm1948_vm0, %v1949_v32, %v1950_v47  ;;  %v1484_v27 = vshrl.u32 %v8075_v34, 16  ;;  %v8151_v55 = vld [vmem:[#allocation2 + $0x70] sm:$0xff]   ;;  %v8173_v10 = vld [vmem:[#allocation2 + $0x80] sm:$0xf] }
 0x141   : > { %1285 = vst [vmem:[#allocation2 + $0x84] sm:$0x1] %v1284_v57  ;;  %v8093_v3 = vsel %vm1415_vm15, %v1462_v9, %v1466_v59  ;;  %v1482_v28 = vrot.slane %v1480_v48, 1  ;;  %v1478_v12 = vor.u32 %v1476_v49, %v1474_v8  ;;  %v1490_v6 = vrot.slane %v1488_v50, 1 }
 0x142   : > { %v8103_v43 = vsel %vm1415_vm15, %v1470_v1, %v1474_v8  ;;  %v1496_v21 = vshll.u32 %v8106_v20, 16  ;;  %v8117_v33 = vld [vmem:[#allocation2 + $0x58] sm:$0xff]   ;;  %v1492_v25 = vshrl.u32 %v8088_v60, 16  ;;  %v1500_v31 = vshrl.u32 %v8106_v20, 16 }
 0x143   : > { %6717 = vmatmul.mubr.msk.bf16.gmra.mxu1 %vm1560_vm4, %v8088_v60  ;;  %v1486_v19 = vor.u32 %v1484_v27, %v1482_v28  ;;  %v8120_v23 = vsel %vm1415_vm15, %v1478_v12, %v1482_v28  ;;  %v1504_v24 = vshll.u32 %v8117_v33, 16  ;;  %v1508_v63 = vshrl.u32 %v8117_v33, 16 }
 0x144   : > { %6673 = vmatmul.mubr.msk.bf16.gmra.mxu0 %vm1560_vm4, %v8093_v3  ;;  %6720 = vmatprep.mubr.msk.bf16.mxu1 %vm1560_vm4, %v8106_v20  ;;  %v1498_v46 = vrot.slane %v1496_v21, 1  ;;  %v8129_v39 = vld [vmem:[#allocation2 + $0x60] sm:$0xff]   ;;  %v1494_v38 = vor.u32 %v1492_v25, %v1490_v6  ;;  %v1520_v13 = vshll.u32 %v8139_v58, 16  ;;  %v1528_v37 = vshll.u32 %v8151_v55, 16 }
 0x145   : > { %6676 = vmatprep.mubr.msk.bf16.mxu0 %vm1560_vm4, %v8103_v43  ;;  %v8126_v29 = vsel %vm1415_vm15, %v1486_v19, %v1490_v6  ;;  %v1512_v40 = vshll.u32 %v8129_v39, 16  ;;  %v1506_v15 = vrot.slane %v1504_v24, 1  ;;  %v1516_v61 = vshrl.u32 %v8129_v39, 16  ;;  %v8161_v44 = vld [vmem:[#allocation2 + $0x78] sm:$0xff]   ;;  %v7335_v6 = vld [vmem:[%s9632_s4 + $0x50] sm:$0xff]  }
 0x146   : > { %v1502_v5 = vor.u32 %v1500_v31, %v1498_v46  ;;  %v8142_v42 = vsel %vm1415_vm15, %v1494_v38, %v1498_v46  ;;  %v1522_v17 = vrot.slane %v1520_v13, 1  ;;  %v1524_v57 = vshrl.u32 %v8139_v58, 16  ;;  %v8211_v46 = vld [vmem:[%s9632_s4 + $0x78] sm:$0xff]   ;;  %v7332_v38 = vld [vmem:[%s9632_s4 + $0x40] sm:$0xff]  }
 0x147   : > { %v1514_v53 = vrot.slane %v1512_v40, 1  ;;  %v1510_v52 = vor.u32 %v1508_v63, %v1506_v15  ;;  %v1530_v9 = vrot.slane %v1528_v37, 1  ;;  %v1532_v32 = vshrl.u32 %v8151_v55, 16 }
 0x148   : > { %v8148_v0 = vsel %vm1415_vm15, %v1502_v5, %v1506_v15  ;;  %v1536_v8 = vshll.u32 %v8161_v44, 16  ;;  %v1526_v1 = vor.u32 %v1524_v57, %v1522_v17  ;;  %v8184_v48 = vcombine.low %v8173_v10, %v8173_v10 }
 0x149   : > { %v1518_v45 = vor.u32 %v1516_v61, %v1514_v53  ;;  %v8164_v4 = vsel %vm1415_vm15, %v1510_v52, %v1514_v53  ;;  %v1534_v50 = vor.u32 %v1532_v32, %v1530_v9  ;;  %v1540_v12 = vshrl.u32 %v8161_v44, 16 }
 0x14a   : > { %v1538_v49 = vrot.slane %v1536_v8, 1  ;;  %v8187_v28 = vsel %vm1415_vm15, %v1526_v1, %v1530_v9  ;;  %v1544_v27 = vshll.u32 %v8184_v48, 16  ;;  %v1954_v24 = vrot.slane %v7957_v54, 1 }
 0x14b   : > { %6721 = vmatmul.mubr.msk.bf16.gmra.mxu1 %vm1560_vm4, %v8117_v33  ;;  %v8170_v59 = vsel %vm1415_vm15, %v1518_v45, %v1522_v17  ;;  %v1960_v63 = vrot.slane %v8019_v7, 1  ;;  %v1962_v53 = vrot.slane %v8048_v41, 1  ;;  %v1964_v52 = vrot.slane %v8075_v34, 1 }
 0x14c   : > { %6677 = vmatmul.mubr.msk.bf16.gmra.mxu0 %vm1560_vm4, %v8120_v23  ;;  %6724 = vmatprep.mubr.msk.bf16.mxu1 %vm1560_vm4, %v8129_v39  ;;  %v8197_v21 = vsel %vm1415_vm15, %v1534_v50, %v1538_v49  ;;  %v8206_v19 = vor.u32 %v1540_v12, %v1538_v49  ;;  %v1546_v25 = vrot.slane %v1544_v27, 1  ;;  %v1966_v45 = vrot.slane %v8088_v60, 1  ;;  %v1319_v49 = vld [vmem:[#allocation2 + $0x84] sm:$0xf] }
 0x14d   : > { %6680 = vmatprep.mubr.msk.bf16.mxu0 %vm1560_vm4, %v8126_v29  ;;  %v8272_v13 = vsel %vm1948_vm0, %v1960_v63, %v1962_v53  ;;  %v8283_v37 = vsel %vm1948_vm0, %v1962_v53, %v1964_v52  ;;  %v1968_v57 = vrot.slane %v8106_v20, 1  ;;  %v1970_v9 = vrot.slane %v8117_v33, 1 }
 0x14e   : > { %v1547_v31 = vsel %vm1415_vm15, %v8206_v19, %v1546_v25  ;;  %v8288_v17 = vsel %vm1948_vm0, %v1964_v52, %v1966_v45  ;;  %v1972_v1 = vrot.slane %v8129_v39, 1  ;;  %v1974_v50 = vrot.slane %v8139_v58, 1 }
 0x14f   : > { %v8299_v32 = vsel %vm1948_vm0, %v1966_v45, %v1968_v57  ;;  %v8304_v8 = vsel %vm1948_vm0, %v1968_v57, %v1970_v9  ;;  %v1976_v25 = vrot.slane %v8151_v55, 1 }
 0x150   : > { %v8315_v12 = vsel %vm1948_vm0, %v1970_v9, %v1972_v1  ;;  %v8320_v27 = vsel %vm1948_vm0, %v1972_v1, %v1974_v50 }
 0x153   : > { %6725 = vmatmul.mubr.msk.bf16.gmra.mxu1 %vm1560_vm4, %v8139_v58 }
 0x154   : > { %6681 = vmatmul.mubr.msk.bf16.gmra.mxu0 %vm1560_vm4, %v8142_v42  ;;  %6728 = vmatprep.mubr.msk.bf16.mxu1 %vm1560_vm4, %v8151_v55 }
 0x155   : > { %6684 = vmatprep.mubr.msk.bf16.mxu0 %vm1560_vm4, %v8148_v0 }
 0x15b   : > { %6729 = vmatmul.mubr.msk.bf16.gmra.mxu1 %vm1560_vm4, %v8161_v44 }
 0x15c   : > { %6685 = vmatmul.mubr.msk.bf16.gmra.mxu0 %vm1560_vm4, %v8164_v4  ;;  %6772 = vmatprep.mubr.msk.bf16.mxu1 %vm1560_vm4, %v7900_v11  ;;  %v8243_v11 = vld [vmem:[%s9632_s4 + $0x68] sm:$0xff]  }
 0x15d   : > { %6688 = vmatprep.mubr.msk.bf16.mxu0 %vm1560_vm4, %v8170_v59 }
 0x163   : > { %6773 = vmatmul.mubr.msk.bf16.vlgmr.msra.gmra.mxu1 %vm1560_vm4, %v7908_v35 }
 0x164   : > { %6689 = vmatmul.mubr.msk.bf16.gmra.mxu0 %vm1560_vm4, %v8187_v28  ;;  %6776 = vmatprep.mubr.msk.bf16.mxu1 %vm1560_vm4, %v7957_v54 }
 0x165   : > { %6692 = vmatprep.mubr.msk.bf16.mxu0 %vm1560_vm4, %v8197_v21  ;;  %6841 = vmatpush3.bf16.msra.mxu1 %v7930_v51  ;;  %v1952_v51 = vrot.slane %v7908_v35, 1 }
 0x166   : > { %6842 = vmatprep.subr.bf16.mxu1 %v7335_v6 }
 0x167   : > { %v1953_v5 = vsel %vm1948_vm0, %v1950_v47, %v1952_v51  ;;  %v1956_v47 = vrot.slane %v7980_v56, 1 }
 0x169   : > { %6843 = vmatpush3.bf16.msra.mxu1 %v7335_v6  ;;  %v8251_v40 = vsel %vm1948_vm0, %v1954_v24, %v1956_v47  ;;  %v8323_v6 = vcombine.low %v8173_v10, %v1319_v49 }
 0x16a   : > { %6912 = vmatprep.subr.bf16.mxu1 %v8211_v46 }
 0x16b   : > { %6777 = vmatmul.mubr.msk.bf16.gmra.mxu1 %vm1560_vm4, %v7980_v56  ;;  %v2395_v53 = vshll.u32 %v8323_v6, 16  ;;  %v2399_v57 = vshrl.u32 %v8323_v6, 16 }
 0x16c   : > { %6693 = vmatmul.mubr.msk.bf16.gmra.mxu0 %vm1560_vm4, %v1547_v31  ;;  %6780 = vmatprep.mubr.msk.bf16.mxu1 %vm1560_vm4, %v7988_v62  ;;  %v1978_v31 = vrot.slane %v8161_v44, 1 }
 0x16d   : > { %6736 = vmatprep.mubr.msk.bf16.mxu0 %vm1560_vm4, %v8098_v16  ;;  %v8233_v16 = vsel %vm1948_vm0, %v1952_v51, %v1954_v24  ;;  %v8333_v51 = vsel %vm1948_vm0, %v1974_v50, %v1976_v25  ;;  %v7341_v24 = vld [vmem:[%s9632_s4 + $0x70] sm:$0xff]   ;;  %v2397_v45 = vrot.slane %v2395_v53, 1 }
 0x16e   : > { %v8338_v10 = vsel %vm1948_vm0, %v1976_v25, %v1978_v31 }
 0x16f   : > { %v8432_v1 = vsel %vm1415_vm15, %v8206_v19, %v2397_v45  ;;  %v8438_v49 = vor.u32 %v2399_v57, %v2397_v45 }
 0x173   : > { %6781 = vmatmul.mubr.msk.bf16.gmra.mxu1 %vm1560_vm4, %v8019_v7 }
 0x174   : > { %6737 = vmatmul.mubr.msk.bf16.vlgmr.msra.gmra.mxu0 %vm1560_vm4, %v1953_v5  ;;  %6784 = vmatprep.mubr.msk.bf16.mxu1 %vm1560_vm4, %v8048_v41 }
 0x175   : > { %6805 = vmatpush3.bf16.msra.mxu0 %v8041_v22  ;;  %6740 = vmatprep.mubr.msk.bf16.mxu0 %vm1560_vm4, %v8233_v16  ;;  %v1958_v22 = vrot.slane %v7988_v62, 1 }
 0x176   : > { %6806 = vmatprep.subr.bf16.mxu0 %v7332_v38 }
 0x177   : > { %v8256_v15 = vsel %vm1948_vm0, %v1956_v47, %v1958_v22  ;;  %v8267_v61 = vsel %vm1948_vm0, %v1958_v22, %v1960_v63 }
 0x179   : > { %6807 = vmatpush3.bf16.msra.mxu0 %v7332_v38  ;;  %v1980_v38 = vrot.slane %v8184_v48, 1  ;;  %v7337_v48 = vld [vmem:[%s9632_s4 + $0x60] sm:$0xff]  }
 0x17a   : > { %6876 = vmatprep.subr.bf16.mxu0 %v8243_v11 }
 0x17b   : > { %6785 = vmatmul.mubr.msk.bf16.gmra.mxu1 %vm1560_vm4, %v8075_v34 }
 0x17c   : > { %6741 = vmatmul.mubr.msk.bf16.gmra.mxu0 %vm1560_vm4, %v8251_v40  ;;  %6788 = vmatprep.mubr.msk.bf16.mxu1 %vm1560_vm4, %v8088_v60 }
 0x17d   : > { %6744 = vmatprep.mubr.msk.bf16.mxu0 %vm1560_vm4, %v8256_v15 }
 0x183   : > { %6789 = vmatmul.mubr.msk.bf16.gmra.mxu1 %vm1560_vm4, %v8106_v20 }
 0x184   : > { %6745 = vmatmul.mubr.msk.bf16.gmra.mxu0 %vm1560_vm4, %v8267_v61  ;;  %6792 = vmatprep.mubr.msk.bf16.mxu1 %vm1560_vm4, %v8117_v33 }
 0x185   : > { %6748 = vmatprep.mubr.msk.bf16.mxu0 %vm1560_vm4, %v8272_v13 }
 0x18b   : > { %6793 = vmatmul.mubr.msk.bf16.gmra.mxu1 %vm1560_vm4, %v8129_v39 }
 0x18c   : > { %6749 = vmatmul.mubr.msk.bf16.gmra.mxu0 %vm1560_vm4, %v8283_v37  ;;  %6796 = vmatprep.mubr.msk.bf16.mxu1 %vm1560_vm4, %v8139_v58 }
 0x18d   : > { %6752 = vmatprep.mubr.msk.bf16.mxu0 %vm1560_vm4, %v8288_v17 }
 0x193   : > { %6797 = vmatmul.mubr.msk.bf16.gmra.mxu1 %vm1560_vm4, %v8151_v55 }
 0x194   : > { %6753 = vmatmul.mubr.msk.bf16.gmra.mxu0 %vm1560_vm4, %v8299_v32  ;;  %6800 = vmatprep.mubr.msk.bf16.mxu1 %vm1560_vm4, %v8161_v44 }
 0x195   : > { %6756 = vmatprep.mubr.msk.bf16.mxu0 %vm1560_vm4, %v8304_v8 }
 0x19b   : > { %6801 = vmatmul.mubr.msk.bf16.gmra.mxu1 %vm1560_vm4, %v8323_v6 }
 0x19c   : > { %6757 = vmatmul.mubr.msk.bf16.gmra.mxu0 %vm1560_vm4, %v8315_v12  ;;  %6844 = vmatprep.mubr.msk.bf16.mxu1 %vm1560_vm4, %v1953_v5  ;;  %v1981_v5 = vsel %vm1948_vm0, %v1978_v31, %v1980_v38 }
 0x19d   : > { %6760 = vmatprep.mubr.msk.bf16.mxu0 %vm1560_vm4, %v8320_v27 }
 0x1a3   : > { %6845 = vmatmul.mubr.msk.bf16.vlgmr.msra.gmra.mxu1 %vm1560_vm4, %v8233_v16 }
 0x1a4   : > { %6761 = vmatmul.mubr.msk.bf16.gmra.mxu0 %vm1560_vm4, %v8333_v51  ;;  %6848 = vmatprep.mubr.msk.bf16.mxu1 %vm1560_vm4, %v8251_v40 }
 0x1a5   : > { %6764 = vmatprep.mubr.msk.bf16.mxu0 %vm1560_vm4, %v8338_v10  ;;  %6913 = vmatpush3.bf16.msra.mxu1 %v8211_v46  ;;  %v8399_v46 = vrot.slane %v8323_v6, 1 }
 0x1a6   : > { %6914 = vmatprep.subr.bf16.mxu1 %v7341_v24 }
 0x1a7   : > { %v8413_v22 = vsel %vm1948_vm0, %v1978_v31, %v8399_v46 }
 0x1a9   : > { %6915 = vmatpush3.bf16.msra.mxu1 %v7341_v24 }
 0x1ab   : > { %6849 = vmatmul.mubr.msk.bf16.gmra.mxu1 %vm1560_vm4, %v8256_v15 }
 0x1ac   : > { %6765 = vmatmul.mubr.msk.bf16.gmra.mxu0 %vm1560_vm4, %v1981_v5  ;;  %6852 = vmatprep.mubr.msk.bf16.mxu1 %vm1560_vm4, %v8267_v61  ;;  %v7343_v5 = vld [vmem:[%s9632_s4 + $0x80] sm:$0xff]  }
 0x1ad   : > { %6808 = vmatprep.mubr.msk.bf16.mxu0 %vm1560_vm4, %v8012_v18  ;;  %v7342_v18 = vld [vmem:[%s9632_s4 + $0x88] sm:$0xff]  }
 0x1b3   : > { %6853 = vmatmul.mubr.msk.bf16.gmra.mxu1 %vm1560_vm4, %v8272_v13 }
 0x1b4   : > { %6809 = vmatmul.mubr.msk.bf16.vlgmr.msra.gmra.mxu0 %vm1560_vm4, %v8031_v30  ;;  %6856 = vmatprep.mubr.msk.bf16.mxu1 %vm1560_vm4, %v8283_v37 }
 0x1b5   : > { %6877 = vmatpush3.bf16.msra.mxu0 %v8243_v11  ;;  %6812 = vmatprep.mubr.msk.bf16.mxu0 %vm1560_vm4, %v8067_v14  ;;  %v8401_v11 = vld [vmem:[#allocation2 + $0x88] sm:$0xf] }
 0x1b6   : > { %6878 = vmatprep.subr.bf16.mxu0 %v7337_v48  ;;  %v5961_v47 = vcombine.low %v8401_v11, %v8401_v11 }
 0x1b8   : > { %v2593_v63 = vrot.slane %v5961_v47, 1  ;;  %v2403_v9 = vshll.u32 %v5961_v47, 16 }
 0x1b9   : > { %6879 = vmatpush3.bf16.msra.mxu0 %v7337_v48 }
 0x1ba   : > { %6948 = vmatprep.subr.bf16.mxu0 %v7342_v18  ;;  %v2594_v52 = vsel %vm1948_vm0, %v8399_v46, %v2593_v63 }
 0x1bb   : > { %6857 = vmatmul.mubr.msk.bf16.gmra.mxu1 %vm1560_vm4, %v8288_v17 }
 0x1bc   : > { %6813 = vmatmul.mubr.msk.bf16.gmra.mxu0 %vm1560_vm4, %v8072_v2  ;;  %6860 = vmatprep.mubr.msk.bf16.mxu1 %vm1560_vm4, %v8299_v32 }
 0x1bd   : > { %6816 = vmatprep.mubr.msk.bf16.mxu0 %vm1560_vm4, %v8093_v3 }
 0x1c3   : > { %6861 = vmatmul.mubr.msk.bf16.gmra.mxu1 %vm1560_vm4, %v8304_v8 }
 0x1c4   : > { %6817 = vmatmul.mubr.msk.bf16.gmra.mxu0 %vm1560_vm4, %v8103_v43  ;;  %6864 = vmatprep.mubr.msk.bf16.mxu1 %vm1560_vm4, %v8315_v12 }
 0x1c5   : > { %6820 = vmatprep.mubr.msk.bf16.mxu0 %vm1560_vm4, %v8120_v23 }
 0x1cb   : > { %6865 = vmatmul.mubr.msk.bf16.gmra.mxu1 %vm1560_vm4, %v8320_v27 }
 0x1cc   : > { %6821 = vmatmul.mubr.msk.bf16.gmra.mxu0 %vm1560_vm4, %v8126_v29  ;;  %6868 = vmatprep.mubr.msk.bf16.mxu1 %vm1560_vm4, %v8333_v51 }
 0x1cd   : > { %6824 = vmatprep.mubr.msk.bf16.mxu0 %vm1560_vm4, %v8142_v42 }
 0x1d3   : > { %6869 = vmatmul.mubr.msk.bf16.gmra.mxu1 %vm1560_vm4, %v8338_v10 }
 0x1d4   : > { %6825 = vmatmul.mubr.msk.bf16.gmra.mxu0 %vm1560_vm4, %v8148_v0  ;;  %6872 = vmatprep.mubr.msk.bf16.mxu1 %vm1560_vm4, %v8413_v22 }
 0x1d5   : > { %6828 = vmatprep.mubr.msk.bf16.mxu0 %vm1560_vm4, %v8164_v4 }
 0x1db   : > { %6873 = vmatmul.mubr.msk.bf16.gmra.mxu1 %vm1560_vm4, %v2594_v52 }
 0x1dc   : > { %6829 = vmatmul.mubr.msk.bf16.gmra.mxu0 %vm1560_vm4, %v8170_v59  ;;  %6916 = vmatprep.mubr.msk.bf16.mxu1 %vm1560_vm4, %v8031_v30  ;;  %v2405_v30 = vrot.slane %v2403_v9, 1 }
 0x1dd   : > { %6832 = vmatprep.mubr.msk.bf16.mxu0 %vm1560_vm4, %v8187_v28 }
 0x1de   : > { %v2406_v24 = vsel %vm1415_vm15, %v8438_v49, %v2405_v30 }
 0x1e1   : > { %v6702_v50 = vpop.f32.mrf.mxu1 }
 0x1e3   : > { %6917 = vmatmul.mubr.msk.bf16.vlgmr.msra.gmra.mxu1 %vm1560_vm4, %v8067_v14  ;;  %v1832_v25 = vpop.f32.mrf.mxu1 }
 0x1e4   : > { %6833 = vmatmul.mubr.msk.bf16.gmra.mxu0 %vm1560_vm4, %v8197_v21  ;;  %6920 = vmatprep.mubr.msk.bf16.mxu1 %vm1560_vm4, %v8072_v2 }
 0x1e5   : > { %6836 = vmatprep.mubr.msk.bf16.mxu0 %vm1560_vm4, %v8432_v1  ;;  %v6703_v31 = vpop.f32.mrf.mxu1 }
 0x1e7   : > { %v1835_v19 = vpop.f32.mrf.mxu1 }
 0x1ea   : > { %v6706_v38 = vpop.f32.mrf.mxu1 }
 0x1eb   : > { %6921 = vmatmul.mubr.msk.bf16.gmra.mxu1 %vm1560_vm4, %v8093_v3 }
 0x1ec   : > { %6837 = vmatmul.mubr.msk.bf16.gmra.mxu0 %vm1560_vm4, %v2406_v24  ;;  %6924 = vmatprep.mubr.msk.bf16.mxu1 %vm1560_vm4, %v8103_v43  ;;  %v1846_v14 = vpop.f32.mrf.mxu1 }
 0x1ed   : > { %6880 = vmatprep.mubr.msk.bf16.mxu0 %vm1560_vm4, %v7908_v35 }
 0x1ee   : > { %v6707_v2 = vpop.f32.mrf.mxu1 }
 0x1f0   : > { %v1849_v48 = vpop.f32.mrf.mxu1 }
 0x1f3   : > { %v6710_v35 = vpop.f32.mrf.mxu1  ;;  %6925 = vmatmul.mubr.msk.bf16.gmra.mxu1 %vm1560_vm4, %v8120_v23 }
 0x1f4   : > { %v6666_v47 = vpop.f32.mrf.mxu0  ;;  %6881 = vmatmul.mubr.msk.bf16.vlgmr.msra.gmra.mxu0 %vm1560_vm4, %v7957_v54  ;;  %6928 = vmatprep.mubr.msk.bf16.mxu1 %vm1560_vm4, %v8126_v29 }
 0x1f5   : > { %v8456_v63 = vadd.f32 %v6702_v50, %v6666_v47  ;;  %6949 = vmatpush3.bf16.msra.mxu0 %v7342_v18  ;;  %6884 = vmatprep.mubr.msk.bf16.mxu0 %vm1560_vm4, %v7980_v56  ;;  %v1860_v53 = vpop.f32.mrf.mxu1 }
 0x1f6   : > { %v1643_v3 = vpop.f32.mrf.mxu0  ;;  %6950 = vmatprep.subr.bf16.mxu0 %v7343_v5 }
 0x1f7   : > { %v8462_v43 = vadd.f32 %v1832_v25, %v1643_v3  ;;  %v6711_v54 = vpop.f32.mrf.mxu1 }
 0x1f8   : > { %v6667_v52 = vpop.f32.mrf.mxu0 }
 0x1f9   : > { %6951 = vmatpush3.bf16.msra.mxu0 %v7343_v5  ;;  %v1863_v18 = vpop.f32.mrf.mxu1  ;;  %v8506_v52 = vld [vmem:[#allocation2 + $0x90] ss:$0 sps:$4 sm:$0xff]  }
 0x1fa   : > { %v1646_v45 = vpop.f32.mrf.mxu0 }
 0x1fb   : > { %v6714_v23 = vpop.f32.mrf.mxu1  ;;  %6929 = vmatmul.mubr.msk.bf16.gmra.mxu1 %vm1560_vm4, %v8142_v42 }
 0x1fc   : > { %v6670_v57 = vpop.f32.mrf.mxu0  ;;  %6885 = vmatmul.mubr.msk.bf16.gmra.mxu0 %vm1560_vm4, %v7988_v62  ;;  %6932 = vmatprep.mubr.msk.bf16.mxu1 %vm1560_vm4, %v8148_v0  ;;  %v1321_v0 = vld [vmem:[#allocation2 + $0x8c] sm:$0xf] }
 0x1fd   : > { %v8468_v56 = vadd.f32 %v6706_v38, %v6670_v57  ;;  %6888 = vmatprep.mubr.msk.bf16.mxu0 %vm1560_vm4, %v8019_v7  ;;  %v1874_v50 = vpop.f32.mrf.mxu1 }
 0x1fe   : > { %v1657_v9 = vpop.f32.mrf.mxu0 }
 0x1ff   : > { %v8474_v29 = vadd.f32 %v1846_v14, %v1657_v9  ;;  %v6715_v25 = vpop.f32.mrf.mxu1 }
 0x200   : > { %v6671_v30 = vpop.f32.mrf.mxu0 }
 0x201   : > { %v1877_v62 = vpop.f32.mrf.mxu1 }
 0x202   : > { %v1660_v31 = vpop.f32.mrf.mxu0 }
 0x203   : > { %v6718_v42 = vpop.f32.mrf.mxu1  ;;  %6933 = vmatmul.mubr.msk.bf16.gmra.mxu1 %vm1560_vm4, %v8164_v4 }
 0x204   : > { %v6674_v24 = vpop.f32.mrf.mxu0  ;;  %6889 = vmatmul.mubr.msk.bf16.gmra.mxu0 %vm1560_vm4, %v8048_v41  ;;  %6936 = vmatprep.mubr.msk.bf16.mxu1 %vm1560_vm4, %v8170_v59  ;;  %v8491_v41 = vcombine.low %v8401_v11, %v1321_v0 }
 0x205   : > { %v8480_v7 = vadd.f32 %v6710_v35, %v6674_v24  ;;  %6892 = vmatprep.mubr.msk.bf16.mxu0 %vm1560_vm4, %v8075_v34  ;;  %v1888_v14 = vpop.f32.mrf.mxu1 }
 0x206   : > { %v1671_v19 = vpop.f32.mrf.mxu0  ;;  %v2966_v59 = vshll.u32 %v8491_v41, 16  ;;  %v2970_v57 = vshrl.u32 %v8491_v41, 16 }
 0x207   : > { %v8486_v38 = vadd.f32 %v1860_v53, %v1671_v19  ;;  %v6719_v5 = vpop.f32.mrf.mxu1 }
 0x208   : > { %v6675_v2 = vpop.f32.mrf.mxu0  ;;  %v2968_v18 = vrot.slane %v2966_v59, 1 }
 0x209   : > { %v1891_v47 = vpop.f32.mrf.mxu1 }
 0x20a   : > { %v1674_v48 = vpop.f32.mrf.mxu0  ;;  %v2969_v30 = vsel %vm1415_vm15, %v8438_v49, %v2968_v18  ;;  %v2972_v31 = vor.u32 %v2970_v57, %v2968_v18 }
 0x20b   : > { %v6722_v4 = vpop.f32.mrf.mxu1  ;;  %6937 = vmatmul.mubr.msk.bf16.gmra.mxu1 %vm1560_vm4, %v8187_v28 }
 0x20c   : > { %v6678_v34 = vpop.f32.mrf.mxu0  ;;  %6893 = vmatmul.mubr.msk.bf16.gmra.mxu0 %vm1560_vm4, %v8088_v60  ;;  %6940 = vmatprep.mubr.msk.bf16.mxu1 %vm1560_vm4, %v8197_v21 }
 0x20d   : > { %v8495_v35 = vadd.f32 %v6714_v23, %v6678_v34  ;;  %6896 = vmatprep.mubr.msk.bf16.mxu0 %vm1560_vm4, %v8106_v20  ;;  %v1902_v53 = vpop.f32.mrf.mxu1  ;;  %v2974_v23 = vshll.u32 %v8506_v52, 16 }
 0x20e   : > { %v1685_v3 = vpop.f32.mrf.mxu0 }
 0x20f   : > { %v8502_v11 = vadd.f32 %v1874_v50, %v1685_v3  ;;  %v6723_v54 = vpop.f32.mrf.mxu1 }
 0x210   : > { %v6679_v60 = vpop.f32.mrf.mxu0 }
 0x211   : > { %v1905_v20 = vpop.f32.mrf.mxu1 }
 0x212   : > { %v1688_v45 = vpop.f32.mrf.mxu0 }
 0x213   : > { %v6726_v21 = vpop.f32.mrf.mxu1  ;;  %6941 = vmatmul.mubr.msk.bf16.gmra.mxu1 %vm1560_vm4, %v8432_v1 }
 0x214   : > { %v6682_v28 = vpop.f32.mrf.mxu0  ;;  %6897 = vmatmul.mubr.msk.bf16.gmra.mxu0 %vm1560_vm4, %v8117_v33  ;;  %6944 = vmatprep.mubr.msk.bf16.mxu1 %vm1560_vm4, %v2969_v30  ;;  %v2976_v33 = vrot.slane %v2974_v23, 1 }
 0x215   : > { %v8512_v9 = vadd.f32 %v6718_v42, %v6682_v28  ;;  %6900 = vmatprep.mubr.msk.bf16.mxu0 %vm1560_vm4, %v8129_v39  ;;  %v1916_v62 = vpop.f32.mrf.mxu1 }
 0x216   : > { %v1699_v50 = vpop.f32.mrf.mxu0  ;;  %v2977_v39 = vsel %vm1415_vm15, %v2972_v31, %v2976_v33 }
 0x217   : > { %v8520_v25 = vadd.f32 %v1888_v14, %v1699_v50  ;;  %v6727_v42 = vpop.f32.mrf.mxu1 }
 0x218   : > { %v6683_v24 = vpop.f32.mrf.mxu0 }
 0x219   : > { %v1919_v0 = vpop.f32.mrf.mxu1 }
 0x21a   : > { %v1702_v19 = vpop.f32.mrf.mxu0 }
 0x21b   : > { %v6730_v49 = vpop.f32.mrf.mxu1  ;;  %6945 = vmatmul.mubr.msk.bf16.gmra.mxu1 %vm1560_vm4, %v2977_v39 }
 0x21c   : > { %v6686_v2 = vpop.f32.mrf.mxu0  ;;  %6901 = vmatmul.mubr.msk.bf16.gmra.mxu0 %vm1560_vm4, %v8139_v58 }
 0x21d   : > { %v8526_v1 = vadd.f32 %v6722_v4, %v6686_v2  ;;  %6904 = vmatprep.mubr.msk.bf16.mxu0 %vm1560_vm4, %v8151_v55  ;;  %v1930_v48 = vpop.f32.mrf.mxu1 }
 0x21e   : > { %v1713_v14 = vpop.f32.mrf.mxu0 }
 0x21f   : > { %v8531_v5 = vadd.f32 %v1902_v53, %v1713_v14  ;;  %v6731_v34 = vpop.f32.mrf.mxu1 }
 0x220   : > { %v6687_v47 = vpop.f32.mrf.mxu0 }
 0x221   : > { %v1933_v59 = vpop.f32.mrf.mxu1 }
 0x222   : > { %v1716_v3 = vpop.f32.mrf.mxu0 }
 0x223   : > { %v6774_v55 = vpop.f32.mrf.mxu1 }
 0x224   : > { %v6690_v60 = vpop.f32.mrf.mxu0  ;;  %6905 = vmatmul.mubr.msk.bf16.gmra.mxu0 %vm1560_vm4, %v8161_v44 }
 0x225   : > { %v8535_v58 = vadd.f32 %v6726_v21, %v6690_v60  ;;  %6908 = vmatprep.mubr.msk.bf16.mxu0 %vm1560_vm4, %v8323_v6  ;;  %v2260_v53 = vpop.f32.mrf.mxu1 }
 0x226   : > { %v1727_v4 = vpop.f32.mrf.mxu0 }
 0x227   : > { %v8539_v54 = vadd.f32 %v1916_v62, %v1727_v4  ;;  %v6775_v18 = vpop.f32.mrf.mxu1 }
 0x228   : > { %v6691_v45 = vpop.f32.mrf.mxu0 }
 0x229   : > { %v2263_v57 = vpop.f32.mrf.mxu1 }
 0x22a   : > { %v1730_v20 = vpop.f32.mrf.mxu0 }
 0x22b   : > { %v6778_v44 = vpop.f32.mrf.mxu1 }
 0x22c   : > { %v6694_v23 = vpop.f32.mrf.mxu0  ;;  %6909 = vmatmul.mubr.msk.bf16.gmra.mxu0 %vm1560_vm4, %v8491_v41 }
 0x22d   : > { %v8543_v28 = vadd.f32 %v6730_v49, %v6694_v23  ;;  %6952 = vmatprep.mubr.msk.bf16.mxu0 %vm1560_vm4, %v8233_v16  ;;  %v2274_v50 = vpop.f32.mrf.mxu1 }
 0x22e   : > { %v1741_v6 = vpop.f32.mrf.mxu0 }
 0x22f   : > { %v8547_v21 = vadd.f32 %v1930_v48, %v1741_v6  ;;  %v6779_v31 = vpop.f32.mrf.mxu1 }
 0x230   : > { %v6695_v30 = vpop.f32.mrf.mxu0 }
 0x231   : > { %v2277_v33 = vpop.f32.mrf.mxu1 }
 0x232   : > { %v1744_v62 = vpop.f32.mrf.mxu0 }
 0x233   : > { %v6782_v16 = vpop.f32.mrf.mxu1 }
 0x234   : > { %v6738_v24 = vpop.f32.mrf.mxu0  ;;  %6953 = vmatmul.mubr.msk.bf16.vlgmr.msra.gmra.mxu0 %vm1560_vm4, %v8251_v40 }
 0x235   : > { %v2188_v42 = vadd.f32 %v6738_v24, %v8456_v63  ;;  %6956 = vmatprep.mubr.msk.bf16.mxu0 %vm1560_vm4, %v8256_v15  ;;  %v2288_v49 = vpop.f32.mrf.mxu1 }
 0x236   : > { %v2076_v19 = vpop.f32.mrf.mxu0 }
 0x237   : > { %v2187_v0 = vadd.f32 %v2076_v19, %v8462_v43  ;;  %v8555_v39 = vadd.f32 %v6774_v55, %v2188_v42  ;;  %v6783_v47 = vpop.f32.mrf.mxu1 }
 0x238   : > { %v6739_v2 = vpop.f32.mrf.mxu0  ;;  %v7345_v47 = vld [vmem:[%s9634_s6 + $0x8] sm:$0xff]  }
 0x239   : > { %v8557_v14 = vadd.f32 %v2260_v53, %v2187_v0  ;;  %v2291_v40 = vpop.f32.mrf.mxu1  ;;  %6984 = vmatprep.subr.bf16.mxu1 %v7345_v47 }
 0x23a   : > { %v2079_v48 = vpop.f32.mrf.mxu0  ;;  %6985 = vmatpush3.bf16.msra.mxu1 %v7345_v47 }
 0x23b   : > { %v6786_v43 = vpop.f32.mrf.mxu1 }
 0x23c   : > { %v6742_v34 = vpop.f32.mrf.mxu0  ;;  %6957 = vmatmul.mubr.msk.bf16.gmra.mxu0 %vm1560_vm4, %v8267_v61 }
 0x23d   : > { %v2190_v63 = vadd.f32 %v6742_v34, %v8468_v56  ;;  %6960 = vmatprep.mubr.msk.bf16.mxu0 %vm1560_vm4, %v8272_v13  ;;  %v2302_v55 = vpop.f32.mrf.mxu1 }
 0x23e   : > { %v2090_v15 = vpop.f32.mrf.mxu0 }
 0x23f   : > { %v2189_v3 = vadd.f32 %v2090_v15, %v8474_v29  ;;  %v8565_v59 = vadd.f32 %v6778_v44, %v2190_v63  ;;  %v6787_v45 = vpop.f32.mrf.mxu1 }
 0x240   : > { %v6743_v60 = vpop.f32.mrf.mxu0  ;;  %v3162_v45 = vrot.slane %v8491_v41, 1 }
 0x241   : > { %v8567_v4 = vadd.f32 %v2274_v50, %v2189_v3  ;;  %v2305_v61 = vpop.f32.mrf.mxu1 }
 0x242   : > { %v2093_v53 = vpop.f32.mrf.mxu0 }
 0x243   : > { %v6790_v29 = vpop.f32.mrf.mxu1 }
 0x244   : > { %v6746_v18 = vpop.f32.mrf.mxu0  ;;  %6961 = vmatmul.mubr.msk.bf16.gmra.mxu0 %vm1560_vm4, %v8283_v37 }
 0x245   : > { %v2192_v56 = vadd.f32 %v6746_v18, %v8480_v7  ;;  %6964 = vmatprep.mubr.msk.bf16.mxu0 %vm1560_vm4, %v8288_v17  ;;  %v2316_v44 = vpop.f32.mrf.mxu1 }
 0x246   : > { %v2104_v13 = vpop.f32.mrf.mxu0 }
 0x247   : > { %v2191_v20 = vadd.f32 %v2104_v13, %v8486_v38  ;;  %v8575_v57 = vadd.f32 %v6782_v16, %v2192_v56  ;;  %v6791_v30 = vpop.f32.mrf.mxu1 }
 0x248   : > { %v6747_v23 = vpop.f32.mrf.mxu0 }
 0x249   : > { %v8577_v6 = vadd.f32 %v2288_v49, %v2191_v20  ;;  %v2319_v37 = vpop.f32.mrf.mxu1 }
 0x24a   : > { %v2107_v50 = vpop.f32.mrf.mxu0 }
 0x24b   : > { %v6794_v38 = vpop.f32.mrf.mxu1 }
 0x24c   : > { %v6750_v31 = vpop.f32.mrf.mxu0  ;;  %6965 = vmatmul.mubr.msk.bf16.gmra.mxu0 %vm1560_vm4, %v8299_v32 }
 0x24d   : > { %v2194_v7 = vadd.f32 %v6750_v31, %v8495_v35  ;;  %6968 = vmatprep.mubr.msk.bf16.mxu0 %vm1560_vm4, %v8304_v8  ;;  %v2330_v42 = vpop.f32.mrf.mxu1 }
 0x24e   : > { %v2118_v17 = vpop.f32.mrf.mxu0 }
 0x24f   : > { %v2193_v62 = vadd.f32 %v2118_v17, %v8502_v11  ;;  %v8585_v33 = vadd.f32 %v6786_v43, %v2194_v7  ;;  %v6795_v0 = vpop.f32.mrf.mxu1 }
 0x250   : > { %v6751_v24 = vpop.f32.mrf.mxu0 }
 0x251   : > { %v8587_v19 = vadd.f32 %v2302_v55, %v2193_v62  ;;  %v2333_v32 = vpop.f32.mrf.mxu1 }
 0x252   : > { %v2121_v16 = vpop.f32.mrf.mxu0 }
 0x253   : > { %v6798_v11 = vpop.f32.mrf.mxu1 }
 0x254   : > { %v6754_v2 = vpop.f32.mrf.mxu0  ;;  %6969 = vmatmul.mubr.msk.bf16.gmra.mxu0 %vm1560_vm4, %v8315_v12 }
 0x255   : > { %v2196_v35 = vadd.f32 %v6754_v2, %v8512_v9  ;;  %6972 = vmatprep.mubr.msk.bf16.mxu0 %vm1560_vm4, %v8320_v27  ;;  %v2344_v40 = vpop.f32.mrf.mxu1 }
 0x256   : > { %v2132_v8 = vpop.f32.mrf.mxu0 }
 0x257   : > { %v2195_v49 = vadd.f32 %v2132_v8, %v8520_v25  ;;  %v8595_v48 = vadd.f32 %v6790_v29, %v2196_v35  ;;  %v6799_v9 = vpop.f32.mrf.mxu1  ;;  %v3164_v29 = vrot.slane %v8506_v52, 1 }
 0x258   : > { %v6755_v34 = vpop.f32.mrf.mxu0 }
 0x259   : > { %v8600_v63 = vadd.f32 %v2316_v44, %v2195_v49  ;;  %v2347_v27 = vpop.f32.mrf.mxu1 }
 0x25a   : > { %v2135_v12 = vpop.f32.mrf.mxu0 }
 0x25b   : > { %v6802_v3 = vpop.f32.mrf.mxu1 }
 0x25c   : > { %v6758_v15 = vpop.f32.mrf.mxu0  ;;  %6973 = vmatmul.mubr.msk.bf16.gmra.mxu0 %vm1560_vm4, %v8333_v51 }
 0x25d   : > { %v2198_v25 = vadd.f32 %v6758_v15, %v8526_v1  ;;  %6976 = vmatprep.mubr.msk.bf16.mxu0 %vm1560_vm4, %v8338_v10  ;;  %v2358_v18 = vpop.f32.mrf.mxu1  ;;  %v3163_v10 = vsel %vm1948_vm0, %v8399_v46, %v3162_v45 }
 0x25e   : > { %v2146_v43 = vpop.f32.mrf.mxu0 }
 0x25f   : > { %v2197_v60 = vadd.f32 %v2146_v43, %v8531_v5  ;;  %v8608_v55 = vadd.f32 %v6794_v38, %v2198_v25  ;;  %v6803_v51 = vpop.f32.mrf.mxu1 }
 0x260   : > { %v6759_v53 = vpop.f32.mrf.mxu0 }
 0x261   : > { %v8611_v61 = vadd.f32 %v2330_v42, %v2197_v60  ;;  %v2361_v1 = vpop.f32.mrf.mxu1 }
 0x262   : > { %v2149_v56 = vpop.f32.mrf.mxu0 }
 0x263   : > { %v6846_v20 = vpop.f32.mrf.mxu1 }
 0x264   : > { %v6762_v13 = vpop.f32.mrf.mxu0  ;;  %6977 = vmatmul.mubr.msk.bf16.gmra.mxu0 %vm1560_vm4, %v8413_v22  ;;  %v3165_v22 = vsel %vm1948_vm0, %v3162_v45, %v3164_v29 }
 0x265   : > { %v2200_v5 = vadd.f32 %v6762_v13, %v8535_v58  ;;  %6980 = vmatprep.mubr.msk.bf16.mxu0 %vm1560_vm4, %v3163_v10  ;;  %v2647_v30 = vpop.f32.mrf.mxu1 }
 0x266   : > { %v2160_v41 = vpop.f32.mrf.mxu0 }
 0x267   : > { %v2199_v23 = vadd.f32 %v2160_v41, %v8539_v54  ;;  %v8621_v44 = vadd.f32 %v6798_v11, %v2200_v5  ;;  %v6847_v37 = vpop.f32.mrf.mxu1 }
 0x268   : > { %v6763_v50 = vpop.f32.mrf.mxu0 }
 0x269   : > { %v8624_v31 = vadd.f32 %v2344_v40, %v2199_v23  ;;  %v2650_v58 = vpop.f32.mrf.mxu1 }
 0x26a   : > { %v2163_v46 = vpop.f32.mrf.mxu0 }
 0x26b   : > { %v6850_v38 = vpop.f32.mrf.mxu1 }
 0x26c   : > { %v6766_v7 = vpop.f32.mrf.mxu0  ;;  %6981 = vmatmul.mubr.msk.bf16.gmra.mxu0 %vm1560_vm4, %v3165_v22 }
 0x26d   : > { %v2202_v52 = vadd.f32 %v6766_v7, %v8543_v28  ;;  %v2661_v42 = vpop.f32.mrf.mxu1 }
 0x26e   : > { %v2174_v17 = vpop.f32.mrf.mxu0 }
 0x26f   : > { %v2201_v54 = vadd.f32 %v2174_v17, %v8547_v21  ;;  %v8629_v62 = vadd.f32 %v6802_v3, %v2202_v52  ;;  %v6851_v2 = vpop.f32.mrf.mxu1 }
 0x270   : > { %v6767_v24 = vpop.f32.mrf.mxu0 }
 0x271   : > { %v8631_v16 = vadd.f32 %v2358_v18, %v2201_v54  ;;  %v2664_v35 = vpop.f32.mrf.mxu1 }
 0x272   : > { %v2177_v0 = vpop.f32.mrf.mxu0 }
 0x273   : > { %v6854_v49 = vpop.f32.mrf.mxu1 }
 0x274   : > { %v6810_v32 = vpop.f32.mrf.mxu0 }
 0x275   : > { %v2571_v8 = vadd.f32 %v6810_v32, %v8555_v39  ;;  %v2675_v21 = vpop.f32.mrf.mxu1 }
 0x276   : > { %v2459_v11 = vpop.f32.mrf.mxu0 }
 0x277   : > { %v2570_v28 = vadd.f32 %v2459_v11, %v8557_v14  ;;  %v8635_v47 = vadd.f32 %v6846_v20, %v2571_v8  ;;  %v6855_v9 = vpop.f32.mrf.mxu1 }
 0x278   : > { %v6811_v34 = vpop.f32.mrf.mxu0 }
 0x279   : > { %v8637_v40 = vadd.f32 %v2647_v30, %v2570_v28  ;;  %v2678_v27 = vpop.f32.mrf.mxu1 }
 0x27a   : > { %v2462_v12 = vpop.f32.mrf.mxu0 }
 0x27b   : > { %v6858_v3 = vpop.f32.mrf.mxu1 }
 0x27c   : > { %v6814_v15 = vpop.f32.mrf.mxu0 }
 0x27d   : > { %v2573_v25 = vadd.f32 %v6814_v15, %v8565_v59  ;;  %v2689_v14 = vpop.f32.mrf.mxu1 }
 0x27e   : > { %v2473_v43 = vpop.f32.mrf.mxu0 }
 0x27f   : > { %v2572_v39 = vadd.f32 %v2473_v43, %v8567_v4  ;;  %v8641_v60 = vadd.f32 %v6850_v38, %v2573_v25  ;;  %v6859_v56 = vpop.f32.mrf.mxu1  ;;  %v8670_v25 = vld [vmem:[#allocation3] sm:$0xff]  }
 0x280   : > { %v6815_v53 = vpop.f32.mrf.mxu0  ;;  %7020 = vmatprep.mubr.msk.bf16.mxu0 %vm3968_vm1, %v8670_v25 }
 0x281   : > { %v8643_v45 = vadd.f32 %v2661_v42, %v2572_v39  ;;  %v2692_v13 = vpop.f32.mrf.mxu1 }
 0x282   : > { %v2476_v18 = vpop.f32.mrf.mxu0  ;;  %v8680_v13 = vld [vmem:[%s9634_s6 + $0x10] sm:$0xff]  }
 0x283   : > { %v6862_v5 = vpop.f32.mrf.mxu1  ;;  %7052 = vmatprep.subr.bf16.mxu1 %v8680_v13 }
 0x284   : > { %v6818_v51 = vpop.f32.mrf.mxu0 }
 0x285   : > { %v2575_v10 = vadd.f32 %v6818_v51, %v8575_v57  ;;  %v2703_v4 = vpop.f32.mrf.mxu1 }
 0x286   : > { %v2487_v1 = vpop.f32.mrf.mxu0 }
 0x287   : > { %v2574_v59 = vadd.f32 %v2487_v1, %v8577_v6  ;;  %v8647_v29 = vadd.f32 %v6854_v49, %v2575_v10  ;;  %v6863_v50 = vpop.f32.mrf.mxu1 }
 0x288   : > { %v6819_v41 = vpop.f32.mrf.mxu0 }
 0x289   : > { %v8649_v20 = vadd.f32 %v2675_v21, %v2574_v59  ;;  %v2706_v22 = vpop.f32.mrf.mxu1 }
 0x28a   : > { %v2490_v23 = vpop.f32.mrf.mxu0 }
 0x28b   : > { %v6866_v7 = vpop.f32.mrf.mxu1 }
 0x28c   : > { %v6822_v30 = vpop.f32.mrf.mxu0 }
 0x28d   : > { %v2577_v46 = vadd.f32 %v6822_v30, %v8585_v33  ;;  %v2717_v6 = vpop.f32.mrf.mxu1 }
 0x28e   : > { %v2501_v37 = vpop.f32.mrf.mxu0 }
 0x28f   : > { %v2576_v57 = vadd.f32 %v2501_v37, %v8587_v19  ;;  %v8653_v58 = vadd.f32 %v6858_v3, %v2577_v46  ;;  %v6867_v54 = vpop.f32.mrf.mxu1 }
 0x290   : > { %v6823_v52 = vpop.f32.mrf.mxu0 }
 0x291   : > { %v8655_v17 = vadd.f32 %v2689_v14, %v2576_v57  ;;  %v2720_v42 = vpop.f32.mrf.mxu1 }
 0x292   : > { %v2504_v38 = vpop.f32.mrf.mxu0 }
 0x293   : > { %v6870_v32 = vpop.f32.mrf.mxu1 }
 0x294   : > { %v6826_v24 = vpop.f32.mrf.mxu0 }
 0x295   : > { %v2579_v0 = vadd.f32 %v6826_v24, %v8595_v48  ;;  %v2731_v19 = vpop.f32.mrf.mxu1  ;;  %v7346_v48 = vld [vmem:[%s9634_s6] sm:$0xff]  }
 0x296   : > { %v2515_v2 = vpop.f32.mrf.mxu0  ;;  %7018 = vmatprep.subr.bf16.mxu0 %v7346_v48 }
 0x297   : > { %v2578_v33 = vadd.f32 %v2515_v2, %v8600_v63  ;;  %v8659_v35 = vadd.f32 %v6862_v5, %v2579_v0  ;;  %v6871_v28 = vpop.f32.mrf.mxu1  ;;  %7019 = vmatpush3.bf16.msra.mxu0 %v7346_v48 }
 0x298   : > { %v6827_v8 = vpop.f32.mrf.mxu0 }
 0x299   : > { %v8661_v11 = vadd.f32 %v2703_v4, %v2578_v33  ;;  %v2734_v21 = vpop.f32.mrf.mxu1 }
 0x29a   : > { %v2518_v49 = vpop.f32.mrf.mxu0 }
 0x29b   : > { %v6874_v15 = vpop.f32.mrf.mxu1 }
 0x29c   : > { %v6830_v34 = vpop.f32.mrf.mxu0 }
 0x29d   : > { %v2581_v12 = vadd.f32 %v6830_v34, %v8608_v55  ;;  %v2745_v3 = vpop.f32.mrf.mxu1 }
 0x29e   : > { %v2529_v9 = vpop.f32.mrf.mxu0 }
 0x29f   : > { %v2580_v63 = vadd.f32 %v2529_v9, %v8611_v61  ;;  %v8668_v27 = vadd.f32 %v6866_v7, %v2581_v12  ;;  %v6875_v53 = vpop.f32.mrf.mxu1 }
 0x2a0   : > { %v6831_v43 = vpop.f32.mrf.mxu0 }
 0x2a1   : > { %v8672_v39 = vadd.f32 %v2717_v6, %v2580_v63  ;;  %v2748_v18 = vpop.f32.mrf.mxu1 }
 0x2a2   : > { %v2532_v55 = vpop.f32.mrf.mxu0 }
 0x2a3   : > { %v6918_v51 = vpop.f32.mrf.mxu1 }
 0x2a4   : > { %v6834_v14 = vpop.f32.mrf.mxu0 }
 0x2a5   : > { %v2583_v61 = vadd.f32 %v6834_v14, %v8621_v44  ;;  %v3030_v59 = vpop.f32.mrf.mxu1 }
 0x2a6   : > { %v2543_v56 = vpop.f32.mrf.mxu0 }
 0x2a7   : > { %v2582_v10 = vadd.f32 %v2543_v56, %v8624_v31  ;;  %v8683_v1 = vadd.f32 %v6870_v32, %v2583_v61  ;;  %v6919_v23 = vpop.f32.mrf.mxu1 }
 0x2a8   : > { %v6835_v5 = vpop.f32.mrf.mxu0 }
 0x2a9   : > { %v8686_v41 = vadd.f32 %v2731_v19, %v2582_v10  ;;  %v3033_v50 = vpop.f32.mrf.mxu1 }
 0x2aa   : > { %v2546_v4 = vpop.f32.mrf.mxu0 }
 0x2ab   : > { %v6922_v46 = vpop.f32.mrf.mxu1  ;;  %v8715_v4 = vld [vmem:[%s9634_s6 + $0x18] sm:$0xff]  }
 0x2ac   : > { %v6838_v44 = vpop.f32.mrf.mxu0  ;;  %7086 = vmatprep.subr.bf16.mxu0 %v8715_v4 }
 0x2ad   : > { %v2585_v30 = vadd.f32 %v6838_v44, %v8629_v62  ;;  %v3044_v57 = vpop.f32.mrf.mxu1 }
 0x2ae   : > { %v2557_v22 = vpop.f32.mrf.mxu0 }
 0x2af   : > { %v2584_v37 = vadd.f32 %v2557_v22, %v8631_v16  ;;  %v8690_v7 = vadd.f32 %v6874_v15, %v2585_v30  ;;  %v6923_v38 = vpop.f32.mrf.mxu1 }
 0x2b0   : > { %v6839_v31 = vpop.f32.mrf.mxu0 }
 0x2b1   : > { %v8692_v52 = vadd.f32 %v2745_v3, %v2584_v37  ;;  %v3047_v24 = vpop.f32.mrf.mxu1 }
 0x2b2   : > { %v2560_v6 = vpop.f32.mrf.mxu0 }
 0x2b3   : > { %v6926_v2 = vpop.f32.mrf.mxu1 }
 0x2b4   : > { %v6882_v54 = vpop.f32.mrf.mxu0 }
 0x2b5   : > { %v2943_v42 = vadd.f32 %v6882_v54, %v8635_v47  ;;  %v3058_v16 = vpop.f32.mrf.mxu1 }
 0x2b6   : > { %v2831_v0 = vpop.f32.mrf.mxu0 }
 0x2b7   : > { %v2942_v62 = vadd.f32 %v2831_v0, %v8637_v40  ;;  %v8696_v32 = vadd.f32 %v6918_v51, %v2943_v42  ;;  %v6927_v49 = vpop.f32.mrf.mxu1 }
 0x2b8   : > { %v6883_v33 = vpop.f32.mrf.mxu0 }
 0x2b9   : > { %v8698_v8 = vadd.f32 %v3030_v59, %v2942_v62  ;;  %v3061_v34 = vpop.f32.mrf.mxu1 }
 0x2ba   : > { %v2834_v19 = vpop.f32.mrf.mxu0 }
 0x2bb   : > { %v6930_v48 = vpop.f32.mrf.mxu1 }
 0x2bc   : > { %v6886_v28 = vpop.f32.mrf.mxu0 }
 0x2bd   : > { %v2945_v21 = vadd.f32 %v6886_v28, %v8641_v60  ;;  %v3072_v40 = vpop.f32.mrf.mxu1 }
 0x2be   : > { %v2845_v12 = vpop.f32.mrf.mxu0 }
 0x2bf   : > { %v2944_v47 = vadd.f32 %v2845_v12, %v8643_v45  ;;  %v8702_v9 = vadd.f32 %v6922_v46, %v2945_v21  ;;  %v6931_v3 = vpop.f32.mrf.mxu1 }
 0x2c0   : > { %v6887_v15 = vpop.f32.mrf.mxu0 }
 0x2c1   : > { %v8704_v63 = vadd.f32 %v3044_v57, %v2944_v47  ;;  %v3075_v53 = vpop.f32.mrf.mxu1 }
 0x2c2   : > { %v2848_v43 = vpop.f32.mrf.mxu0 }
 0x2c3   : > { %v6934_v61 = vpop.f32.mrf.mxu1 }
 0x2c4   : > { %v6890_v55 = vpop.f32.mrf.mxu0 }
 0x2c5   : > { %v2947_v14 = vadd.f32 %v6890_v55, %v8647_v29  ;;  %v3086_v45 = vpop.f32.mrf.mxu1 }
 0x2c6   : > { %v2859_v18 = vpop.f32.mrf.mxu0 }
 0x2c7   : > { %v2946_v60 = vadd.f32 %v2859_v18, %v8649_v20  ;;  %v8708_v56 = vadd.f32 %v6926_v2, %v2947_v14  ;;  %v6935_v59 = vpop.f32.mrf.mxu1 }
 0x2c8   : > { %v6891_v51 = vpop.f32.mrf.mxu0 }
 0x2c9   : > { %v8710_v10 = vadd.f32 %v3058_v16, %v2946_v60  ;;  %v3089_v44 = vpop.f32.mrf.mxu1 }
 0x2ca   : > { %v2862_v5 = vpop.f32.mrf.mxu0 }
 0x2cb   : > { %v6938_v50 = vpop.f32.mrf.mxu1 }
 0x2cc   : > { %v6894_v23 = vpop.f32.mrf.mxu0 }
 0x2cd   : > { %v2949_v29 = vadd.f32 %v6894_v23, %v8653_v58  ;;  %v3100_v37 = vpop.f32.mrf.mxu1 }
 0x2ce   : > { %v2873_v20 = vpop.f32.mrf.mxu0 }
 0x2cf   : > { %v2948_v30 = vadd.f32 %v2873_v20, %v8655_v17  ;;  %v8720_v22 = vadd.f32 %v6930_v48, %v2949_v29  ;;  %v6939_v6 = vpop.f32.mrf.mxu1 }
 0x2d0   : > { %v6895_v46 = vpop.f32.mrf.mxu0 }
 0x2d1   : > { %v8722_v31 = vadd.f32 %v3072_v40, %v2948_v30  ;;  %v3103_v54 = vpop.f32.mrf.mxu1 }
 0x2d2   : > { %v2876_v57 = vpop.f32.mrf.mxu0 }
 0x2d3   : > { %v6942_v0 = vpop.f32.mrf.mxu1 }
 0x2d4   : > { %v6898_v38 = vpop.f32.mrf.mxu0 }
 0x2d5   : > { %v2951_v24 = vadd.f32 %v6898_v38, %v8659_v35  ;;  %v3114_v17 = vpop.f32.mrf.mxu1 }
 0x2d6   : > { %v2887_v42 = vpop.f32.mrf.mxu0 }
 0x2d7   : > { %v2950_v58 = vadd.f32 %v2887_v42, %v8661_v11  ;;  %v8726_v2 = vadd.f32 %v6934_v61, %v2951_v24  ;;  %v6943_v19 = vpop.f32.mrf.mxu1 }
 0x2d8   : > { %v6899_v62 = vpop.f32.mrf.mxu0 }
 0x2d9   : > { %v8728_v33 = vadd.f32 %v3086_v45, %v2950_v58  ;;  %v3117_v28 = vpop.f32.mrf.mxu1 }
 0x2da   : > { %v2890_v16 = vpop.f32.mrf.mxu0 }
 0x2db   : > { %v6946_v12 = vpop.f32.mrf.mxu1 }
 0x2dc   : > { %v6902_v49 = vpop.f32.mrf.mxu0 }
 0x2dd   : > { %v2953_v34 = vadd.f32 %v6902_v49, %v8668_v27  ;;  %v3128_v11 = vpop.f32.mrf.mxu1  ;;  %v3615_v49 = vld [vmem:[#allocation3 + $0x10] sm:$0xf] }
 0x2de   : > { %v2901_v21 = vpop.f32.mrf.mxu0 }
 0x2df   : > { %v2952_v35 = vadd.f32 %v2901_v21, %v8672_v39  ;;  %v8732_v48 = vadd.f32 %v6938_v50, %v2953_v34  ;;  %v6947_v43 = vpop.f32.mrf.mxu1 }
 0x2e0   : > { %v6903_v47 = vpop.f32.mrf.mxu0  ;;  %v3612_v43 = vld [vmem:[#allocation3 + $0xc] sm:$0x1] }
 0x2e1   : > { %v8734_v15 = vadd.f32 %v3100_v37, %v2952_v35  ;;  %v3131_v55 = vpop.f32.mrf.mxu1 }
 0x2e2   : > { %v2904_v40 = vpop.f32.mrf.mxu0 }
 0x2e3   : > { %v3609_v40 = vld [vmem:[#allocation3 + $0x8] sm:$0xf] }
 0x2e4   : > { %v6906_v3 = vpop.f32.mrf.mxu0 }
 0x2e5   : > { %v2955_v53 = vadd.f32 %v6906_v3, %v8683_v1 }
 0x2e6   : > { %v2915_v14 = vpop.f32.mrf.mxu0 }
 0x2e7   : > { %v2954_v18 = vadd.f32 %v2915_v14, %v8686_v41  ;;  %v8738_v27 = vadd.f32 %v6942_v0, %v2955_v53  ;;  %v8751_v41 = vld [vmem:[%s9633_s5] ss:$0 sm:$0xff] }
 0x2e8   : > { %v6907_v61 = vpop.f32.mrf.mxu0 }
 0x2e9   : > { %v8740_v60 = vadd.f32 %v3114_v17, %v2954_v18 }
 0x2ea   : > { %v2918_v39 = vpop.f32.mrf.mxu0 }
 0x2ec   : > { %v6910_v51 = vpop.f32.mrf.mxu0 }
 0x2ed   : > { %v2957_v45 = vadd.f32 %v6910_v51, %v8690_v7 }
 0x2ee   : > { %v2929_v5 = vpop.f32.mrf.mxu0 }
 0x2ef   : > { %v2956_v59 = vadd.f32 %v2929_v5, %v8692_v52  ;;  %v8744_v23 = vadd.f32 %v6946_v12, %v2957_v45 }
 0x2f0   : > { %v6911_v44 = vpop.f32.mrf.mxu0 }
 0x2f1   : > { %v8746_v29 = vadd.f32 %v3128_v11, %v2956_v59  ;;  %v3833_v59 = vshll.u32 %v8670_v25, 16 }
 0x2f2   : > { %v2932_v1 = vpop.f32.mrf.mxu0 }
 0x2f4   : > { %v6954_v20 = vpop.f32.mrf.mxu0 }
 0x2f5   : > { %v3330_v50 = vadd.f32 %v6954_v20, %v8696_v32 }
 0x2f6   : > { %v3218_v30 = vpop.f32.mrf.mxu0 }
 0x2f7   : > { %v3353_v7 = vadd.f32 %v8751_v41, %v3330_v50  ;;  %v3329_v46 = vadd.f32 %v3218_v30, %v8698_v8  ;;  %v3618_v8 = vld [vmem:[#allocation3 + $0x14] sm:$0x1]  ;;  %v3627_v50 = vld [vmem:[#allocation3 + $0x20] sm:$0xf] }
 0x2f8   : > { %v6955_v52 = vpop.f32.mrf.mxu0 }
 0x2f9   : > { %v3369_v37 = vmax.f32 %v3353_v7, 0.0  ;;  %v3352_v57 = vadd.f32 %v8751_v41, %v3329_v46 }
 0x2fa   : > { %v3221_v6 = vpop.f32.mrf.mxu0 }
 0x2fb   : > { %v6300_v38 = vpack.c.bf16 %v3369_v37, %v3369_v37  ;;  %v3368_v54 = vmax.f32 %v3352_v57, 0.0  ;;  %v3630_v37 = vld [vmem:[#allocation3 + $0x24] sm:$0x1] }
 0x2fc   : > { %v6958_v24 = vpop.f32.mrf.mxu0 }
 0x2fd   : > { %v3457_v42 = vshrl.u32 %v6300_v38, 16  ;;  %v6299_v0 = vpack.c.bf16 %v3368_v54, %v3368_v54  ;;  %v3332_v58 = vadd.f32 %v6958_v24, %v8702_v9  ;;  %v3460_v32 = vshll.u32 %v6300_v38, 16  ;;  %v3621_v38 = vld [vmem:[#allocation3 + $0x18] sm:$0xf] }
 0x2fe   : > { %v3232_v62 = vpop.f32.mrf.mxu0  ;;  %v3831_v24 = vshrl.u32 %v8670_v25, 16 }
 0x2ff   : > { %v3459_v17 = vrot.slane %v3457_v42, 7  ;;  %v3449_v16 = vshrl.u32 %v6299_v0, 16  ;;  %v3355_v19 = vadd.f32 %v8751_v41, %v3332_v58  ;;  %v3452_v28 = vshll.u32 %v6299_v0, 16 }
 0x300   : > { %v3331_v34 = vadd.f32 %v3232_v62, %v8704_v63  ;;  %v6959_v21 = vpop.f32.mrf.mxu0  ;;  %v3835_v42 = vrot.slane %v3833_v59, 1 }
 0x301   : > { %v3462_v12 = vor.u32 %v3460_v32, %v3459_v17  ;;  %v3463_v35 = vrot.slane %v3459_v17, 4  ;;  %v3451_v47 = vrot.slane %v3449_v16, 7  ;;  %v3371_v11 = vmax.f32 %v3355_v19, 0.0  ;;  %v3624_v32 = vld [vmem:[#allocation3 + $0x1c] sm:$0x1] }
 0x302   : > { %v3354_v9 = vadd.f32 %v8751_v41, %v3331_v34  ;;  %v3235_v3 = vpop.f32.mrf.mxu0 }
 0x303   : > { %v3616_v55 = vsel %vm7744_vm11, %v3462_v12, %v3615_v49  ;;  %v3619_v53 = vsel %vm7754_vm12, %v3463_v35, %v3618_v8  ;;  %v3454_v14 = vor.u32 %v3452_v28, %v3451_v47  ;;  %v3455_v18 = vrot.slane %v3451_v47, 4 }
 0x304   : > { %3617 = vst [vmem:[#allocation3 + $0x10] sm:$0xf] %v3616_v55  ;;  %3620 = vst [vmem:[#allocation3 + $0x14] sm:$0x1] %v3619_v53  ;;  %v6302_v63 = vpack.c.bf16 %v3371_v11, %v3371_v11  ;;  %v3370_v61 = vmax.f32 %v3354_v9, 0.0  ;;  %v6962_v39 = vpop.f32.mrf.mxu0 }
 0x305   : > { %v3610_v51 = vsel %vm7744_vm11, %v3454_v14, %v3609_v40  ;;  %v3613_v45 = vsel %vm7754_vm12, %v3455_v18, %v3612_v43  ;;  %v3334_v5 = vadd.f32 %v6962_v39, %v8708_v56  ;;  %v3836_v40 = vor.u32 %v3835_v42, %v3831_v24  ;;  %v8793_v18 = vld [vmem:[%s9634_s6 + $0x28] sm:$0xff]  }
 0x306   : > { %3611 = vst [vmem:[#allocation3 + $0x8] sm:$0xf] %v3610_v51  ;;  %3614 = vst [vmem:[#allocation3 + $0xc] sm:$0x1] %v3613_v45  ;;  %v3473_v44 = vshrl.u32 %v6302_v63, 16  ;;  %v6301_v1 = vpack.c.bf16 %v3370_v61, %v3370_v61  ;;  %v3246_v20 = vpop.f32.mrf.mxu0  ;;  %v3476_v52 = vshll.u32 %v6302_v63, 16 }
 0x307   : > { %v3357_v30 = vadd.f32 %v8751_v41, %v3334_v5  ;;  %v3333_v7 = vadd.f32 %v3246_v20, %v8710_v10  ;;  %v4348_v14 = vrot.slane %v8670_v25, 1  ;;  %v3639_v61 = vld [vmem:[#allocation3 + $0x30] sm:$0xf]  ;;  %v3642_v45 = vld [vmem:[#allocation3 + $0x34] sm:$0x1] }
 0x308   : > { %v3475_v46 = vrot.slane %v3473_v44, 7  ;;  %v3465_v57 = vshrl.u32 %v6301_v1, 16  ;;  %v6963_v6 = vpop.f32.mrf.mxu0  ;;  %v3468_v17 = vshll.u32 %v6301_v1, 16 }
 0x309   : > { %v3373_v54 = vmax.f32 %v3357_v30, 0.0  ;;  %v3356_v56 = vadd.f32 %v8751_v41, %v3333_v7  ;;  %v3633_v7 = vld [vmem:[#allocation3 + $0x28] sm:$0xf] }
 0x30a   : > { %v3478_v0 = vor.u32 %v3476_v52, %v3475_v46  ;;  %v3479_v58 = vrot.slane %v3475_v46, 4  ;;  %v3467_v62 = vrot.slane %v3465_v57, 7  ;;  %v3249_v16 = vpop.f32.mrf.mxu0  ;;  %v3636_v52 = vld [vmem:[#allocation3 + $0x2c] sm:$0x1] }
 0x30b   : > { %v6304_v19 = vpack.c.bf16 %v3373_v54, %v3373_v54  ;;  %v3372_v10 = vmax.f32 %v3356_v56, 0.0  ;;  %v8775_v49 = vld [vmem:[#allocation3 + $0x10] sm:$0xff]  }
 0x30c   : > { %v3628_v8 = vsel %vm7744_vm11, %v3478_v0, %v3627_v50  ;;  %v3631_v28 = vsel %vm7754_vm12, %v3479_v58, %v3630_v37  ;;  %v3470_v34 = vor.u32 %v3468_v17, %v3467_v62  ;;  %v3471_v21 = vrot.slane %v3467_v62, 4  ;;  %v6966_v12 = vpop.f32.mrf.mxu0 }
 0x30d   : > { %3629 = vst [vmem:[#allocation3 + $0x20] sm:$0xf] %v3628_v8  ;;  %3632 = vst [vmem:[#allocation3 + $0x24] sm:$0x1] %v3631_v28  ;;  %v3489_v35 = vshrl.u32 %v6304_v19, 16  ;;  %v6303_v47 = vpack.c.bf16 %v3372_v10, %v3372_v10  ;;  %v3336_v11 = vadd.f32 %v6966_v12, %v8720_v22  ;;  %v8786_v55 = vld [vmem:[#allocation3 + $0x8] sm:$0xff]  }
 0x30e   : > { %v3622_v43 = vsel %vm7744_vm11, %v3470_v34, %v3621_v38  ;;  %v3625_v9 = vsel %vm7754_vm12, %v3471_v21, %v3624_v32  ;;  %v3260_v3 = vpop.f32.mrf.mxu0  ;;  %v3846_v53 = vshll.u32 %v8775_v49, 16  ;;  %v3492_v63 = vshll.u32 %v6304_v19, 16  ;;  %7021 = vmatmul.mubr.msk.bf16.vlgmr.msra.gmra.mxu0 %vm3968_vm1, %v8786_v55  ;;  %v8828_v28 = vld [vmem:[%s9634_s6 + $0x20] sm:$0xff]  }
 0x30f   : > { %3623 = vst [vmem:[#allocation3 + $0x18] sm:$0xf] %v3622_v43  ;;  %3626 = vst [vmem:[#allocation3 + $0x1c] sm:$0x1] %v3625_v9  ;;  %v3491_v22 = vrot.slane %v3489_v35, 7  ;;  %v3481_v39 = vshrl.u32 %v6303_v47, 16  ;;  %v3359_v51 = vadd.f32 %v8751_v41, %v3336_v11  ;;  %v3335_v59 = vadd.f32 %v3260_v3, %v8722_v31  ;;  %7024 = vmatprep.mubr.msk.bf16.mxu0 %vm3968_vm1, %v8775_v49 }
 0x310   : > { %v3484_v5 = vshll.u32 %v6303_v47, 16  ;;  %v6967_v44 = vpop.f32.mrf.mxu0  ;;  %v3838_v25 = vshll.u32 %v8786_v55, 16  ;;  %v3842_v1 = vshrl.u32 %v8786_v55, 16  ;;  %7087 = vmatpush3.bf16.msra.mxu0 %v8715_v4  ;;  %v3848_v6 = vrot.slane %v3846_v53, 1  ;;  %v3651_v11 = vld [vmem:[#allocation3 + $0x40] sm:$0xf] }
 0x311   : > { %v3494_v20 = vor.u32 %v3492_v63, %v3491_v22  ;;  %v3495_v50 = vrot.slane %v3491_v22, 4  ;;  %v3483_v30 = vrot.slane %v3481_v39, 7  ;;  %v3375_v46 = vmax.f32 %v3359_v51, 0.0  ;;  %7154 = vmatprep.subr.bf16.mxu0 %v8793_v18  ;;  %v3645_v51 = vld [vmem:[#allocation3 + $0x38] sm:$0xf] }
 0x312   : > { %v3358_v31 = vadd.f32 %v8751_v41, %v3335_v59  ;;  %v3263_v37 = vpop.f32.mrf.mxu0  ;;  %v3840_v57 = vrot.slane %v3838_v25, 1  ;;  %v4349_v38 = vrot.slane %v8786_v55, 1 }
 0x313   : > { %v3640_v54 = vsel %vm7744_vm11, %v3494_v20, %v3639_v61  ;;  %v3643_v56 = vsel %vm7754_vm12, %v3495_v50, %v3642_v45  ;;  %v3486_v24 = vor.u32 %v3484_v5, %v3483_v30  ;;  %v3487_v42 = vrot.slane %v3483_v30, 4 }
 0x314   : > { %3641 = vst [vmem:[#allocation3 + $0x30] sm:$0xf] %v3640_v54  ;;  %3644 = vst [vmem:[#allocation3 + $0x34] sm:$0x1] %v3643_v56  ;;  %v6306_v4 = vpack.c.bf16 %v3375_v46, %v3375_v46  ;;  %v3374_v0 = vmax.f32 %v3358_v31, 0.0  ;;  %v6970_v58 = vpop.f32.mrf.mxu0  ;;  %v3841_v62 = vsel %vm1415_vm15, %v3836_v40, %v3840_v57  ;;  %v3844_v17 = vor.u32 %v3842_v1, %v3840_v57  ;;  %v8812_v32 = vld [vmem:[#allocation3 + $0x20] sm:$0xff]  }
 0x315   : > { %v3634_v16 = vsel %vm7744_vm11, %v3486_v24, %v3633_v7  ;;  %v3637_v19 = vsel %vm7754_vm12, %v3487_v42, %v3636_v52  ;;  %v3338_v10 = vadd.f32 %v6970_v58, %v8726_v2  ;;  %6986 = vmatprep.mubr.msk.bf16.mxu1 %vm3968_vm1, %v3841_v62  ;;  %v8823_v8 = vsel %vm1948_vm0, %v4348_v14, %v4349_v38  ;;  %v3654_v14 = vld [vmem:[#allocation3 + $0x44] sm:$0x1] }
 0x316   : > { %3635 = vst [vmem:[#allocation3 + $0x28] sm:$0xf] %v3634_v16  ;;  %3638 = vst [vmem:[#allocation3 + $0x2c] sm:$0x1] %v3637_v19  ;;  %v3505_v34 = vshrl.u32 %v6306_v4, 16  ;;  %v6305_v21 = vpack.c.bf16 %v3374_v0, %v3374_v0  ;;  %v3274_v12 = vpop.f32.mrf.mxu0  ;;  %v8831_v35 = vsel %vm1415_vm15, %v3844_v17, %v3848_v6  ;;  %v3850_v2 = vshrl.u32 %v8775_v49, 16 }
 0x317   : > { %v3508_v47 = vshll.u32 %v6306_v4, 16  ;;  %v3361_v40 = vadd.f32 %v8751_v41, %v3338_v10  ;;  %v3337_v43 = vadd.f32 %v3274_v12, %v8728_v33  ;;  %6987 = vmatmul.mubr.msk.bf16.vlgmr.msra.gmra.mxu1 %vm3968_vm1, %v8831_v35  ;;  %v8838_v9 = vld [vmem:[#allocation3 + $0x18] sm:$0xff]   ;;  %v3862_v3 = vshll.u32 %v8812_v32, 16 }
 0x318   : > { %v3507_v53 = vrot.slane %v3505_v34, 7  ;;  %v3497_v22 = vshrl.u32 %v6305_v21, 16  ;;  %v3500_v63 = vshll.u32 %v6305_v21, 16  ;;  %7053 = vmatpush3.bf16.msra.mxu1 %v8680_v13  ;;  %v6971_v61 = vpop.f32.mrf.mxu0  ;;  %v3866_v39 = vshrl.u32 %v8812_v32, 16  ;;  %7025 = vmatmul.mubr.msk.bf16.gmra.mxu0 %vm3968_vm1, %v8838_v9  ;;  %v3648_v13 = vld [vmem:[#allocation3 + $0x3c] sm:$0x1] }
 0x319   : > { %v3377_v45 = vmax.f32 %v3361_v40, 0.0  ;;  %v3360_v33 = vadd.f32 %v8751_v41, %v3337_v43  ;;  %v3854_v5 = vshll.u32 %v8838_v9, 16  ;;  %v3858_v59 = vshrl.u32 %v8838_v9, 16  ;;  %7120 = vmatprep.subr.bf16.mxu1 %v8828_v28  ;;  %7028 = vmatprep.mubr.msk.bf16.mxu0 %vm3968_vm1, %v8812_v32  ;;  %v3657_v61 = vld [vmem:[#allocation3 + $0x48] sm:$0xf] }
 0x31a   : > { %v3510_v44 = vor.u32 %v3508_v47, %v3507_v53  ;;  %v3511_v25 = vrot.slane %v3507_v53, 4  ;;  %v3499_v1 = vrot.slane %v3497_v22, 7  ;;  %v3277_v20 = vpop.f32.mrf.mxu0  ;;  %v3864_v50 = vrot.slane %v3862_v3, 1  ;;  %v3666_v47 = vld [vmem:[#allocation3 + $0x54] sm:$0x1] }
 0x31b   : > { %v6308_v30 = vpack.c.bf16 %v3377_v45, %v3377_v45  ;;  %v3376_v7 = vmax.f32 %v3360_v33, 0.0  ;;  %v3852_v46 = vor.u32 %v3850_v2, %v3848_v6  ;;  %v3856_v52 = vrot.slane %v3854_v5, 1  ;;  %v8865_v10 = vld [vmem:[#allocation3 + $0x30] sm:$0xff]   ;;  %v3660_v45 = vld [vmem:[#allocation3 + $0x4c] sm:$0x1] }
 0x31c   : > { %v3652_v31 = vsel %vm7744_vm11, %v3510_v44, %v3651_v11  ;;  %v3655_v37 = vsel %vm7754_vm12, %v3511_v25, %v3654_v14  ;;  %v3502_v57 = vor.u32 %v3500_v63, %v3499_v1  ;;  %v3503_v54 = vrot.slane %v3499_v1, 4  ;;  %v6974_v56 = vpop.f32.mrf.mxu0  ;;  %v3663_v2 = vld [vmem:[#allocation3 + $0x50] sm:$0xf] }
 0x31d   : > { %3653 = vst [vmem:[#allocation3 + $0x40] sm:$0xf] %v3652_v31  ;;  %3656 = vst [vmem:[#allocation3 + $0x44] sm:$0x1] %v3655_v37  ;;  %v3521_v24 = vshrl.u32 %v6308_v30, 16  ;;  %v3524_v42 = vshll.u32 %v6308_v30, 16  ;;  %v6307_v4 = vpack.c.bf16 %v3376_v7, %v3376_v7  ;;  %v3340_v0 = vadd.f32 %v6974_v56, %v8732_v48 }
 0x31e   : > { %v3646_v6 = vsel %vm7744_vm11, %v3502_v57, %v3645_v51  ;;  %v3649_v58 = vsel %vm7754_vm12, %v3503_v54, %v3648_v13  ;;  %v8861_v62 = vsel %vm1415_vm15, %v3852_v46, %v3856_v52  ;;  %v3860_v17 = vor.u32 %v3858_v59, %v3856_v52  ;;  %v3288_v16 = vpop.f32.mrf.mxu0  ;;  %v8863_v19 = vld [vmem:[#allocation3 + $0x28] sm:$0xff]  }
 0x31f   : > { %3647 = vst [vmem:[#allocation3 + $0x38] sm:$0xf] %v3646_v6  ;;  %3650 = vst [vmem:[#allocation3 + $0x3c] sm:$0x1] %v3649_v58  ;;  %v3523_v34 = vrot.slane %v3521_v24, 7  ;;  %v3513_v21 = vshrl.u32 %v6307_v4, 16  ;;  %v3363_v12 = vadd.f32 %v8751_v41, %v3340_v0  ;;  %6990 = vmatprep.mubr.msk.bf16.mxu1 %vm3968_vm1, %v8861_v62  ;;  %v3339_v11 = vadd.f32 %v3288_v16, %v8734_v15 }
 0x320   : > { %v3516_v48 = vshll.u32 %v6307_v4, 16  ;;  %v8872_v40 = vsel %vm1415_vm15, %v3860_v17, %v3864_v50  ;;  %v6975_v43 = vpop.f32.mrf.mxu0  ;;  %v3868_v3 = vor.u32 %v3866_v39, %v3864_v50  ;;  %v3870_v53 = vshll.u32 %v8863_v19, 16  ;;  %7029 = vmatmul.mubr.msk.bf16.gmra.mxu0 %vm3968_vm1, %v8863_v19 }
 0x321   : > { %v3526_v14 = vor.u32 %v3524_v42, %v3523_v34  ;;  %v3527_v22 = vrot.slane %v3523_v34, 4  ;;  %v3515_v63 = vrot.slane %v3513_v21, 7  ;;  %v3379_v51 = vmax.f32 %v3363_v12, 0.0  ;;  %6991 = vmatmul.mubr.msk.bf16.gmra.mxu1 %vm3968_vm1, %v8872_v40  ;;  %7032 = vmatprep.mubr.msk.bf16.mxu0 %vm3968_vm1, %v8865_v10  ;;  %v3675_v34 = vld [vmem:[#allocation3 + $0x60] sm:$0xf] }
 0x322   : > { %v3362_v15 = vadd.f32 %v8751_v41, %v3339_v11  ;;  %v3291_v39 = vpop.f32.mrf.mxu0  ;;  %v3872_v33 = vrot.slane %v3870_v53, 1  ;;  %v3874_v5 = vshrl.u32 %v8863_v19, 16  ;;  %v3878_v59 = vshll.u32 %v8865_v10, 16  ;;  %v3669_v11 = vld [vmem:[#allocation3 + $0x58] sm:$0xf] }
 0x323   : > { %v3664_v44 = vsel %vm7744_vm11, %v3526_v14, %v3663_v2  ;;  %v3667_v25 = vsel %vm7754_vm12, %v3527_v22, %v3666_v47  ;;  %v3518_v1 = vor.u32 %v3516_v48, %v3515_v63  ;;  %v3519_v13 = vrot.slane %v3515_v63, 4  ;;  %v3678_v47 = vld [vmem:[#allocation3 + $0x64] sm:$0x1] }
 0x324   : > { %3665 = vst [vmem:[#allocation3 + $0x50] sm:$0xf] %v3664_v44  ;;  %3668 = vst [vmem:[#allocation3 + $0x54] sm:$0x1] %v3667_v25  ;;  %v6310_v20 = vpack.c.bf16 %v3379_v51, %v3379_v51  ;;  %v3378_v50 = vmax.f32 %v3362_v15, 0.0  ;;  %v6978_v30 = vpop.f32.mrf.mxu0  ;;  %v8889_v7 = vsel %vm1415_vm15, %v3868_v3, %v3872_v33  ;;  %v3876_v46 = vor.u32 %v3874_v5, %v3872_v33  ;;  %v8891_v52 = vld [vmem:[#allocation3 + $0x40] sm:$0xff]  }
 0x325   : > { %v3658_v31 = vsel %vm7744_vm11, %v3518_v1, %v3657_v61  ;;  %v3661_v37 = vsel %vm7754_vm12, %v3519_v13, %v3660_v45  ;;  %v3342_v57 = vadd.f32 %v6978_v30, %v8738_v27  ;;  %6994 = vmatprep.mubr.msk.bf16.mxu1 %vm3968_vm1, %v8889_v7  ;;  %v3880_v54 = vrot.slane %v3878_v59, 1  ;;  %v3672_v61 = vld [vmem:[#allocation3 + $0x5c] sm:$0x1] }
 0x326   : > { %3659 = vst [vmem:[#allocation3 + $0x48] sm:$0xf] %v3658_v31  ;;  %3662 = vst [vmem:[#allocation3 + $0x4c] sm:$0x1] %v3661_v37  ;;  %v3537_v56 = vshrl.u32 %v6310_v20, 16  ;;  %v3540_v24 = vshll.u32 %v6310_v20, 16  ;;  %v6309_v42 = vpack.c.bf16 %v3378_v50, %v3378_v50  ;;  %v3302_v4 = vpop.f32.mrf.mxu0 }
 0x327   : > { %v3365_v0 = vadd.f32 %v8751_v41, %v3342_v57  ;;  %v3341_v6 = vadd.f32 %v3302_v4, %v8740_v60  ;;  %v8903_v58 = vsel %vm1415_vm15, %v3876_v46, %v3880_v54  ;;  %v8905_v17 = vld [vmem:[#allocation3 + $0x38] sm:$0xff]   ;;  %v3882_v27 = vshrl.u32 %v8865_v10, 16  ;;  %v3687_v4 = vld [vmem:[#allocation3 + $0x70] sm:$0xf] }
 0x328   : > { %v3539_v16 = vrot.slane %v3537_v56, 7  ;;  %v3529_v21 = vshrl.u32 %v6309_v42, 16  ;;  %v3532_v48 = vshll.u32 %v6309_v42, 16  ;;  %v6979_v12 = vpop.f32.mrf.mxu0  ;;  %v3894_v2 = vshll.u32 %v8891_v52, 16  ;;  %7033 = vmatmul.mubr.msk.bf16.gmra.mxu0 %vm3968_vm1, %v8905_v17 }
 0x329   : > { %v3381_v43 = vmax.f32 %v3365_v0, 0.0  ;;  %v3364_v3 = vadd.f32 %v8751_v41, %v3341_v6  ;;  %6995 = vmatmul.mubr.msk.bf16.gmra.mxu1 %vm3968_vm1, %v8903_v58  ;;  %v3884_v60 = vor.u32 %v3882_v27, %v3880_v54  ;;  %v3886_v53 = vshll.u32 %v8905_v17, 16  ;;  %7036 = vmatprep.mubr.msk.bf16.mxu0 %vm3968_vm1, %v8891_v52  ;;  %v3690_v27 = vld [vmem:[#allocation3 + $0x74] sm:$0x1] }
 0x32a   : > { %v3542_v14 = vor.u32 %v3540_v24, %v3539_v16  ;;  %v3543_v22 = vrot.slane %v3539_v16, 4  ;;  %v3531_v63 = vrot.slane %v3529_v21, 7  ;;  %v3305_v51 = vpop.f32.mrf.mxu0  ;;  %v3890_v45 = vshrl.u32 %v8905_v17, 16 }
 0x32b   : > { %v6312_v15 = vpack.c.bf16 %v3381_v43, %v3381_v43  ;;  %v3380_v39 = vmax.f32 %v3364_v3, 0.0  ;;  %v3888_v33 = vrot.slane %v3886_v53, 1  ;;  %v3896_v5 = vrot.slane %v3894_v2, 1 }
 0x32c   : > { %v3676_v59 = vsel %vm7744_vm11, %v3542_v14, %v3675_v34  ;;  %v3679_v44 = vsel %vm7754_vm12, %v3543_v22, %v3678_v47  ;;  %v3534_v25 = vor.u32 %v3532_v48, %v3531_v63  ;;  %v3535_v1 = vrot.slane %v3531_v63, 4  ;;  %v6982_v13 = vpop.f32.mrf.mxu0  ;;  %v8939_v48 = vld [vmem:[#allocation3 + $0x50] sm:$0xff]  }
 0x32d   : > { %3677 = vst [vmem:[#allocation3 + $0x60] sm:$0xf] %v3676_v59  ;;  %3680 = vst [vmem:[#allocation3 + $0x64] sm:$0x1] %v3679_v44  ;;  %v3553_v20 = vshrl.u32 %v6312_v15, 16  ;;  %v3556_v50 = vshll.u32 %v6312_v15, 16  ;;  %v6311_v30 = vpack.c.bf16 %v3380_v39, %v3380_v39  ;;  %v3344_v46 = vadd.f32 %v6982_v13, %v8744_v23 }
 0x32e   : > { %v3670_v31 = vsel %vm7744_vm11, %v3534_v25, %v3669_v11  ;;  %v3673_v37 = vsel %vm7754_vm12, %v3535_v1, %v3672_v61  ;;  %v8928_v57 = vsel %vm1415_vm15, %v3884_v60, %v3888_v33  ;;  %v3892_v54 = vor.u32 %v3890_v45, %v3888_v33  ;;  %v3316_v56 = vpop.f32.mrf.mxu0  ;;  %v8930_v24 = vld [vmem:[#allocation3 + $0x48] sm:$0xff]  }
 0x32f   : > { %3671 = vst [vmem:[#allocation3 + $0x58] sm:$0xf] %v3670_v31  ;;  %3674 = vst [vmem:[#allocation3 + $0x5c] sm:$0x1] %v3673_v37  ;;  %v3555_v42 = vrot.slane %v3553_v20, 7  ;;  %v3545_v0 = vshrl.u32 %v6311_v30, 16  ;;  %v3367_v23 = vadd.f32 %v8751_v41, %v3344_v46  ;;  %6998 = vmatprep.mubr.msk.bf16.mxu1 %vm3968_vm1, %v8928_v57  ;;  %v3343_v16 = vadd.f32 %v3316_v56, %v8746_v29 }
 0x330   : > { %v3548_v6 = vshll.u32 %v6311_v30, 16  ;;  %v8937_v34 = vsel %vm1415_vm15, %v3892_v54, %v3896_v5  ;;  %v6983_v21 = vpop.f32.mrf.mxu0  ;;  %v3898_v12 = vshrl.u32 %v8891_v52, 16  ;;  %v3902_v2 = vshll.u32 %v8930_v24, 16  ;;  %7037 = vmatmul.mubr.msk.bf16.gmra.mxu0 %vm3968_vm1, %v8930_v24  ;;  %v3681_v29 = vld [vmem:[#allocation3 + $0x68] sm:$0xf] }
 0x331   : > { %v3558_v47 = vor.u32 %v3556_v50, %v3555_v42  ;;  %v3559_v11 = vrot.slane %v3555_v42, 4  ;;  %v3547_v43 = vrot.slane %v3545_v0, 7  ;;  %v3383_v3 = vmax.f32 %v3367_v23, 0.0  ;;  %6999 = vmatmul.mubr.msk.bf16.gmra.mxu1 %vm3968_vm1, %v8937_v34  ;;  %v3684_v60 = vld [vmem:[#allocation3 + $0x6c] sm:$0x1]  ;;  %7040 = vmatprep.mubr.msk.bf16.mxu0 %vm3968_vm1, %v8939_v48 }
 0x332   : > { %v3366_v53 = vadd.f32 %v8751_v41, %v3343_v16  ;;  %v3319_v14 = vpop.f32.mrf.mxu0  ;;  %v3900_v22 = vor.u32 %v3898_v12, %v3896_v5  ;;  %v3904_v63 = vrot.slane %v3902_v2, 1  ;;  %v3906_v61 = vshrl.u32 %v8930_v24, 16  ;;  %v3699_v30 = vld [vmem:[#allocation3 + $0x80] sm:$0xf]  ;;  %v3702_v56 = vld [vmem:[#allocation3 + $0x84] sm:$0x1] }
 0x333   : > { %v3688_v51 = vsel %vm7744_vm11, %v3558_v47, %v3687_v4  ;;  %v3691_v45 = vsel %vm7754_vm12, %v3559_v11, %v3690_v27  ;;  %v3550_v15 = vor.u32 %v3548_v6, %v3547_v43  ;;  %v3551_v39 = vrot.slane %v3547_v43, 4  ;;  %v3693_v4 = vld [vmem:[#allocation3 + $0x78] sm:$0xf]  ;;  %v3696_v47 = vld [vmem:[#allocation3 + $0x7c] sm:$0x1] }
 0x334   : > { %3689 = vst [vmem:[#allocation3 + $0x70] sm:$0xf] %v3688_v51  ;;  %3692 = vst [vmem:[#allocation3 + $0x74] sm:$0x1] %v3691_v45  ;;  %v6314_v33 = vpack.c.bf16 %v3383_v3, %v3383_v3  ;;  %v3382_v41 = vmax.f32 %v3366_v53, 0.0  ;;  %v8956_v59 = vsel %vm1415_vm15, %v3900_v22, %v3904_v63  ;;  %v3908_v25 = vor.u32 %v3906_v61, %v3904_v63  ;;  %v8965_v13 = vld [vmem:[#allocation3 + $0x60] sm:$0xff]  }
 0x335   : > { %v3682_v5 = vsel %vm7744_vm11, %v3550_v15, %v3681_v29  ;;  %v3685_v44 = vsel %vm7754_vm12, %v3551_v39, %v3684_v60  ;;  %7002 = vmatprep.mubr.msk.bf16.mxu1 %vm3968_vm1, %v8956_v59  ;;  %v3910_v1 = vshll.u32 %v8939_v48, 16  ;;  %v3914_v6 = vshrl.u32 %v8939_v48, 16 }
 0x336   : > { %3683 = vst [vmem:[#allocation3 + $0x68] sm:$0xf] %v3682_v5  ;;  %3686 = vst [vmem:[#allocation3 + $0x6c] sm:$0x1] %v3685_v44  ;;  %v3569_v20 = vshrl.u32 %v6314_v33, 16  ;;  %v6313_v50 = vpack.c.bf16 %v3382_v41, %v3382_v41  ;;  %v8967_v31 = vld [vmem:[#allocation3 + $0x58] sm:$0xff]  }
 0x337   : > { %v3912_v46 = vrot.slane %v3910_v1, 1  ;;  %v3572_v54 = vshll.u32 %v6314_v33, 16  ;;  %v3918_v23 = vshll.u32 %v8967_v31, 16  ;;  %v3926_v27 = vshll.u32 %v8965_v13, 16 }
 0x338   : > { %v3571_v37 = vrot.slane %v3569_v20, 7  ;;  %v3561_v42 = vshrl.u32 %v6313_v50, 16  ;;  %7041 = vmatmul.mubr.msk.bf16.gmra.mxu0 %vm3968_vm1, %v8967_v31  ;;  %v3564_v2 = vshll.u32 %v6313_v50, 16  ;;  %v3922_v3 = vshrl.u32 %v8967_v31, 16 }
 0x339   : > { %v8970_v0 = vsel %vm1415_vm15, %v3908_v25, %v3912_v46  ;;  %7044 = vmatprep.mubr.msk.bf16.mxu0 %vm3968_vm1, %v8965_v13  ;;  %v3916_v11 = vor.u32 %v3914_v6, %v3912_v46  ;;  %v3920_v43 = vrot.slane %v3918_v23, 1  ;;  %v3928_v51 = vrot.slane %v3926_v27, 1 }
 0x33a   : > { %v3574_v16 = vor.u32 %v3572_v54, %v3571_v37  ;;  %v3575_v21 = vrot.slane %v3571_v37, 4  ;;  %v3563_v12 = vrot.slane %v3561_v42, 7  ;;  %7003 = vmatmul.mubr.msk.bf16.gmra.mxu1 %vm3968_vm1, %v8970_v0  ;;  %v3930_v41 = vshrl.u32 %v8965_v13, 16 }
 0x33b   : > { %v8986_v22 = vld [vmem:[#allocation3 + $0x70] sm:$0xff]   ;;  %v8989_v63 = vsel %vm1415_vm15, %v3916_v11, %v3920_v43  ;;  %v3924_v61 = vor.u32 %v3922_v3, %v3920_v43  ;;  %v4353_v11 = vrot.slane %v8838_v9, 1  ;;  %v4351_v43 = vrot.slane %v8775_v49, 1  ;;  %v9066_v3 = vld [vmem:[%s9634_s6 + $0x30] sm:$0xff]  }
 0x33c   : > { %v3700_v29 = vsel %vm7744_vm11, %v3574_v16, %v3699_v30  ;;  %v3703_v60 = vsel %vm7754_vm12, %v3575_v21, %v3702_v56  ;;  %v3566_v53 = vor.u32 %v3564_v2, %v3563_v12  ;;  %v3567_v14 = vrot.slane %v3563_v12, 4  ;;  %7006 = vmatprep.mubr.msk.bf16.mxu1 %vm3968_vm1, %v8989_v63 }
 0x33d   : > { %3701 = vst [vmem:[#allocation3 + $0x80] sm:$0xf] %v3700_v29  ;;  %3704 = vst [vmem:[#allocation3 + $0x84] sm:$0x1] %v3703_v60  ;;  %v8991_v45 = vld [vmem:[#allocation3 + $0x68] sm:$0xff]   ;;  %v9000_v33 = vsel %vm1415_vm15, %v3924_v61, %v3928_v51  ;;  %v3932_v26 = vor.u32 %v3930_v41, %v3928_v51  ;;  %v3942_v25 = vshll.u32 %v8986_v22, 16  ;;  %v4352_v29 = vsel %vm1948_vm0, %v4349_v38, %v4351_v43 }
 0x33e   : > { %v3694_v15 = vsel %vm7744_vm11, %v3566_v53, %v3693_v4  ;;  %v3697_v39 = vsel %vm7754_vm12, %v3567_v14, %v3696_v47  ;;  %v3934_v5 = vshll.u32 %v8991_v45, 16  ;;  %v3938_v36 = vshrl.u32 %v8991_v45, 16  ;;  %v9050_v47 = vld [vmem:[%s9634_s6 + $0x38] sm:$0xff]  }
 0x33f   : > { %3695 = vst [vmem:[#allocation3 + $0x78] sm:$0xf] %v3694_v15  ;;  %3698 = vst [vmem:[#allocation3 + $0x7c] sm:$0x1] %v3697_v39  ;;  %v3944_v30 = vrot.slane %v3942_v25, 1  ;;  %v3946_v56 = vshrl.u32 %v8986_v22, 16 }
 0x340   : > { %7045 = vmatmul.mubr.msk.bf16.gmra.mxu0 %vm3968_vm1, %v8991_v45  ;;  %v3936_v44 = vrot.slane %v3934_v5, 1  ;;  %v4355_v38 = vrot.slane %v8812_v32, 1  ;;  %v4361_v60 = vrot.slane %v8905_v17, 1  ;;  %v4359_v53 = vrot.slane %v8865_v10, 1 }
 0x341   : > { %7048 = vmatprep.mubr.msk.bf16.mxu0 %vm3968_vm1, %v8986_v22  ;;  %v3948_v6 = vor.u32 %v3946_v56, %v3944_v30  ;;  %v4365_v51 = vrot.slane %v8930_v24, 1  ;;  %v4363_v15 = vrot.slane %v8891_v52, 1  ;;  %v4369_v5 = vrot.slane %v8967_v31, 1 }
 0x342   : > { %7007 = vmatmul.mubr.msk.bf16.gmra.mxu1 %vm3968_vm1, %v9000_v33  ;;  %v9013_v1 = vsel %vm1415_vm15, %v3932_v26, %v3936_v44  ;;  %v3940_v20 = vor.u32 %v3938_v36, %v3936_v44  ;;  %v9109_v61 = vsel %vm1948_vm0, %v4359_v53, %v4361_v60  ;;  %v4367_v26 = vrot.slane %v8939_v48, 1 }
 0x343   : > { %7010 = vmatprep.mubr.msk.bf16.mxu1 %vm3968_vm1, %v9013_v1  ;;  %v9118_v39 = vsel %vm1948_vm0, %v4361_v60, %v4363_v15  ;;  %v9125_v41 = vsel %vm1948_vm0, %v4363_v15, %v4365_v51  ;;  %v4373_v25 = vrot.slane %v8991_v45, 1 }
 0x344   : > { %v9017_v50 = vld [vmem:[#allocation3 + $0x80] sm:$0xf]  ;;  %v9026_v54 = vsel %vm1415_vm15, %v3940_v20, %v3944_v30  ;;  %v9134_v44 = vsel %vm1948_vm0, %v4365_v51, %v4367_v26  ;;  %v9141_v36 = vsel %vm1948_vm0, %v4367_v26, %v4369_v5  ;;  %v4371_v20 = vrot.slane %v8965_v13, 1 }
 0x345   : > { %v9021_v46 = vcombine.low %v9017_v50, %v9017_v50 }
 0x346   : > { %v9023_v37 = vld [vmem:[#allocation3 + $0x78] sm:$0xff]   ;;  %v9150_v30 = vsel %vm1948_vm0, %v4369_v5, %v4371_v20  ;;  %v9157_v56 = vsel %vm1948_vm0, %v4371_v20, %v4373_v25 }
 0x347   : > { %v3950_v42 = vshll.u32 %v9023_v37, 16  ;;  %v3958_v4 = vshll.u32 %v9021_v46, 16  ;;  %v3954_v27 = vshrl.u32 %v9023_v37, 16 }
 0x348   : > { %7049 = vmatmul.mubr.msk.bf16.gmra.mxu0 %vm3968_vm1, %v9023_v37 }
 0x349   : > { %7088 = vmatprep.mubr.msk.bf16.mxu0 %vm3968_vm1, %v8786_v55  ;;  %v3952_v23 = vrot.slane %v3950_v42, 1  ;;  %v3960_v12 = vrot.slane %v3958_v4, 1  ;;  %v4357_v55 = vrot.slane %v8863_v19, 1  ;;  %v3738_v42 = vld [vmem:[#allocation3 + $0x84] sm:$0xf]  ;;  %v4377_v4 = vrot.slane %v9023_v37, 1 }
 0x34a   : > { %7011 = vmatmul.mubr.msk.bf16.gmra.mxu1 %vm3968_vm1, %v9026_v54 }
 0x34b   : > { %v9039_v16 = vsel %vm1415_vm15, %v3948_v6, %v3952_v23  ;;  %v9041_v21 = vor.u32 %v3954_v27, %v3952_v23  ;;  %v9102_v14 = vsel %vm1948_vm0, %v4357_v55, %v4359_v53  ;;  %v4375_v6 = vrot.slane %v8986_v22, 1 }
 0x34c   : > { %7014 = vmatprep.mubr.msk.bf16.mxu1 %vm3968_vm1, %v9039_v16  ;;  %v9166_v23 = vcombine.low %v9017_v50, %v3738_v42  ;;  %v4379_v50 = vrot.slane %v9021_v46, 1  ;;  %v9238_v46 = vld [vmem:[#allocation3 + $0x88] sm:$0xf] }
 0x34d   : > { %v3961_v2 = vsel %vm1415_vm15, %v9041_v21, %v3960_v12  ;;  %v9169_v27 = vsel %vm1948_vm0, %v4373_v25, %v4375_v6  ;;  %v9176_v12 = vsel %vm1948_vm0, %v4375_v6, %v4377_v4 }
 0x34e   : > { %v4782_v51 = vshrl.u32 %v9166_v23, 16 }
 0x350   : > { %7089 = vmatmul.mubr.msk.bf16.vlgmr.msra.gmra.mxu0 %vm3968_vm1, %v8775_v49 }
 0x351   : > { %7092 = vmatprep.mubr.msk.bf16.mxu0 %vm3968_vm1, %v8838_v9  ;;  %7155 = vmatpush3.bf16.msra.mxu0 %v8793_v18  ;;  %v9075_v18 = vsel %vm1948_vm0, %v4351_v43, %v4353_v11 }
 0x352   : > { %7015 = vmatmul.mubr.msk.bf16.gmra.mxu1 %vm3968_vm1, %v3961_v2  ;;  %7222 = vmatprep.subr.bf16.mxu0 %v9050_v47  ;;  %v4380_v2 = vsel %vm1948_vm0, %v4377_v4, %v4379_v50 }
 0x353   : > { %7054 = vmatprep.mubr.msk.bf16.mxu1 %vm3968_vm1, %v8823_v8  ;;  %v9086_v8 = vsel %vm1948_vm0, %v4353_v11, %v4355_v38  ;;  %v7373_v11 = vld [vmem:[%s9634_s6 + $0x40] sm:$0xff]  }
 0x358   : > { %7093 = vmatmul.mubr.msk.bf16.gmra.mxu0 %vm3968_vm1, %v8812_v32 }
 0x359   : > { %7096 = vmatprep.mubr.msk.bf16.mxu0 %vm3968_vm1, %v8863_v19 }
 0x35a   : > { %7055 = vmatmul.mubr.msk.bf16.vlgmr.msra.gmra.mxu1 %vm3968_vm1, %v4352_v29 }
 0x35b   : > { %7121 = vmatpush3.bf16.msra.mxu1 %v8828_v28  ;;  %7058 = vmatprep.mubr.msk.bf16.mxu1 %vm3968_vm1, %v9075_v18  ;;  %v9093_v28 = vsel %vm1948_vm0, %v4355_v38, %v4357_v55 }
 0x35c   : > { %7188 = vmatprep.subr.bf16.mxu1 %v9066_v3 }
 0x360   : > { %7097 = vmatmul.mubr.msk.bf16.gmra.mxu0 %vm3968_vm1, %v8865_v10 }
 0x361   : > { %7100 = vmatprep.mubr.msk.bf16.mxu0 %vm3968_vm1, %v8905_v17 }
 0x362   : > { %7059 = vmatmul.mubr.msk.bf16.gmra.mxu1 %vm3968_vm1, %v9086_v8 }
 0x363   : > { %7062 = vmatprep.mubr.msk.bf16.mxu1 %vm3968_vm1, %v9093_v28 }
 0x368   : > { %7101 = vmatmul.mubr.msk.bf16.gmra.mxu0 %vm3968_vm1, %v8891_v52 }
 0x369   : > { %7104 = vmatprep.mubr.msk.bf16.mxu0 %vm3968_vm1, %v8930_v24 }
 0x36a   : > { %7063 = vmatmul.mubr.msk.bf16.gmra.mxu1 %vm3968_vm1, %v9102_v14 }
 0x36b   : > { %7066 = vmatprep.mubr.msk.bf16.mxu1 %vm3968_vm1, %v9109_v61 }
 0x370   : > { %7105 = vmatmul.mubr.msk.bf16.gmra.mxu0 %vm3968_vm1, %v8939_v48 }
 0x371   : > { %7108 = vmatprep.mubr.msk.bf16.mxu0 %vm3968_vm1, %v8967_v31 }
 0x372   : > { %7067 = vmatmul.mubr.msk.bf16.gmra.mxu1 %vm3968_vm1, %v9118_v39 }
 0x373   : > { %7070 = vmatprep.mubr.msk.bf16.mxu1 %vm3968_vm1, %v9125_v41 }
 0x378   : > { %7109 = vmatmul.mubr.msk.bf16.gmra.mxu0 %vm3968_vm1, %v8965_v13 }
 0x379   : > { %7112 = vmatprep.mubr.msk.bf16.mxu0 %vm3968_vm1, %v8991_v45 }
 0x37a   : > { %7071 = vmatmul.mubr.msk.bf16.gmra.mxu1 %vm3968_vm1, %v9134_v44 }
 0x37b   : > { %7074 = vmatprep.mubr.msk.bf16.mxu1 %vm3968_vm1, %v9141_v36 }
 0x380   : > { %7113 = vmatmul.mubr.msk.bf16.gmra.mxu0 %vm3968_vm1, %v8986_v22 }
 0x381   : > { %7116 = vmatprep.mubr.msk.bf16.mxu0 %vm3968_vm1, %v9023_v37 }
 0x382   : > { %7075 = vmatmul.mubr.msk.bf16.gmra.mxu1 %vm3968_vm1, %v9150_v30 }
 0x383   : > { %7078 = vmatprep.mubr.msk.bf16.mxu1 %vm3968_vm1, %v9157_v56 }
 0x388   : > { %7117 = vmatmul.mubr.msk.bf16.gmra.mxu0 %vm3968_vm1, %v9166_v23 }
 0x389   : > { %7156 = vmatprep.mubr.msk.bf16.mxu0 %vm3968_vm1, %v4352_v29 }
 0x38a   : > { %7079 = vmatmul.mubr.msk.bf16.gmra.mxu1 %vm3968_vm1, %v9169_v27 }
 0x38b   : > { %7082 = vmatprep.mubr.msk.bf16.mxu1 %vm3968_vm1, %v9176_v12 }
 0x390   : > { %7157 = vmatmul.mubr.msk.bf16.vlgmr.msra.gmra.mxu0 %vm3968_vm1, %v9075_v18 }
 0x391   : > { %7160 = vmatprep.mubr.msk.bf16.mxu0 %vm3968_vm1, %v9086_v8  ;;  %7223 = vmatpush3.bf16.msra.mxu0 %v9050_v47  ;;  %v6181_v47 = vcombine.low %v9238_v46, %v9238_v46 }
 0x392   : > { %7083 = vmatmul.mubr.msk.bf16.gmra.mxu1 %vm3968_vm1, %v4380_v2 }
 0x393   : > { %7122 = vmatprep.mubr.msk.bf16.mxu1 %vm3968_vm1, %v8831_v35  ;;  %v9236_v35 = vrot.slane %v9166_v23, 1  ;;  %v4968_v29 = vrot.slane %v6181_v47, 1  ;;  %v4786_v60 = vshll.u32 %v6181_v47, 16 }
 0x395   : > { %v9246_v43 = vsel %vm1948_vm0, %v4377_v4, %v9236_v35  ;;  %v4969_v38 = vsel %vm1948_vm0, %v9236_v35, %v4968_v29  ;;  %v4788_v5 = vrot.slane %v4786_v60, 1 }
 0x398   : > { %7161 = vmatmul.mubr.msk.bf16.gmra.mxu0 %vm3968_vm1, %v9093_v28 }
 0x399   : > { %7164 = vmatprep.mubr.msk.bf16.mxu0 %vm3968_vm1, %v9102_v14 }
 0x39a   : > { %7123 = vmatmul.mubr.msk.bf16.vlgmr.msra.gmra.mxu1 %vm3968_vm1, %v8861_v62 }
 0x39b   : > { %7189 = vmatpush3.bf16.msra.mxu1 %v9066_v3  ;;  %7126 = vmatprep.mubr.msk.bf16.mxu1 %vm3968_vm1, %v8872_v40  ;;  %v4778_v3 = vshll.u32 %v9166_v23, 16 }
 0x39c   : > { %7256 = vmatprep.subr.bf16.mxu1 %v7373_v11 }
 0x39d   : > { %v4780_v55 = vrot.slane %v4778_v3, 1 }
 0x39f   : > { %v9262_v53 = vsel %vm1415_vm15, %v9041_v21, %v4780_v55  ;;  %v9269_v15 = vor.u32 %v4782_v51, %v4780_v55 }
 0x3a0   : > { %7165 = vmatmul.mubr.msk.bf16.gmra.mxu0 %vm3968_vm1, %v9109_v61 }
 0x3a1   : > { %7168 = vmatprep.mubr.msk.bf16.mxu0 %vm3968_vm1, %v9118_v39  ;;  %v4789_v25 = vsel %vm1415_vm15, %v9269_v15, %v4788_v5 }
 0x3a2   : > { %7127 = vmatmul.mubr.msk.bf16.gmra.mxu1 %vm3968_vm1, %v8889_v7 }
 0x3a3   : > { %7130 = vmatprep.mubr.msk.bf16.mxu1 %vm3968_vm1, %v8903_v58 }
 0x3a8   : > { %7169 = vmatmul.mubr.msk.bf16.gmra.mxu0 %vm3968_vm1, %v9125_v41 }
 0x3a9   : > { %7172 = vmatprep.mubr.msk.bf16.mxu0 %vm3968_vm1, %v9134_v44 }
 0x3aa   : > { %7131 = vmatmul.mubr.msk.bf16.gmra.mxu1 %vm3968_vm1, %v8928_v57 }
 0x3ab   : > { %7134 = vmatprep.mubr.msk.bf16.mxu1 %vm3968_vm1, %v8937_v34 }
 0x3b0   : > { %7173 = vmatmul.mubr.msk.bf16.gmra.mxu0 %vm3968_vm1, %v9141_v36 }
 0x3b1   : > { %7176 = vmatprep.mubr.msk.bf16.mxu0 %vm3968_vm1, %v9150_v30 }
 0x3b2   : > { %7135 = vmatmul.mubr.msk.bf16.gmra.mxu1 %vm3968_vm1, %v8956_v59 }
 0x3b3   : > { %7138 = vmatprep.mubr.msk.bf16.mxu1 %vm3968_vm1, %v8970_v0 }
 0x3b8   : > { %7177 = vmatmul.mubr.msk.bf16.gmra.mxu0 %vm3968_vm1, %v9157_v56 }
 0x3b9   : > { %7180 = vmatprep.mubr.msk.bf16.mxu0 %vm3968_vm1, %v9169_v27 }
 0x3ba   : > { %7139 = vmatmul.mubr.msk.bf16.gmra.mxu1 %vm3968_vm1, %v8989_v63 }
 0x3bb   : > { %7142 = vmatprep.mubr.msk.bf16.mxu1 %vm3968_vm1, %v9000_v33 }
 0x3c0   : > { %7181 = vmatmul.mubr.msk.bf16.gmra.mxu0 %vm3968_vm1, %v9176_v12 }
 0x3c1   : > { %7184 = vmatprep.mubr.msk.bf16.mxu0 %vm3968_vm1, %v9246_v43 }
 0x3c2   : > { %7143 = vmatmul.mubr.msk.bf16.gmra.mxu1 %vm3968_vm1, %v9013_v1 }
 0x3c3   : > { %7146 = vmatprep.mubr.msk.bf16.mxu1 %vm3968_vm1, %v9026_v54 }
 0x3c8   : > { %7185 = vmatmul.mubr.msk.bf16.gmra.mxu0 %vm3968_vm1, %v4969_v38 }
 0x3c9   : > { %7224 = vmatprep.mubr.msk.bf16.mxu0 %vm3968_vm1, %v8861_v62 }
 0x3ca   : > { %7147 = vmatmul.mubr.msk.bf16.gmra.mxu1 %vm3968_vm1, %v9039_v16 }
 0x3cb   : > { %7150 = vmatprep.mubr.msk.bf16.mxu1 %vm3968_vm1, %v9262_v53 }
 0x3ce   : > { %v7022_v26 = vpop.f32.mrf.mxu0 }
 0x3d0   : > { %7225 = vmatmul.mubr.msk.bf16.vlgmr.msra.gmra.mxu0 %vm3968_vm1, %v8872_v40  ;;  %v4234_v62 = vpop.f32.mrf.mxu0 }
 0x3d1   : > { %7228 = vmatprep.mubr.msk.bf16.mxu0 %vm3968_vm1, %v8889_v7 }
 0x3d2   : > { %7151 = vmatmul.mubr.msk.bf16.gmra.mxu1 %vm3968_vm1, %v4789_v25  ;;  %v7023_v21 = vpop.f32.mrf.mxu0 }
 0x3d3   : > { %7190 = vmatprep.mubr.msk.bf16.mxu1 %vm3968_vm1, %v8775_v49 }
 0x3d4   : > { %v4237_v20 = vpop.f32.mrf.mxu0 }
 0x3d7   : > { %v6988_v42 = vpop.f32.mrf.mxu1 }
 0x3d8   : > { %v9280_v4 = vadd.f32 %v7022_v26, %v6988_v42  ;;  %v7026_v6 = vpop.f32.mrf.mxu0  ;;  %7229 = vmatmul.mubr.msk.bf16.gmra.mxu0 %vm3968_vm1, %v8903_v58 }
 0x3d9   : > { %v4051_v50 = vpop.f32.mrf.mxu1  ;;  %7232 = vmatprep.mubr.msk.bf16.mxu0 %vm3968_vm1, %v8928_v57 }
 0x3da   : > { %7191 = vmatmul.mubr.msk.bf16.vlgmr.msra.gmra.mxu1 %vm3968_vm1, %v8838_v9  ;;  %v9286_v40 = vadd.f32 %v4234_v62, %v4051_v50  ;;  %v4248_v49 = vpop.f32.mrf.mxu0 }
 0x3db   : > { %7257 = vmatpush3.bf16.msra.mxu1 %v7373_v11  ;;  %7194 = vmatprep.mubr.msk.bf16.mxu1 %vm3968_vm1, %v8812_v32  ;;  %v6989_v7 = vpop.f32.mrf.mxu1 }
 0x3dc   : > { %v7027_v2 = vpop.f32.mrf.mxu0 }
 0x3dd   : > { %v4054_v47 = vpop.f32.mrf.mxu1 }
 0x3de   : > { %v4251_v3 = vpop.f32.mrf.mxu0 }
 0x3e0   : > { %v7030_v58 = vpop.f32.mrf.mxu0  ;;  %7233 = vmatmul.mubr.msk.bf16.gmra.mxu0 %vm3968_vm1, %v8937_v34 }
 0x3e1   : > { %v6992_v29 = vpop.f32.mrf.mxu1  ;;  %7236 = vmatprep.mubr.msk.bf16.mxu0 %vm3968_vm1, %v8956_v59 }
 0x3e2   : > { %v9294_v9 = vadd.f32 %v7026_v6, %v6992_v29  ;;  %7195 = vmatmul.mubr.msk.bf16.gmra.mxu1 %vm3968_vm1, %v8863_v19  ;;  %v4262_v57 = vpop.f32.mrf.mxu0  ;;  %v3740_v6 = vld [vmem:[#allocation3 + $0x8c] sm:$0xf] }
 0x3e3   : > { %7198 = vmatprep.mubr.msk.bf16.mxu1 %vm3968_vm1, %v8865_v10  ;;  %v4065_v32 = vpop.f32.mrf.mxu1 }
 0x3e4   : > { %v9302_v11 = vadd.f32 %v4248_v49, %v4065_v32  ;;  %v7031_v38 = vpop.f32.mrf.mxu0 }
 0x3e5   : > { %v6993_v55 = vpop.f32.mrf.mxu1 }
 0x3e6   : > { %v4265_v51 = vpop.f32.mrf.mxu0 }
 0x3e7   : > { %v4068_v60 = vpop.f32.mrf.mxu1 }
 0x3e8   : > { %v7034_v5 = vpop.f32.mrf.mxu0  ;;  %7237 = vmatmul.mubr.msk.bf16.gmra.mxu0 %vm3968_vm1, %v8970_v0 }
 0x3e9   : > { %v6996_v34 = vpop.f32.mrf.mxu1  ;;  %7240 = vmatprep.mubr.msk.bf16.mxu0 %vm3968_vm1, %v8989_v63 }
 0x3ea   : > { %v9306_v19 = vadd.f32 %v7030_v58, %v6996_v34  ;;  %7199 = vmatmul.mubr.msk.bf16.gmra.mxu1 %vm3968_vm1, %v8905_v17  ;;  %v4276_v59 = vpop.f32.mrf.mxu0 }
 0x3eb   : > { %7202 = vmatprep.mubr.msk.bf16.mxu1 %vm3968_vm1, %v8891_v52  ;;  %v4079_v10 = vpop.f32.mrf.mxu1 }
 0x3ec   : > { %v9314_v26 = vadd.f32 %v4262_v57, %v4079_v10  ;;  %v7035_v62 = vpop.f32.mrf.mxu0 }
 0x3ed   : > { %v6997_v25 = vpop.f32.mrf.mxu1 }
 0x3ee   : > { %v4279_v20 = vpop.f32.mrf.mxu0 }
 0x3ef   : > { %v4082_v21 = vpop.f32.mrf.mxu1 }
 0x3f0   : > { %v7038_v42 = vpop.f32.mrf.mxu0  ;;  %7241 = vmatmul.mubr.msk.bf16.gmra.mxu0 %vm3968_vm1, %v9000_v33  ;;  %v9329_v33 = vcombine.low %v9238_v46, %v3740_v6 }
 0x3f1   : > { %v7000_v0 = vpop.f32.mrf.mxu1  ;;  %7244 = vmatprep.mubr.msk.bf16.mxu0 %vm3968_vm1, %v9013_v1 }
 0x3f2   : > { %v9318_v17 = vadd.f32 %v7034_v5, %v7000_v0  ;;  %7203 = vmatmul.mubr.msk.bf16.gmra.mxu1 %vm3968_vm1, %v8930_v24  ;;  %v4290_v63 = vpop.f32.mrf.mxu0  ;;  %v5325_v24 = vshll.u32 %v9329_v33, 16  ;;  %v5329_v38 = vshrl.u32 %v9329_v33, 16 }
 0x3f3   : > { %7206 = vmatprep.mubr.msk.bf16.mxu1 %vm3968_vm1, %v8939_v48  ;;  %v4093_v52 = vpop.f32.mrf.mxu1  ;;  %v9338_v48 = vld [vmem:[#allocation3 + $0x90] ss:$0 sps:$4 sm:$0xff]  }
 0x3f4   : > { %v9326_v50 = vadd.f32 %v4276_v59, %v4093_v52  ;;  %v7039_v7 = vpop.f32.mrf.mxu0  ;;  %v5327_v57 = vrot.slane %v5325_v24, 1 }
 0x3f5   : > { %v7001_v49 = vpop.f32.mrf.mxu1 }
 0x3f6   : > { %v4293_v47 = vpop.f32.mrf.mxu0  ;;  %v5331_v5 = vor.u32 %v5329_v38, %v5327_v57 }
 0x3f7   : > { %v4096_v2 = vpop.f32.mrf.mxu1 }
 0x3f8   : > { %v7042_v3 = vpop.f32.mrf.mxu0  ;;  %7245 = vmatmul.mubr.msk.bf16.gmra.mxu0 %vm3968_vm1, %v9026_v54 }
 0x3f9   : > { %7248 = vmatprep.mubr.msk.bf16.mxu0 %vm3968_vm1, %v9039_v16 }
 0x3fa   : > { %v7004_v1 = vpop.f32.mrf.mxu1  ;;  %7207 = vmatmul.mubr.msk.bf16.gmra.mxu1 %vm3968_vm1, %v8967_v31  ;;  %v4304_v46 = vpop.f32.mrf.mxu0  ;;  %v5333_v31 = vshll.u32 %v9338_v48, 16 }
 0x3fb   : > { %v9340_v29 = vadd.f32 %v7038_v42, %v7004_v1  ;;  %7210 = vmatprep.mubr.msk.bf16.mxu1 %vm3968_vm1, %v8965_v13  ;;  %v5328_v13 = vsel %vm1415_vm15, %v9269_v15, %v5327_v57 }
 0x3fc   : > { %v4107_v58 = vpop.f32.mrf.mxu1  ;;  %v7043_v54 = vpop.f32.mrf.mxu0  ;;  %v5335_v10 = vrot.slane %v5333_v31, 1 }
 0x3fd   : > { %v9344_v32 = vadd.f32 %v4290_v63, %v4107_v58 }
 0x3fe   : > { %v7005_v55 = vpop.f32.mrf.mxu1  ;;  %v4307_v60 = vpop.f32.mrf.mxu0  ;;  %v5336_v15 = vsel %vm1415_vm15, %v5331_v5, %v5335_v10 }
 0x400   : > { %v4110_v16 = vpop.f32.mrf.mxu1  ;;  %v7046_v51 = vpop.f32.mrf.mxu0  ;;  %7249 = vmatmul.mubr.msk.bf16.gmra.mxu0 %vm3968_vm1, %v9262_v53 }
 0x401   : > { %7252 = vmatprep.mubr.msk.bf16.mxu0 %vm3968_vm1, %v5328_v13 }
 0x402   : > { %v7008_v34 = vpop.f32.mrf.mxu1  ;;  %7211 = vmatmul.mubr.msk.bf16.gmra.mxu1 %vm3968_vm1, %v8991_v45  ;;  %v4318_v25 = vpop.f32.mrf.mxu0 }
 0x403   : > { %v9355_v59 = vadd.f32 %v7042_v3, %v7008_v34  ;;  %7214 = vmatprep.mubr.msk.bf16.mxu1 %vm3968_vm1, %v8986_v22 }
 0x404   : > { %v4121_v62 = vpop.f32.mrf.mxu1  ;;  %v7047_v53 = vpop.f32.mrf.mxu0 }
 0x405   : > { %v9359_v21 = vadd.f32 %v4304_v46, %v4121_v62 }
 0x406   : > { %v7009_v20 = vpop.f32.mrf.mxu1  ;;  %v4321_v0 = vpop.f32.mrf.mxu0 }
 0x408   : > { %v4124_v42 = vpop.f32.mrf.mxu1  ;;  %v7050_v45 = vpop.f32.mrf.mxu0  ;;  %7253 = vmatmul.mubr.msk.bf16.gmra.mxu0 %vm3968_vm1, %v5336_v15 }
 0x40a   : > { %v7012_v52 = vpop.f32.mrf.mxu1  ;;  %7215 = vmatmul.mubr.msk.bf16.gmra.mxu1 %vm3968_vm1, %v9023_v37  ;;  %v4332_v22 = vpop.f32.mrf.mxu0 }
 0x40b   : > { %v9365_v63 = vadd.f32 %v7046_v51, %v7012_v52  ;;  %7218 = vmatprep.mubr.msk.bf16.mxu1 %vm3968_vm1, %v9166_v23 }
 0x40c   : > { %v4135_v6 = vpop.f32.mrf.mxu1  ;;  %v7051_v7 = vpop.f32.mrf.mxu0 }
 0x40d   : > { %v9369_v49 = vadd.f32 %v4318_v25, %v4135_v6 }
 0x40e   : > { %v7013_v2 = vpop.f32.mrf.mxu1  ;;  %v4335_v47 = vpop.f32.mrf.mxu0 }
 0x410   : > { %v4138_v3 = vpop.f32.mrf.mxu1  ;;  %v7090_v24 = vpop.f32.mrf.mxu0 }
 0x412   : > { %v7016_v1 = vpop.f32.mrf.mxu1  ;;  %7219 = vmatmul.mubr.msk.bf16.gmra.mxu1 %vm3968_vm1, %v9329_v33  ;;  %v4645_v37 = vpop.f32.mrf.mxu0 }
 0x413   : > { %v9373_v46 = vadd.f32 %v7050_v45, %v7016_v1  ;;  %7258 = vmatprep.mubr.msk.bf16.mxu1 %vm3968_vm1, %v9075_v18 }
 0x414   : > { %v4149_v23 = vpop.f32.mrf.mxu1  ;;  %v7091_v54 = vpop.f32.mrf.mxu0 }
 0x415   : > { %v9377_v58 = vadd.f32 %v4332_v22, %v4149_v23 }
 0x416   : > { %v7017_v57 = vpop.f32.mrf.mxu1  ;;  %v4648_v55 = vpop.f32.mrf.mxu0 }
 0x418   : > { %v4152_v38 = vpop.f32.mrf.mxu1  ;;  %v7094_v31 = vpop.f32.mrf.mxu0 }
 0x41a   : > { %v7056_v60 = vpop.f32.mrf.mxu1  ;;  %7259 = vmatmul.mubr.msk.bf16.vlgmr.msra.gmra.mxu1 %vm3968_vm1, %v9086_v8  ;;  %v4659_v51 = vpop.f32.mrf.mxu0 }
 0x41b   : > { %v4581_v16 = vadd.f32 %v7056_v60, %v9280_v4  ;;  %7262 = vmatprep.mubr.msk.bf16.mxu1 %vm3968_vm1, %v9093_v28 }
 0x41c   : > { %v4469_v18 = vpop.f32.mrf.mxu1  ;;  %v7095_v34 = vpop.f32.mrf.mxu0 }
 0x41d   : > { %v4580_v13 = vadd.f32 %v4469_v18, %v9286_v40  ;;  %v9385_v5 = vadd.f32 %v7090_v24, %v4581_v16 }
 0x41e   : > { %v7057_v10 = vpop.f32.mrf.mxu1  ;;  %v4662_v25 = vpop.f32.mrf.mxu0 }
 0x41f   : > { %v9387_v62 = vadd.f32 %v4645_v37, %v4580_v13 }
 0x420   : > { %v4472_v53 = vpop.f32.mrf.mxu1  ;;  %v7098_v20 = vpop.f32.mrf.mxu0 }
 0x422   : > { %v7060_v15 = vpop.f32.mrf.mxu1  ;;  %7263 = vmatmul.mubr.msk.bf16.gmra.mxu1 %vm3968_vm1, %v9102_v14  ;;  %v4673_v28 = vpop.f32.mrf.mxu0 }
 0x423   : > { %v4583_v8 = vadd.f32 %v7060_v15, %v9294_v9  ;;  %7266 = vmatprep.mubr.msk.bf16.mxu1 %vm3968_vm1, %v9109_v61 }
 0x424   : > { %v4483_v4 = vpop.f32.mrf.mxu1  ;;  %v7099_v0 = vpop.f32.mrf.mxu0 }
 0x425   : > { %v4582_v40 = vadd.f32 %v4483_v4, %v9302_v11  ;;  %v9395_v42 = vadd.f32 %v7094_v31, %v4583_v8 }
 0x426   : > { %v7061_v45 = vpop.f32.mrf.mxu1  ;;  %v4676_v52 = vpop.f32.mrf.mxu0 }
 0x427   : > { %v9397_v22 = vadd.f32 %v4659_v51, %v4582_v40  ;;  %v5513_v45 = vrot.slane %v9329_v33, 1 }
 0x428   : > { %v4486_v6 = vpop.f32.mrf.mxu1  ;;  %v7102_v7 = vpop.f32.mrf.mxu0 }
 0x42a   : > { %v7064_v2 = vpop.f32.mrf.mxu1  ;;  %7267 = vmatmul.mubr.msk.bf16.gmra.mxu1 %vm3968_vm1, %v9118_v39  ;;  %v4687_v61 = vpop.f32.mrf.mxu0 }
 0x42b   : > { %v4585_v14 = vadd.f32 %v7064_v2, %v9306_v19  ;;  %7270 = vmatprep.mubr.msk.bf16.mxu1 %vm3968_vm1, %v9125_v41 }
 0x42c   : > { %v4497_v9 = vpop.f32.mrf.mxu1  ;;  %v7103_v47 = vpop.f32.mrf.mxu0 }
 0x42d   : > { %v4584_v11 = vadd.f32 %v4497_v9, %v9314_v26  ;;  %v9405_v3 = vadd.f32 %v7098_v20, %v4585_v14  ;;  %v5515_v14 = vrot.slane %v9338_v48, 1 }
 0x42e   : > { %v7065_v24 = vpop.f32.mrf.mxu1  ;;  %v4690_v1 = vpop.f32.mrf.mxu0 }
 0x42f   : > { %v9407_v37 = vadd.f32 %v4673_v28, %v4584_v11 }
 0x430   : > { %v4500_v23 = vpop.f32.mrf.mxu1  ;;  %v7106_v54 = vpop.f32.mrf.mxu0 }
 0x432   : > { %v7068_v57 = vpop.f32.mrf.mxu1  ;;  %7271 = vmatmul.mubr.msk.bf16.gmra.mxu1 %vm3968_vm1, %v9134_v44  ;;  %v4701_v41 = vpop.f32.mrf.mxu0 }
 0x433   : > { %v4587_v39 = vadd.f32 %v7068_v57, %v9318_v17  ;;  %7274 = vmatprep.mubr.msk.bf16.mxu1 %vm3968_vm1, %v9141_v36 }
 0x434   : > { %v4511_v19 = vpop.f32.mrf.mxu1  ;;  %v7107_v55 = vpop.f32.mrf.mxu0 }
 0x435   : > { %v4586_v26 = vadd.f32 %v4511_v19, %v9326_v50  ;;  %v9415_v38 = vadd.f32 %v7102_v7, %v4587_v39 }
 0x436   : > { %v7069_v31 = vpop.f32.mrf.mxu1  ;;  %v4704_v60 = vpop.f32.mrf.mxu0 }
 0x437   : > { %v9417_v16 = vadd.f32 %v4687_v61, %v4586_v26 }
 0x438   : > { %v4514_v51 = vpop.f32.mrf.mxu1  ;;  %v7110_v18 = vpop.f32.mrf.mxu0 }
 0x43a   : > { %v7072_v13 = vpop.f32.mrf.mxu1  ;;  %7275 = vmatmul.mubr.msk.bf16.gmra.mxu1 %vm3968_vm1, %v9150_v30  ;;  %v4715_v36 = vpop.f32.mrf.mxu0 }
 0x43b   : > { %v4589_v44 = vadd.f32 %v7072_v13, %v9340_v29  ;;  %7278 = vmatprep.mubr.msk.bf16.mxu1 %vm3968_vm1, %v9157_v56 }
 0x43c   : > { %v4525_v17 = vpop.f32.mrf.mxu1  ;;  %v7111_v34 = vpop.f32.mrf.mxu0 }
 0x43d   : > { %v4588_v50 = vadd.f32 %v4525_v17, %v9344_v32  ;;  %v9425_v10 = vadd.f32 %v7106_v54, %v4589_v44 }
 0x43e   : > { %v7073_v25 = vpop.f32.mrf.mxu1  ;;  %v4718_v53 = vpop.f32.mrf.mxu0 }
 0x43f   : > { %v9427_v20 = vadd.f32 %v4701_v41, %v4588_v50 }
 0x440   : > { %v4528_v15 = vpop.f32.mrf.mxu1  ;;  %v7114_v8 = vpop.f32.mrf.mxu0 }
 0x442   : > { %v7076_v28 = vpop.f32.mrf.mxu1  ;;  %7279 = vmatmul.mubr.msk.bf16.gmra.mxu1 %vm3968_vm1, %v9169_v27  ;;  %v4729_v56 = vpop.f32.mrf.mxu0 }
 0x443   : > { %v4591_v30 = vadd.f32 %v7076_v28, %v9355_v59  ;;  %7282 = vmatprep.mubr.msk.bf16.mxu1 %vm3968_vm1, %v9176_v12  ;;  %v5514_v12 = vsel %vm1948_vm0, %v9236_v35, %v5513_v45 }
 0x444   : > { %v4539_v29 = vpop.f32.mrf.mxu1  ;;  %v7115_v4 = vpop.f32.mrf.mxu0 }
 0x445   : > { %v4590_v32 = vadd.f32 %v4539_v29, %v9359_v21  ;;  %v9435_v40 = vadd.f32 %v7110_v18, %v4591_v30 }
 0x446   : > { %v7077_v0 = vpop.f32.mrf.mxu1  ;;  %v4732_v52 = vpop.f32.mrf.mxu0 }
 0x447   : > { %v9438_v6 = vadd.f32 %v4715_v36, %v4590_v32 }
 0x448   : > { %v4542_v7 = vpop.f32.mrf.mxu1  ;;  %v7118_v27 = vpop.f32.mrf.mxu0 }
 0x44a   : > { %v7080_v2 = vpop.f32.mrf.mxu1  ;;  %7283 = vmatmul.mubr.msk.bf16.gmra.mxu1 %vm3968_vm1, %v9246_v43  ;;  %v4743_v21 = vpop.f32.mrf.mxu0  ;;  %v5516_v43 = vsel %vm1948_vm0, %v5513_v45, %v5515_v14 }
 0x44b   : > { %v4593_v59 = vadd.f32 %v7080_v2, %v9365_v63  ;;  %7286 = vmatprep.mubr.msk.bf16.mxu1 %vm3968_vm1, %v5514_v12 }
 0x44c   : > { %v4553_v33 = vpop.f32.mrf.mxu1  ;;  %v7119_v9 = vpop.f32.mrf.mxu0 }
 0x44d   : > { %v4592_v61 = vadd.f32 %v4553_v33, %v9369_v49  ;;  %v9448_v11 = vadd.f32 %v7114_v8, %v4593_v59 }
 0x44e   : > { %v7081_v47 = vpop.f32.mrf.mxu1  ;;  %v4746_v24 = vpop.f32.mrf.mxu0 }
 0x44f   : > { %v9451_v1 = vadd.f32 %v4729_v56, %v4592_v61 }
 0x450   : > { %v4556_v35 = vpop.f32.mrf.mxu1  ;;  %v7158_v23 = vpop.f32.mrf.mxu0 }
 0x452   : > { %v7084_v63 = vpop.f32.mrf.mxu1  ;;  %7287 = vmatmul.mubr.msk.bf16.gmra.mxu1 %vm3968_vm1, %v5516_v43  ;;  %v5016_v48 = vpop.f32.mrf.mxu0 }
 0x453   : > { %v4595_v54 = vadd.f32 %v7084_v63, %v9373_v46 }
 0x454   : > { %v4567_v57 = vpop.f32.mrf.mxu1  ;;  %v7159_v39 = vpop.f32.mrf.mxu0 }
 0x455   : > { %v4594_v49 = vadd.f32 %v4567_v57, %v9377_v58  ;;  %v9456_v41 = vadd.f32 %v7118_v27, %v4595_v54 }
 0x456   : > { %v7085_v19 = vpop.f32.mrf.mxu1  ;;  %v5019_v26 = vpop.f32.mrf.mxu0 }
 0x457   : > { %v9458_v55 = vadd.f32 %v4743_v21, %v4594_v49 }
 0x458   : > { %v4570_v31 = vpop.f32.mrf.mxu1  ;;  %v7162_v60 = vpop.f32.mrf.mxu0 }
 0x45a   : > { %v7124_v51 = vpop.f32.mrf.mxu1  ;;  %v5030_v13 = vpop.f32.mrf.mxu0 }
 0x45b   : > { %v4948_v18 = vadd.f32 %v7124_v51, %v9385_v5 }
 0x45c   : > { %v4836_v44 = vpop.f32.mrf.mxu1  ;;  %v7163_v36 = vpop.f32.mrf.mxu0 }
 0x45d   : > { %v4947_v46 = vadd.f32 %v4836_v44, %v9387_v62  ;;  %v9462_v17 = vadd.f32 %v7158_v23, %v4948_v18 }
 0x45e   : > { %v7125_v58 = vpop.f32.mrf.mxu1  ;;  %v5033_v50 = vpop.f32.mrf.mxu0 }
 0x45f   : > { %v9464_v34 = vadd.f32 %v5016_v48, %v4947_v46 }
 0x460   : > { %v4839_v25 = vpop.f32.mrf.mxu1  ;;  %v7166_v53 = vpop.f32.mrf.mxu0 }
 0x462   : > { %v7128_v15 = vpop.f32.mrf.mxu1  ;;  %v5044_v28 = vpop.f32.mrf.mxu0 }
 0x463   : > { %v4950_v8 = vadd.f32 %v7128_v15, %v9395_v42 }
 0x464   : > { %v4850_v30 = vpop.f32.mrf.mxu1  ;;  %v7167_v56 = vpop.f32.mrf.mxu0 }
 0x465   : > { %v4949_v5 = vadd.f32 %v4850_v30, %v9397_v22  ;;  %v9468_v29 = vadd.f32 %v7162_v60, %v4950_v8 }
 0x466   : > { %v7129_v62 = vpop.f32.mrf.mxu1  ;;  %v5047_v32 = vpop.f32.mrf.mxu0 }
 0x467   : > { %v9470_v4 = vadd.f32 %v5030_v13, %v4949_v5 }
 0x468   : > { %v4853_v0 = vpop.f32.mrf.mxu1  ;;  %v7170_v45 = vpop.f32.mrf.mxu0 }
 0x46a   : > { %v7132_v52 = vpop.f32.mrf.mxu1  ;;  %v5058_v27 = vpop.f32.mrf.mxu0 }
 0x46b   : > { %v4952_v7 = vadd.f32 %v7132_v52, %v9405_v3 }
 0x46c   : > { %v4864_v2 = vpop.f32.mrf.mxu1  ;;  %v7171_v12 = vpop.f32.mrf.mxu0 }
 0x46d   : > { %v4951_v42 = vadd.f32 %v4864_v2, %v9407_v37  ;;  %v9474_v59 = vadd.f32 %v7166_v53, %v4952_v7 }
 0x46e   : > { %v7133_v22 = vpop.f32.mrf.mxu1  ;;  %v5061_v21 = vpop.f32.mrf.mxu0 }
 0x46f   : > { %v9476_v14 = vadd.f32 %v5044_v28, %v4951_v42 }
 0x470   : > { %v4867_v33 = vpop.f32.mrf.mxu1  ;;  %v7174_v61 = vpop.f32.mrf.mxu0 }
 0x472   : > { %v7136_v9 = vpop.f32.mrf.mxu1  ;;  %v5072_v24 = vpop.f32.mrf.mxu0 }
 0x473   : > { %v4954_v47 = vadd.f32 %v7136_v9, %v9415_v38 }
 0x474   : > { %v4878_v43 = vpop.f32.mrf.mxu1  ;;  %v7175_v35 = vpop.f32.mrf.mxu0 }
 0x475   : > { %v4953_v3 = vadd.f32 %v4878_v43, %v9417_v16  ;;  %v9480_v23 = vadd.f32 %v7170_v45, %v4954_v47 }
 0x476   : > { %v7137_v37 = vpop.f32.mrf.mxu1  ;;  %v5075_v63 = vpop.f32.mrf.mxu0 }
 0x477   : > { %v9482_v54 = vadd.f32 %v5058_v27, %v4953_v3 }
 0x478   : > { %v4881_v48 = vpop.f32.mrf.mxu1  ;;  %v7178_v57 = vpop.f32.mrf.mxu0 }
 0x47a   : > { %v7140_v49 = vpop.f32.mrf.mxu1  ;;  %v5086_v19 = vpop.f32.mrf.mxu0 }
 0x47b   : > { %v4956_v39 = vadd.f32 %v7140_v49, %v9425_v10 }
 0x47c   : > { %v4892_v26 = vpop.f32.mrf.mxu1  ;;  %v7179_v31 = vpop.f32.mrf.mxu0 }
 0x47d   : > { %v4955_v38 = vadd.f32 %v4892_v26, %v9427_v20  ;;  %v9486_v60 = vadd.f32 %v7174_v61, %v4956_v39 }
 0x47e   : > { %v7141_v16 = vpop.f32.mrf.mxu1  ;;  %v5089_v51 = vpop.f32.mrf.mxu0 }
 0x47f   : > { %v9488_v18 = vadd.f32 %v5072_v24, %v4955_v38 }
 0x480   : > { %v4895_v13 = vpop.f32.mrf.mxu1  ;;  %v7182_v44 = vpop.f32.mrf.mxu0 }
 0x482   : > { %v7144_v46 = vpop.f32.mrf.mxu1  ;;  %v5100_v58 = vpop.f32.mrf.mxu0 }
 0x483   : > { %v4958_v36 = vadd.f32 %v7144_v46, %v9435_v40 }
 0x484   : > { %v4906_v50 = vpop.f32.mrf.mxu1  ;;  %v7183_v25 = vpop.f32.mrf.mxu0 }
 0x485   : > { %v4957_v10 = vadd.f32 %v4906_v50, %v9438_v6  ;;  %v9492_v53 = vadd.f32 %v7178_v57, %v4958_v36 }
 0x486   : > { %v7145_v20 = vpop.f32.mrf.mxu1  ;;  %v5103_v15 = vpop.f32.mrf.mxu0 }
 0x487   : > { %v9494_v8 = vadd.f32 %v5086_v19, %v4957_v10 }
 0x488   : > { %v4909_v28 = vpop.f32.mrf.mxu1  ;;  %v7186_v30 = vpop.f32.mrf.mxu0 }
 0x48a   : > { %v7148_v5 = vpop.f32.mrf.mxu1  ;;  %v5114_v62 = vpop.f32.mrf.mxu0 }
 0x48b   : > { %v4960_v56 = vadd.f32 %v7148_v5, %v9448_v11 }
 0x48c   : > { %v4920_v32 = vpop.f32.mrf.mxu1  ;;  %v7187_v0 = vpop.f32.mrf.mxu0 }
 0x48d   : > { %v4959_v40 = vadd.f32 %v4920_v32, %v9451_v1  ;;  %v9498_v45 = vadd.f32 %v7182_v44, %v4960_v56 }
 0x48e   : > { %v7149_v6 = vpop.f32.mrf.mxu1  ;;  %v5117_v52 = vpop.f32.mrf.mxu0 }
 0x48f   : > { %v9500_v7 = vadd.f32 %v5100_v58, %v4959_v40 }
 0x490   : > { %v4923_v27 = vpop.f32.mrf.mxu1  ;;  %v7226_v2 = vpop.f32.mrf.mxu0 }
 0x492   : > { %v7152_v42 = vpop.f32.mrf.mxu1  ;;  %v5383_v22 = vpop.f32.mrf.mxu0 }
 0x493   : > { %v4962_v12 = vadd.f32 %v7152_v42, %v9456_v41 }
 0x494   : > { %v4934_v21 = vpop.f32.mrf.mxu1  ;;  %v7227_v33 = vpop.f32.mrf.mxu0 }
 0x495   : > { %v4961_v11 = vadd.f32 %v4934_v21, %v9458_v55  ;;  %v9504_v61 = vadd.f32 %v7186_v30, %v4962_v12 }
 0x496   : > { %v7153_v1 = vpop.f32.mrf.mxu1  ;;  %v5386_v9 = vpop.f32.mrf.mxu0 }
 0x497   : > { %v9506_v47 = vadd.f32 %v5114_v62, %v4961_v11 }
 0x498   : > { %v4937_v24 = vpop.f32.mrf.mxu1  ;;  %v7230_v43 = vpop.f32.mrf.mxu0 }
 0x49a   : > { %v7192_v3 = vpop.f32.mrf.mxu1  ;;  %v5397_v37 = vpop.f32.mrf.mxu0 }
 0x49b   : > { %v5304_v35 = vadd.f32 %v7192_v3, %v9462_v17 }
 0x49c   : > { %v5192_v63 = vpop.f32.mrf.mxu1  ;;  %v7231_v48 = vpop.f32.mrf.mxu0 }
 0x49d   : > { %v5303_v41 = vadd.f32 %v5192_v63, %v9464_v34  ;;  %v9510_v57 = vadd.f32 %v7226_v2, %v5304_v35 }
 0x49e   : > { %v7193_v55 = vpop.f32.mrf.mxu1  ;;  %v5400_v49 = vpop.f32.mrf.mxu0 }
 0x49f   : > { %v9512_v39 = vadd.f32 %v5383_v22, %v5303_v41 }
 0x4a0   : > { %v5195_v19 = vpop.f32.mrf.mxu1  ;;  %v7234_v26 = vpop.f32.mrf.mxu0 }
 0x4a2   : > { %v7196_v38 = vpop.f32.mrf.mxu1  ;;  %v5411_v16 = vpop.f32.mrf.mxu0 }
 0x4a3   : > { %v5306_v31 = vadd.f32 %v7196_v38, %v9468_v29 }
 0x4a4   : > { %v5206_v51 = vpop.f32.mrf.mxu1  ;;  %v7235_v13 = vpop.f32.mrf.mxu0 }
 0x4a5   : > { %v5305_v17 = vadd.f32 %v5206_v51, %v9470_v4  ;;  %v9516_v44 = vadd.f32 %v7230_v43, %v5306_v31 }
 0x4a6   : > { %v7197_v34 = vpop.f32.mrf.mxu1  ;;  %v5414_v46 = vpop.f32.mrf.mxu0 }
 0x4a7   : > { %v9518_v36 = vadd.f32 %v5397_v37, %v5305_v17 }
 0x4a8   : > { %v5209_v58 = vpop.f32.mrf.mxu1  ;;  %v7238_v50 = vpop.f32.mrf.mxu0 }
 0x4aa   : > { %v7200_v10 = vpop.f32.mrf.mxu1  ;;  %v5425_v20 = vpop.f32.mrf.mxu0 }
 0x4ab   : > { %v5308_v25 = vadd.f32 %v7200_v10, %v9474_v59 }
 0x4ac   : > { %v5220_v15 = vpop.f32.mrf.mxu1  ;;  %v7239_v28 = vpop.f32.mrf.mxu0 }
 0x4ad   : > { %v5307_v29 = vadd.f32 %v5220_v15, %v9476_v14  ;;  %v9522_v30 = vadd.f32 %v7234_v26, %v5308_v25 }
 0x4ae   : > { %v7201_v4 = vpop.f32.mrf.mxu1  ;;  %v5428_v5 = vpop.f32.mrf.mxu0 }
 0x4af   : > { %v9524_v56 = vadd.f32 %v5411_v16, %v5307_v29 }
 0x4b0   : > { %v5223_v62 = vpop.f32.mrf.mxu1  ;;  %v7242_v32 = vpop.f32.mrf.mxu0 }
 0x4b2   : > { %v7204_v40 = vpop.f32.mrf.mxu1  ;;  %v5439_v6 = vpop.f32.mrf.mxu0 }
 0x4b3   : > { %v5310_v0 = vadd.f32 %v7204_v40, %v9480_v23  ;;  %v9559_v40 = vld [vmem:[%s9635_s7] ss:$0 sm:$0xff] }
 0x4b4   : > { %v5234_v52 = vpop.f32.mrf.mxu1  ;;  %v7243_v27 = vpop.f32.mrf.mxu0 }
 0x4b5   : > { %v5309_v59 = vadd.f32 %v5234_v52, %v9482_v54  ;;  %v9528_v2 = vadd.f32 %v7238_v50, %v5310_v0 }
 0x4b6   : > { %v7205_v14 = vpop.f32.mrf.mxu1  ;;  %v5442_v42 = vpop.f32.mrf.mxu0 }
 0x4b7   : > { %v9530_v12 = vadd.f32 %v5425_v20, %v5309_v59 }
 0x4b8   : > { %v5237_v22 = vpop.f32.mrf.mxu1  ;;  %v7246_v21 = vpop.f32.mrf.mxu0 }
 0x4ba   : > { %v7208_v11 = vpop.f32.mrf.mxu1  ;;  %v5453_v1 = vpop.f32.mrf.mxu0 }
 0x4bb   : > { %v5312_v33 = vadd.f32 %v7208_v11, %v9486_v60 }
 0x4bc   : > { %v5248_v9 = vpop.f32.mrf.mxu1  ;;  %v7247_v24 = vpop.f32.mrf.mxu0 }
 0x4bd   : > { %v5311_v23 = vadd.f32 %v5248_v9, %v9488_v18  ;;  %v9534_v43 = vadd.f32 %v7242_v32, %v5312_v33 }
 0x4be   : > { %v7209_v54 = vpop.f32.mrf.mxu1  ;;  %v5456_v3 = vpop.f32.mrf.mxu0 }
 0x4bf   : > { %v9536_v35 = vadd.f32 %v5439_v6, %v5311_v23 }
 0x4c0   : > { %v5251_v37 = vpop.f32.mrf.mxu1  ;;  %v7250_v63 = vpop.f32.mrf.mxu0 }
 0x4c2   : > { %v7212_v41 = vpop.f32.mrf.mxu1  ;;  %v5467_v55 = vpop.f32.mrf.mxu0 }
 0x4c3   : > { %v5314_v48 = vadd.f32 %v7212_v41, %v9492_v53 }
 0x4c4   : > { %v5262_v49 = vpop.f32.mrf.mxu1  ;;  %v7251_v19 = vpop.f32.mrf.mxu0 }
 0x4c5   : > { %v5313_v60 = vadd.f32 %v5262_v49, %v9494_v8  ;;  %v9540_v26 = vadd.f32 %v7246_v21, %v5314_v48 }
 0x4c6   : > { %v7213_v18 = vpop.f32.mrf.mxu1  ;;  %v5470_v38 = vpop.f32.mrf.mxu0 }
 0x4c7   : > { %v9542_v31 = vadd.f32 %v5453_v1, %v5313_v60 }
 0x4c8   : > { %v5265_v16 = vpop.f32.mrf.mxu1  ;;  %v7254_v51 = vpop.f32.mrf.mxu0 }
 0x4ca   : > { %v7216_v17 = vpop.f32.mrf.mxu1  ;;  %v5481_v34 = vpop.f32.mrf.mxu0 }
 0x4cb   : > { %v5316_v13 = vadd.f32 %v7216_v17, %v9498_v45 }
 0x4cc   : > { %v5276_v46 = vpop.f32.mrf.mxu1  ;;  %v7255_v50 = vpop.f32.mrf.mxu0 }
 0x4cd   : > { %v5315_v53 = vadd.f32 %v5276_v46, %v9500_v7  ;;  %v9546_v58 = vadd.f32 %v7250_v63, %v5316_v13 }
 0x4ce   : > { %v7217_v8 = vpop.f32.mrf.mxu1  ;;  %v5484_v25 = vpop.f32.mrf.mxu0 }
 0x4cf   : > { %v9548_v10 = vadd.f32 %v5467_v55, %v5315_v53 }
 0x4d0   : > { %v5279_v20 = vpop.f32.mrf.mxu1 }
 0x4d2   : > { %v7220_v15 = vpop.f32.mrf.mxu1 }
 0x4d3   : > { %v5318_v29 = vadd.f32 %v7220_v15, %v9504_v61 }
 0x4d4   : > { %v5290_v28 = vpop.f32.mrf.mxu1 }
 0x4d5   : > { %v5317_v4 = vadd.f32 %v5290_v28, %v9506_v47  ;;  %v9552_v45 = vadd.f32 %v7254_v51, %v5318_v29 }
 0x4d6   : > { %v7221_v5 = vpop.f32.mrf.mxu1 }
 0x4d7   : > { %v9554_v7 = vadd.f32 %v5481_v34, %v5317_v4 }
 0x4d8   : > { %v5293_v62 = vpop.f32.mrf.mxu1 }
 0x4da   : > { %v7260_v32 = vpop.f32.mrf.mxu1 }
 0x4db   : > { %v5675_v0 = vadd.f32 %v7260_v32, %v9510_v57 }
 0x4dc   : > { %v5563_v61 = vpop.f32.mrf.mxu1 }
 0x4dd   : > { %v5698_v6 = vadd.f32 %v9559_v40, %v5675_v0  ;;  %v5674_v47 = vadd.f32 %v5563_v61, %v9512_v39 }
 0x4de   : > { %v7261_v52 = vpop.f32.mrf.mxu1 }
 0x4df   : > { %v5714_v59 = vmax.f32 %v5698_v6, 0.0  ;;  %v5697_v27 = vadd.f32 %v9559_v40, %v5674_v47 }
 0x4e0   : > { %v5566_v14 = vpop.f32.mrf.mxu1 }
 0x4e1   : > { %5730 = vst.msk [vmem:[%s7451_s19 + $0x8] sm:$0xff] %vm3968_vm1, %v5714_v59  ;;  %v5713_v42 = vmax.f32 %v5697_v27, 0.0 }
 0x4e2   : > { %v7264_v22 = vpop.f32.mrf.mxu1 }
 0x4e3   : > { %5729 = vst.msk [vmem:[%s7451_s19] sm:$0xff] %vm3968_vm1, %v5713_v42  ;;  %v5677_v57 = vadd.f32 %v7264_v22, %v9516_v44 }
 0x4e4   : > { %v5577_v21 = vpop.f32.mrf.mxu1 }
 0x4e5   : > { %v5700_v11 = vadd.f32 %v9559_v40, %v5677_v57  ;;  %v5676_v39 = vadd.f32 %v5577_v21, %v9518_v36 }
 0x4e6   : > { %v7265_v33 = vpop.f32.mrf.mxu1 }
 0x4e7   : > { %v5716_v1 = vmax.f32 %v5700_v11, 0.0  ;;  %v5699_v9 = vadd.f32 %v9559_v40, %v5676_v39 }
 0x4e8   : > { %v5580_v23 = vpop.f32.mrf.mxu1 }
 0x4e9   : > { %5732 = vst.msk [vmem:[%s7451_s19 + $0x18] sm:$0xff] %vm3968_vm1, %v5716_v1  ;;  %v5715_v24 = vmax.f32 %v5699_v9, 0.0 }
 0x4ea   : > { %v7268_v54 = vpop.f32.mrf.mxu1 }
 0x4eb   : > { %5731 = vst.msk [vmem:[%s7451_s19 + $0x10] sm:$0xff] %vm3968_vm1, %v5715_v24  ;;  %v5679_v44 = vadd.f32 %v7268_v54, %v9522_v30 }
 0x4ec   : > { %v5591_v3 = vpop.f32.mrf.mxu1 }
 0x4ed   : > { %v5702_v37 = vadd.f32 %v9559_v40, %v5679_v44  ;;  %v5678_v36 = vadd.f32 %v5591_v3, %v9524_v56 }
 0x4ee   : > { %v7269_v63 = vpop.f32.mrf.mxu1 }
 0x4ef   : > { %v5718_v41 = vmax.f32 %v5702_v37, 0.0  ;;  %v5701_v48 = vadd.f32 %v9559_v40, %v5678_v36 }
 0x4f0   : > { %v5594_v55 = vpop.f32.mrf.mxu1 }
 0x4f1   : > { %5734 = vst.msk [vmem:[%s7451_s19 + $0x28] sm:$0xff] %vm3968_vm1, %v5718_v41  ;;  %v5717_v49 = vmax.f32 %v5701_v48, 0.0 }
 0x4f2   : > { %v7272_v60 = vpop.f32.mrf.mxu1 }
 0x4f3   : > { %5733 = vst.msk [vmem:[%s7451_s19 + $0x20] sm:$0xff] %vm3968_vm1, %v5717_v49  ;;  %v5681_v30 = vadd.f32 %v7272_v60, %v9528_v2 }
 0x4f4   : > { %v5605_v19 = vpop.f32.mrf.mxu1 }
 0x4f5   : > { %v5704_v18 = vadd.f32 %v9559_v40, %v5681_v30  ;;  %v5680_v56 = vadd.f32 %v5605_v19, %v9530_v12 }
 0x4f6   : > { %v7273_v38 = vpop.f32.mrf.mxu1 }
 0x4f7   : > { %v5720_v16 = vmax.f32 %v5704_v18, 0.0  ;;  %v5703_v51 = vadd.f32 %v9559_v40, %v5680_v56 }
 0x4f8   : > { %v5608_v17 = vpop.f32.mrf.mxu1 }
 0x4f9   : > { %5736 = vst.msk [vmem:[%s7451_s19 + $0x38] sm:$0xff] %vm3968_vm1, %v5720_v16  ;;  %v5719_v13 = vmax.f32 %v5703_v51, 0.0 }
 0x4fa   : > { %v7276_v34 = vpop.f32.mrf.mxu1 }
 0x4fb   : > { %5735 = vst.msk [vmem:[%s7451_s19 + $0x30] sm:$0xff] %vm3968_vm1, %v5719_v13  ;;  %v5683_v2 = vadd.f32 %v7276_v34, %v9534_v43 }
 0x4fc   : > { %v5619_v46 = vpop.f32.mrf.mxu1 }
 0x4fd   : > { %v5706_v53 = vadd.f32 %v9559_v40, %v5683_v2  ;;  %v5682_v12 = vadd.f32 %v5619_v46, %v9536_v35 }
 0x4fe   : > { %v7277_v50 = vpop.f32.mrf.mxu1 }
 0x4ff   : > { %v5722_v8 = vmax.f32 %v5706_v53, 0.0  ;;  %v5705_v25 = vadd.f32 %v9559_v40, %v5682_v12 }
 0x500   : > { %v5622_v20 = vpop.f32.mrf.mxu1 }
 0x501   : > { %5738 = vst.msk [vmem:[%s7451_s19 + $0x48] sm:$0xff] %vm3968_vm1, %v5722_v8  ;;  %v5721_v15 = vmax.f32 %v5705_v25, 0.0 }
 0x502   : > { %v7280_v29 = vpop.f32.mrf.mxu1 }
 0x503   : > { %5737 = vst.msk [vmem:[%s7451_s19 + $0x40] sm:$0xff] %vm3968_vm1, %v5721_v15  ;;  %v5685_v43 = vadd.f32 %v7280_v29, %v9540_v26 }
 0x504   : > { %v5633_v28 = vpop.f32.mrf.mxu1 }
 0x505   : > { %v5708_v4 = vadd.f32 %v9559_v40, %v5685_v43  ;;  %v5684_v35 = vadd.f32 %v5633_v28, %v9542_v31 }
 0x506   : > { %v7281_v5 = vpop.f32.mrf.mxu1 }
 0x507   : > { %v5724_v62 = vmax.f32 %v5708_v4, 0.0  ;;  %v5707_v32 = vadd.f32 %v9559_v40, %v5684_v35 }
 0x508   : > { %v5636_v0 = vpop.f32.mrf.mxu1 }
 0x509   : > { %5740 = vst.msk [vmem:[%s7451_s19 + $0x58] sm:$0xff] %vm3968_vm1, %v5724_v62  ;;  %v5723_v61 = vmax.f32 %v5707_v32, 0.0 }
 0x50a   : > { %v7284_v6 = vpop.f32.mrf.mxu1 }
 0x50b   : > { %5739 = vst.msk [vmem:[%s7451_s19 + $0x50] sm:$0xff] %vm3968_vm1, %v5723_v61  ;;  %v5687_v26 = vadd.f32 %v7284_v6, %v9546_v58 }
 0x50c   : > { %v5647_v47 = vpop.f32.mrf.mxu1 }
 0x50d   : > { %v5710_v52 = vadd.f32 %v9559_v40, %v5687_v26  ;;  %v5686_v31 = vadd.f32 %v5647_v47, %v9548_v10 }
 0x50e   : > { %v7285_v59 = vpop.f32.mrf.mxu1 }
 0x50f   : > { %v5726_v27 = vmax.f32 %v5710_v52, 0.0  ;;  %v5709_v14 = vadd.f32 %v9559_v40, %v5686_v31 }
 0x510   : > { %v5650_v42 = vpop.f32.mrf.mxu1 }
 0x511   : > { %5742 = vst.msk [vmem:[%s7451_s19 + $0x68] sm:$0xff] %vm3968_vm1, %v5726_v27  ;;  %v5725_v22 = vmax.f32 %v5709_v14, 0.0 }
 0x512   : > { %v7288_v57 = vpop.f32.mrf.mxu1 }
 0x513   : > { %5741 = vst.msk [vmem:[%s7451_s19 + $0x60] sm:$0xff] %vm3968_vm1, %v5725_v22  ;;  %v5689_v58 = vadd.f32 %v7288_v57, %v9552_v45 }
 0x514   : > { %v5661_v21 = vpop.f32.mrf.mxu1 }
 0x515   : > { %v5712_v11 = vadd.f32 %v9559_v40, %v5689_v58  ;;  %v5688_v10 = vadd.f32 %v5661_v21, %v9554_v7 }
 0x516   : > { %v7289_v39 = vpop.f32.mrf.mxu1 }
 0x517   : > { %v5728_v33 = vmax.f32 %v5712_v11, 0.0  ;;  %v5711_v1 = vadd.f32 %v9559_v40, %v5688_v10 }
 0x518   : > { %v5664_v9 = vpop.f32.mrf.mxu1 }
 0x519   : > { %5744 = vst.msk [vmem:[%s7451_s19 + $0x78] sm:$0xff] %vm3968_vm1, %v5728_v33  ;;  %v5727_v23 = vmax.f32 %v5711_v1, 0.0 }
 0x51b   : > { %5743 = vst.msk [vmem:[%s7451_s19 + $0x70] sm:$0xff] %vm3968_vm1, %v5727_v23 }
 0x51c PF: > { %s18_s27 = sadd.s32 1, %s7381_s27  }
 0x51d   : > { %p15_p5 = scmp.ge.s32.totalorder %s18_s27, 4  }
 0x51f   :  { %17 = sbr.rel (!%p15_p5) target bundleno = 1 (0x1), region = 123 }

</bundles_post_ra>
